<compile_context>
chip_gen: v6e
topology: v6e:2x2x1
jax: 0.10.0
libtpu: 0.0.40
codegen_flags: <defaults>
</compile_context>

<pallas_src>
import numpy as np

import jax
import jax.numpy as jnp
from jax.experimental import pallas as pl
from jax.experimental.pallas import tpu as pltpu

CP = 128          # lane-dense padded channel width used for every layer
KTAPS = 9         # 3x3 conv taps


# --------------------------------------------------------------------------
# Host-side 0/1 constant builders (layout plumbing, no heavy compute)
# --------------------------------------------------------------------------
def make_tap_gather(h_in, w_in, stride, pad=1, k=3):
    """G[t] (S_out, S_in) 0/1 row-gather for conv tap t; zero rows == padding."""
    h_out = (h_in + 2 * pad - k) // stride + 1
    w_out = (w_in + 2 * pad - k) // stride + 1
    g = np.zeros((k * k, h_out * w_out, h_in * w_in), np.float32)
    for ky in range(k):
        for kx in range(k):
            t = ky * k + kx
            for oy in range(h_out):
                for ox in range(w_out):
                    iy = oy * stride + ky - pad
                    ix = ox * stride + kx - pad
                    if 0 <= iy < h_in and 0 <= ix < w_in:
                        g[t, oy * w_out + ox, iy * w_in + ix] = 1.0
    return g, (h_out, w_out)


def make_nearest_upsample(h_out, w_out, h_in, w_in):
    """U (S_out, S_in) 0/1 nearest-neighbour upsample matrix."""
    u = np.zeros((h_out * w_out, h_in * w_in), np.float32)
    for y in range(h_out):
        for x in range(w_out):
            sy = min(y * h_in // h_out, h_in - 1)
            sx = min(x * w_in // w_out, w_in - 1)
            u[y * w_out + x, sy * w_in + sx] = 1.0
    return u


# --------------------------------------------------------------------------
# Fused Pallas kernel: whole segmentor forward for one image per grid step
# --------------------------------------------------------------------------
def _segmentor_kernel(x_ref,
                      g1_ref, w1_ref, b1_ref,      # backbone conv1 (s2)
                      g2_ref, w2_ref, b2_ref,      # backbone conv2 (s2)
                      wn_ref, bn_ref,              # neck 1x1
                      g3_ref, w3_ref, b3_ref,      # head 3x3 (s1)
                      wmc_ref, bmc_ref,            # fused mask+cls 1x1
                      up_ref,                      # nearest upsample matrix
                      masks_ref, scores_ref):
    f32, bf16 = jnp.float32, jnp.bfloat16
    cp = x_ref.shape[-1]

    def conv3x3(x_bf, g_ref, w_ref, b_ref):
        """3x3 conv: per-tap row-gather matmul + channel matmul, f32 accumulate."""
        s_out = g_ref.shape[1]
        acc = jnp.zeros((s_out, cp), f32)
        for t in range(KTAPS):                     # static unroll, MXU only
            patch = jnp.dot(g_ref[t], x_bf,
                            preferred_element_type=f32).astype(bf16)
            acc = acc + jnp.dot(patch, w_ref[t], preferred_element_type=f32)
        return acc + b_ref[...]

    x0 = x_ref[0]                                                  # (S0, CP) bf16

    # ---- backbone (stride-2 folded into the gather matrices) ----
    x1 = jnp.maximum(conv3x3(x0, g1_ref, w1_ref, b1_ref), 0.0).astype(bf16)
    x2 = jnp.maximum(conv3x3(x1, g2_ref, w2_ref, b2_ref), 0.0).astype(bf16)

    # ---- neck: 1x1 conv ----
    x3 = (jnp.dot(x2, wn_ref[...], preferred_element_type=f32)
          + bn_ref[...]).astype(bf16)

    # ---- head: 3x3 conv + ReLU ----
    feat = jnp.maximum(conv3x3(x3, g3_ref, w3_ref, b3_ref), 0.0).astype(bf16)

    # ---- fused mask/cls 1x1: lanes [0,CP) = mask logits, [CP,2CP) = cls ----
    mc = jnp.dot(feat, wmc_ref[...], preferred_element_type=f32) + bmc_ref[...]
    mask_logits = mc[:, :cp].astype(bf16)                          # (S2, CP)
    cls_logits = mc[:, cp:]                                        # (S2, CP) f32

    # mask branch: nearest upsample (0/1 matmul) then sigmoid, channels-last
    up = jnp.dot(up_ref[...], mask_logits, preferred_element_type=f32)
    masks_ref[0] = jax.nn.sigmoid(up)                              # (S0, CP)

    # cls branch: in-kernel global average pool + sigmoid
    scores_ref[0] = jax.nn.sigmoid(jnp.mean(cls_logits, axis=0, keepdims=True))


def _rep_spec(shape):
    """Full-array block replicated across the batch grid axis."""
    nd = len(shape)
    return pl.BlockSpec(shape, lambda i, _nd=nd: (0,) * _nd)


def segmentor_forward_pallas(x0, consts, weights):
    """x0: (N, H*W, CP) bf16.  Returns (masks (N,H*W,CP) f32, scores (N,1,CP) f32)."""
    n, s0, cp = x0.shape
    g1, g2, g3, up = consts
    (w1, b1, w2, b2, wn, bn, w3, b3, wmc, bmc) = weights
    side = [g1, w1, b1, g2, w2, b2, wn, bn, g3, w3, b3, wmc, bmc, up]

    # advisory cost estimate for the XLA scheduler
    s1, s2 = g1.shape[1], g2.shape[1]
    mm = lambda m, k, q: 2 * m * k * q
    flops = n * (KTAPS * (mm(s1, s0, cp) + mm(s1, cp, cp))
                 + KTAPS * (mm(s2, s1, cp) + mm(s2, cp, cp))
                 + mm(s2, cp, cp)
                 + KTAPS * (mm(s2, s2, cp) + mm(s2, cp, cp))
                 + mm(s2, cp, 2 * cp)
                 + mm(s0, s2, cp))
    bytes_accessed = int(x0.nbytes + sum(a.nbytes for a in side)
                         + n * s0 * cp * 4 + n * cp * 4)
    cost = pl.CostEstimate(flops=int(flops),
                           transcendentals=int(n * (s0 * cp + cp)),
                           bytes_accessed=bytes_accessed)

    grid_spec = pltpu.PrefetchScalarGridSpec(
        num_scalar_prefetch=0,
        grid=(n,),
        in_specs=[pl.BlockSpec((1, s0, cp), lambda i: (i, 0, 0))]
                 + [_rep_spec(a.shape) for a in side],
        out_specs=(pl.BlockSpec((1, s0, cp), lambda i: (i, 0, 0)),
                   pl.BlockSpec((1, 1, cp), lambda i: (i, 0, 0))),
    )

    masks_flat, scores = pl.pallas_call(
        _segmentor_kernel,
        out_shape=(jax.ShapeDtypeStruct((n, s0, cp), jnp.float32),
                   jax.ShapeDtypeStruct((n, 1, cp), jnp.float32)),
        grid_spec=grid_spec,
        compiler_params=pltpu.CompilerParams(
            dimension_semantics=("parallel",),          # batch across TCs (v7x)
            vmem_limit_bytes=32 * 1024 * 1024),
        cost_estimate=cost,
    )(x0, *side)
    return masks_flat, scores


# --------------------------------------------------------------------------
# Deterministic synthetic parameters (no checkpoint); channels padded to CP
# --------------------------------------------------------------------------
def make_params(key, cin, c1, c2, cneck, chead, num_classes, cp=CP):
    ks = jax.random.split(key, 6)

    def winit(k, shape, fan_in):
        return jax.random.normal(k, shape, jnp.float32) * (1.0 / np.sqrt(float(fan_in)))

    def pad_taps(w, ci, co):
        return jnp.zeros((KTAPS, cp, cp), jnp.float32).at[:, :ci, :co].set(w)

    p = {}
    p["bb1_w"] = pad_taps(winit(ks[0], (KTAPS, cin, c1), KTAPS * cin), cin, c1)
    p["bb1_b"] = jnp.zeros((1, cp), jnp.float32)
    p["bb2_w"] = pad_taps(winit(ks[1], (KTAPS, c1, c2), KTAPS * c1), c1, c2)
    p["bb2_b"] = jnp.zeros((1, cp), jnp.float32)
    p["nk_w"] = jnp.zeros((cp, cp), jnp.float32).at[:c2, :cneck].set(
        winit(ks[2], (c2, cneck), c2))
    p["nk_b"] = jnp.zeros((1, cp), jnp.float32)
    p["hd_w"] = pad_taps(winit(ks[3], (KTAPS, cneck, chead), KTAPS * cneck),
                         cneck, chead)
    p["hd_b"] = jnp.zeros((1, cp), jnp.float32)
    # fused mask (lanes [0,cp)) + cls (lanes [cp,2cp)) 1x1 conv
    wmc = jnp.zeros((cp, 2 * cp), jnp.float32)
    wmc = wmc.at[:chead, :num_classes].set(winit(ks[4], (chead, num_classes), chead))
    wmc = wmc.at[:chead, cp:cp + num_classes].set(
        winit(ks[5], (chead, num_classes), chead))
    p["mc_w"] = wmc
    p["mc_b"] = jnp.zeros((1, 2 * cp), jnp.float32)
    return p


# --------------------------------------------------------------------------
# Forward pass (== SingleStageInstanceSegmentor.forward)
# --------------------------------------------------------------------------
def forward(params, img_nchw, num_classes):
    n, c, h, w = img_nchw.shape

    # layout glue: NCHW -> (N, H*W, C) channels-in-lanes, zero-pad to CP, bf16
    x0 = jnp.transpose(img_nchw, (0, 2, 3, 1)).reshape(n, h * w, c)
    x0 = jnp.pad(x0, ((0, 0), (0, 0), (0, CP - c))).astype(jnp.bfloat16)

    # conv tap-gather / upsample 0-1 matrices (host constants)
    # TODO(synk): nearest upsample matrix assumes H,W are integer multiples of
    # the feature-map size (true for stride-2^2 on even inputs).
    g1, (h1, w1) = make_tap_gather(h, w, stride=2)
    g2, (h2, w2) = make_tap_gather(h1, w1, stride=2)
    g3, _ = make_tap_gather(h2, w2, stride=1)
    up = make_nearest_upsample(h, w, h2, w2)
    consts = tuple(jnp.asarray(a, jnp.bfloat16) for a in (g1, g2, g3, up))

    bf = lambda a: a.astype(jnp.bfloat16)
    weights = (bf(params["bb1_w"]), params["bb1_b"],
               bf(params["bb2_w"]), params["bb2_b"],
               bf(params["nk_w"]), params["nk_b"],
               bf(params["hd_w"]), params["hd_b"],
               bf(params["mc_w"]), params["mc_b"])

    masks_flat, scores = segmentor_forward_pallas(x0, consts, weights)

    # slice padded channels in NHWC, transpose to NCHW last (output contract)
    masks = masks_flat[:, :, :num_classes].reshape(n, h, w, num_classes)
    masks = jnp.transpose(masks, (0, 3, 1, 2))            # (N, C, H, W)
    scores = scores[:, 0, :num_classes]                   # (N, C)

    # List[Dict[str, Tensor]] — one dict per image
    return [{"masks": masks[i], "scores": scores[i]} for i in range(n)]


# --------------------------------------------------------------------------
if __name__ == "__main__":
    key = jax.random.PRNGKey(0)
    k_img, k_par = jax.random.split(key)

    N, CIN, H, W = 2, 4, 16, 16
    C1, C2, CNECK, CHEAD, NUM_CLASSES = 8, 16, 16, 16, 5

    img = jax.random.normal(k_img, (N, CIN, H, W), jnp.float32)   # NCHW input
    params = make_params(k_par, CIN, C1, C2, CNECK, CHEAD, NUM_CLASSES)

    seg_pred = forward(params, img, NUM_CLASSES)
    seg_pred = jax.tree_util.tree_map(jax.block_until_ready, seg_pred)

    assert len(seg_pred) == N
    assert seg_pred[0]["masks"].shape == (NUM_CLASSES, H, W)
    assert seg_pred[0]["scores"].shape == (NUM_CLASSES,)
    assert bool(jnp.all(jnp.isfinite(seg_pred[0]["masks"])))
    assert bool(jnp.all(jnp.isfinite(seg_pred[0]["scores"])))
    print("KERNEL_OK")
</pallas_src>

<mosaic_0001>
module attributes {stable_mosaic.version = 11 : i64} {
  func.func @_segmentor_kernel(%arg0: i32, %arg1: memref<1x256x128xbf16, #tpu.memory_space<vmem>>, %arg2: memref<9x64x256xbf16, #tpu.memory_space<vmem>>, %arg3: memref<9x128x128xbf16, #tpu.memory_space<vmem>>, %arg4: memref<1x128xf32, #tpu.memory_space<vmem>>, %arg5: memref<9x16x64xbf16, #tpu.memory_space<vmem>>, %arg6: memref<9x128x128xbf16, #tpu.memory_space<vmem>>, %arg7: memref<1x128xf32, #tpu.memory_space<vmem>>, %arg8: memref<128x128xbf16, #tpu.memory_space<vmem>>, %arg9: memref<1x128xf32, #tpu.memory_space<vmem>>, %arg10: memref<9x16x16xbf16, #tpu.memory_space<vmem>>, %arg11: memref<9x128x128xbf16, #tpu.memory_space<vmem>>, %arg12: memref<1x128xf32, #tpu.memory_space<vmem>>, %arg13: memref<128x256xbf16, #tpu.memory_space<vmem>>, %arg14: memref<1x256xf32, #tpu.memory_space<vmem>>, %arg15: memref<256x16xbf16, #tpu.memory_space<vmem>>, %arg16: memref<1x256x128xf32, #tpu.memory_space<vmem>>, %arg17: memref<1x1x128xf32, #tpu.memory_space<vmem>>) attributes {dimension_semantics = [#tpu.dimension_semantics<parallel>], iteration_bounds = array<i64: 2>, scalar_prefetch = 0 : i64, scratch_operands = 0 : i64, tpu.core_type = #tpu.core_type<tc>, window_params = [{transform_indices = @transform_0, window_bounds = array<i64: 1, 256, 128>}, {pipeline_mode = #tpu.pipeline_mode<synchronous>, transform_indices = @transform_1, window_bounds = array<i64: 9, 64, 256>}, {pipeline_mode = #tpu.pipeline_mode<synchronous>, transform_indices = @transform_2, window_bounds = array<i64: 9, 128, 128>}, {pipeline_mode = #tpu.pipeline_mode<synchronous>, transform_indices = @transform_3, window_bounds = array<i64: 1, 128>}, {pipeline_mode = #tpu.pipeline_mode<synchronous>, transform_indices = @transform_4, window_bounds = array<i64: 9, 16, 64>}, {pipeline_mode = #tpu.pipeline_mode<synchronous>, transform_indices = @transform_5, window_bounds = array<i64: 9, 128, 128>}, {pipeline_mode = #tpu.pipeline_mode<synchronous>, transform_indices = @transform_6, window_bounds = array<i64: 1, 128>}, {pipeline_mode = #tpu.pipeline_mode<synchronous>, transform_indices = @transform_7, window_bounds = array<i64: 128, 128>}, {pipeline_mode = #tpu.pipeline_mode<synchronous>, transform_indices = @transform_8, window_bounds = array<i64: 1, 128>}, {pipeline_mode = #tpu.pipeline_mode<synchronous>, transform_indices = @transform_9, window_bounds = array<i64: 9, 16, 16>}, {pipeline_mode = #tpu.pipeline_mode<synchronous>, transform_indices = @transform_10, window_bounds = array<i64: 9, 128, 128>}, {pipeline_mode = #tpu.pipeline_mode<synchronous>, transform_indices = @transform_11, window_bounds = array<i64: 1, 128>}, {pipeline_mode = #tpu.pipeline_mode<synchronous>, transform_indices = @transform_12, window_bounds = array<i64: 128, 256>}, {pipeline_mode = #tpu.pipeline_mode<synchronous>, transform_indices = @transform_13, window_bounds = array<i64: 1, 256>}, {pipeline_mode = #tpu.pipeline_mode<synchronous>, transform_indices = @transform_14, window_bounds = array<i64: 256, 16>}, {transform_indices = @transform_15, window_bounds = array<i64: 1, 256, 128>}, {transform_indices = @transform_16, window_bounds = array<i64: 1, 1, 128>}]} {
    %c0 = arith.constant 0 : index
    %c0_0 = arith.constant 0 : index
    %c0_1 = arith.constant 0 : index
    %0 = vector.load %arg1[%c0, %c0_0, %c0_1] : memref<1x256x128xbf16, #tpu.memory_space<vmem>>, vector<1x256x128xbf16>
    %1 = vector.shape_cast %0 : vector<1x256x128xbf16> to vector<256x128xbf16>
    %cst = arith.constant 0.000000e+00 : f32
    %2 = vector.broadcast %cst : f32 to vector<64x128xf32>
    %c0_2 = arith.constant 0 : index
    %c0_3 = arith.constant 0 : index
    %c0_4 = arith.constant 0 : index
    %3 = vector.load %arg2[%c0_2, %c0_3, %c0_4] : memref<9x64x256xbf16, #tpu.memory_space<vmem>>, vector<1x64x256xbf16>
    %4 = vector.shape_cast %3 : vector<1x64x256xbf16> to vector<64x256xbf16>
    %cst_5 = arith.constant dense<0.000000e+00> : vector<64x128xf32>
    %5 = tpu.matmul %4, %1, %cst_5 {dimension_numbers = #tpu.dot_dimension_numbers<[1], [0], [0], [1], [0, 0, 1, 1], [], []>} : vector<64x256xbf16>, vector<256x128xbf16>, vector<64x128xf32> -> vector<64x128xf32>
    %6 = arith.truncf %5 : vector<64x128xf32> to vector<64x128xbf16>
    %c0_6 = arith.constant 0 : index
    %c0_7 = arith.constant 0 : index
    %c0_8 = arith.constant 0 : index
    %7 = vector.load %arg3[%c0_6, %c0_7, %c0_8] : memref<9x128x128xbf16, #tpu.memory_space<vmem>>, vector<1x128x128xbf16>
    %8 = vector.shape_cast %7 : vector<1x128x128xbf16> to vector<128x128xbf16>
    %cst_9 = arith.constant dense<0.000000e+00> : vector<64x128xf32>
    %9 = tpu.matmul %6, %8, %cst_9 {dimension_numbers = #tpu.dot_dimension_numbers<[1], [0], [0], [1], [0, 0, 1, 1], [], []>} : vector<64x128xbf16>, vector<128x128xbf16>, vector<64x128xf32> -> vector<64x128xf32>
    %10 = arith.addf %2, %9 : vector<64x128xf32>
    %c1 = arith.constant 1 : index
    %c0_10 = arith.constant 0 : index
    %c0_11 = arith.constant 0 : index
    %11 = vector.load %arg2[%c1, %c0_10, %c0_11] : memref<9x64x256xbf16, #tpu.memory_space<vmem>>, vector<1x64x256xbf16>
    %12 = vector.shape_cast %11 : vector<1x64x256xbf16> to vector<64x256xbf16>
    %cst_12 = arith.constant dense<0.000000e+00> : vector<64x128xf32>
    %13 = tpu.matmul %12, %1, %cst_12 {dimension_numbers = #tpu.dot_dimension_numbers<[1], [0], [0], [1], [0, 0, 1, 1], [], []>} : vector<64x256xbf16>, vector<256x128xbf16>, vector<64x128xf32> -> vector<64x128xf32>
    %14 = arith.truncf %13 : vector<64x128xf32> to vector<64x128xbf16>
    %c1_13 = arith.constant 1 : index
    %c0_14 = arith.constant 0 : index
    %c0_15 = arith.constant 0 : index
    %15 = vector.load %arg3[%c1_13, %c0_14, %c0_15] : memref<9x128x128xbf16, #tpu.memory_space<vmem>>, vector<1x128x128xbf16>
    %16 = vector.shape_cast %15 : vector<1x128x128xbf16> to vector<128x128xbf16>
    %cst_16 = arith.constant dense<0.000000e+00> : vector<64x128xf32>
    %17 = tpu.matmul %14, %16, %cst_16 {dimension_numbers = #tpu.dot_dimension_numbers<[1], [0], [0], [1], [0, 0, 1, 1], [], []>} : vector<64x128xbf16>, vector<128x128xbf16>, vector<64x128xf32> -> vector<64x128xf32>
    %18 = arith.addf %10, %17 : vector<64x128xf32>
    %c2 = arith.constant 2 : index
    %c0_17 = arith.constant 0 : index
    %c0_18 = arith.constant 0 : index
    %19 = vector.load %arg2[%c2, %c0_17, %c0_18] : memref<9x64x256xbf16, #tpu.memory_space<vmem>>, vector<1x64x256xbf16>
    %20 = vector.shape_cast %19 : vector<1x64x256xbf16> to vector<64x256xbf16>
    %cst_19 = arith.constant dense<0.000000e+00> : vector<64x128xf32>
    %21 = tpu.matmul %20, %1, %cst_19 {dimension_numbers = #tpu.dot_dimension_numbers<[1], [0], [0], [1], [0, 0, 1, 1], [], []>} : vector<64x256xbf16>, vector<256x128xbf16>, vector<64x128xf32> -> vector<64x128xf32>
    %22 = arith.truncf %21 : vector<64x128xf32> to vector<64x128xbf16>
    %c2_20 = arith.constant 2 : index
    %c0_21 = arith.constant 0 : index
    %c0_22 = arith.constant 0 : index
    %23 = vector.load %arg3[%c2_20, %c0_21, %c0_22] : memref<9x128x128xbf16, #tpu.memory_space<vmem>>, vector<1x128x128xbf16>
    %24 = vector.shape_cast %23 : vector<1x128x128xbf16> to vector<128x128xbf16>
    %cst_23 = arith.constant dense<0.000000e+00> : vector<64x128xf32>
    %25 = tpu.matmul %22, %24, %cst_23 {dimension_numbers = #tpu.dot_dimension_numbers<[1], [0], [0], [1], [0, 0, 1, 1], [], []>} : vector<64x128xbf16>, vector<128x128xbf16>, vector<64x128xf32> -> vector<64x128xf32>
    %26 = arith.addf %18, %25 : vector<64x128xf32>
    %c3 = arith.constant 3 : index
    %c0_24 = arith.constant 0 : index
    %c0_25 = arith.constant 0 : index
    %27 = vector.load %arg2[%c3, %c0_24, %c0_25] : memref<9x64x256xbf16, #tpu.memory_space<vmem>>, vector<1x64x256xbf16>
    %28 = vector.shape_cast %27 : vector<1x64x256xbf16> to vector<64x256xbf16>
    %cst_26 = arith.constant dense<0.000000e+00> : vector<64x128xf32>
    %29 = tpu.matmul %28, %1, %cst_26 {dimension_numbers = #tpu.dot_dimension_numbers<[1], [0], [0], [1], [0, 0, 1, 1], [], []>} : vector<64x256xbf16>, vector<256x128xbf16>, vector<64x128xf32> -> vector<64x128xf32>
    %30 = arith.truncf %29 : vector<64x128xf32> to vector<64x128xbf16>
    %c3_27 = arith.constant 3 : index
    %c0_28 = arith.constant 0 : index
    %c0_29 = arith.constant 0 : index
    %31 = vector.load %arg3[%c3_27, %c0_28, %c0_29] : memref<9x128x128xbf16, #tpu.memory_space<vmem>>, vector<1x128x128xbf16>
    %32 = vector.shape_cast %31 : vector<1x128x128xbf16> to vector<128x128xbf16>
    %cst_30 = arith.constant dense<0.000000e+00> : vector<64x128xf32>
    %33 = tpu.matmul %30, %32, %cst_30 {dimension_numbers = #tpu.dot_dimension_numbers<[1], [0], [0], [1], [0, 0, 1, 1], [], []>} : vector<64x128xbf16>, vector<128x128xbf16>, vector<64x128xf32> -> vector<64x128xf32>
    %34 = arith.addf %26, %33 : vector<64x128xf32>
    %c4 = arith.constant 4 : index
    %c0_31 = arith.constant 0 : index
    %c0_32 = arith.constant 0 : index
    %35 = vector.load %arg2[%c4, %c0_31, %c0_32] : memref<9x64x256xbf16, #tpu.memory_space<vmem>>, vector<1x64x256xbf16>
    %36 = vector.shape_cast %35 : vector<1x64x256xbf16> to vector<64x256xbf16>
    %cst_33 = arith.constant dense<0.000000e+00> : vector<64x128xf32>
    %37 = tpu.matmul %36, %1, %cst_33 {dimension_numbers = #tpu.dot_dimension_numbers<[1], [0], [0], [1], [0, 0, 1, 1], [], []>} : vector<64x256xbf16>, vector<256x128xbf16>, vector<64x128xf32> -> vector<64x128xf32>
    %38 = arith.truncf %37 : vector<64x128xf32> to vector<64x128xbf16>
    %c4_34 = arith.constant 4 : index
    %c0_35 = arith.constant 0 : index
    %c0_36 = arith.constant 0 : index
    %39 = vector.load %arg3[%c4_34, %c0_35, %c0_36] : memref<9x128x128xbf16, #tpu.memory_space<vmem>>, vector<1x128x128xbf16>
    %40 = vector.shape_cast %39 : vector<1x128x128xbf16> to vector<128x128xbf16>
    %cst_37 = arith.constant dense<0.000000e+00> : vector<64x128xf32>
    %41 = tpu.matmul %38, %40, %cst_37 {dimension_numbers = #tpu.dot_dimension_numbers<[1], [0], [0], [1], [0, 0, 1, 1], [], []>} : vector<64x128xbf16>, vector<128x128xbf16>, vector<64x128xf32> -> vector<64x128xf32>
    %42 = arith.addf %34, %41 : vector<64x128xf32>
    %c5 = arith.constant 5 : index
    %c0_38 = arith.constant 0 : index
    %c0_39 = arith.constant 0 : index
    %43 = vector.load %arg2[%c5, %c0_38, %c0_39] : memref<9x64x256xbf16, #tpu.memory_space<vmem>>, vector<1x64x256xbf16>
    %44 = vector.shape_cast %43 : vector<1x64x256xbf16> to vector<64x256xbf16>
    %cst_40 = arith.constant dense<0.000000e+00> : vector<64x128xf32>
    %45 = tpu.matmul %44, %1, %cst_40 {dimension_numbers = #tpu.dot_dimension_numbers<[1], [0], [0], [1], [0, 0, 1, 1], [], []>} : vector<64x256xbf16>, vector<256x128xbf16>, vector<64x128xf32> -> vector<64x128xf32>
    %46 = arith.truncf %45 : vector<64x128xf32> to vector<64x128xbf16>
    %c5_41 = arith.constant 5 : index
    %c0_42 = arith.constant 0 : index
    %c0_43 = arith.constant 0 : index
    %47 = vector.load %arg3[%c5_41, %c0_42, %c0_43] : memref<9x128x128xbf16, #tpu.memory_space<vmem>>, vector<1x128x128xbf16>
    %48 = vector.shape_cast %47 : vector<1x128x128xbf16> to vector<128x128xbf16>
    %cst_44 = arith.constant dense<0.000000e+00> : vector<64x128xf32>
    %49 = tpu.matmul %46, %48, %cst_44 {dimension_numbers = #tpu.dot_dimension_numbers<[1], [0], [0], [1], [0, 0, 1, 1], [], []>} : vector<64x128xbf16>, vector<128x128xbf16>, vector<64x128xf32> -> vector<64x128xf32>
    %50 = arith.addf %42, %49 : vector<64x128xf32>
    %c6 = arith.constant 6 : index
    %c0_45 = arith.constant 0 : index
    %c0_46 = arith.constant 0 : index
    %51 = vector.load %arg2[%c6, %c0_45, %c0_46] : memref<9x64x256xbf16, #tpu.memory_space<vmem>>, vector<1x64x256xbf16>
    %52 = vector.shape_cast %51 : vector<1x64x256xbf16> to vector<64x256xbf16>
    %cst_47 = arith.constant dense<0.000000e+00> : vector<64x128xf32>
    %53 = tpu.matmul %52, %1, %cst_47 {dimension_numbers = #tpu.dot_dimension_numbers<[1], [0], [0], [1], [0, 0, 1, 1], [], []>} : vector<64x256xbf16>, vector<256x128xbf16>, vector<64x128xf32> -> vector<64x128xf32>
    %54 = arith.truncf %53 : vector<64x128xf32> to vector<64x128xbf16>
    %c6_48 = arith.constant 6 : index
    %c0_49 = arith.constant 0 : index
    %c0_50 = arith.constant 0 : index
    %55 = vector.load %arg3[%c6_48, %c0_49, %c0_50] : memref<9x128x128xbf16, #tpu.memory_space<vmem>>, vector<1x128x128xbf16>
    %56 = vector.shape_cast %55 : vector<1x128x128xbf16> to vector<128x128xbf16>
    %cst_51 = arith.constant dense<0.000000e+00> : vector<64x128xf32>
    %57 = tpu.matmul %54, %56, %cst_51 {dimension_numbers = #tpu.dot_dimension_numbers<[1], [0], [0], [1], [0, 0, 1, 1], [], []>} : vector<64x128xbf16>, vector<128x128xbf16>, vector<64x128xf32> -> vector<64x128xf32>
    %58 = arith.addf %50, %57 : vector<64x128xf32>
    %c7 = arith.constant 7 : index
    %c0_52 = arith.constant 0 : index
    %c0_53 = arith.constant 0 : index
    %59 = vector.load %arg2[%c7, %c0_52, %c0_53] : memref<9x64x256xbf16, #tpu.memory_space<vmem>>, vector<1x64x256xbf16>
    %60 = vector.shape_cast %59 : vector<1x64x256xbf16> to vector<64x256xbf16>
    %cst_54 = arith.constant dense<0.000000e+00> : vector<64x128xf32>
    %61 = tpu.matmul %60, %1, %cst_54 {dimension_numbers = #tpu.dot_dimension_numbers<[1], [0], [0], [1], [0, 0, 1, 1], [], []>} : vector<64x256xbf16>, vector<256x128xbf16>, vector<64x128xf32> -> vector<64x128xf32>
    %62 = arith.truncf %61 : vector<64x128xf32> to vector<64x128xbf16>
    %c7_55 = arith.constant 7 : index
    %c0_56 = arith.constant 0 : index
    %c0_57 = arith.constant 0 : index
    %63 = vector.load %arg3[%c7_55, %c0_56, %c0_57] : memref<9x128x128xbf16, #tpu.memory_space<vmem>>, vector<1x128x128xbf16>
    %64 = vector.shape_cast %63 : vector<1x128x128xbf16> to vector<128x128xbf16>
    %cst_58 = arith.constant dense<0.000000e+00> : vector<64x128xf32>
    %65 = tpu.matmul %62, %64, %cst_58 {dimension_numbers = #tpu.dot_dimension_numbers<[1], [0], [0], [1], [0, 0, 1, 1], [], []>} : vector<64x128xbf16>, vector<128x128xbf16>, vector<64x128xf32> -> vector<64x128xf32>
    %66 = arith.addf %58, %65 : vector<64x128xf32>
    %c8 = arith.constant 8 : index
    %c0_59 = arith.constant 0 : index
    %c0_60 = arith.constant 0 : index
    %67 = vector.load %arg2[%c8, %c0_59, %c0_60] : memref<9x64x256xbf16, #tpu.memory_space<vmem>>, vector<1x64x256xbf16>
    %68 = vector.shape_cast %67 : vector<1x64x256xbf16> to vector<64x256xbf16>
    %cst_61 = arith.constant dense<0.000000e+00> : vector<64x128xf32>
    %69 = tpu.matmul %68, %1, %cst_61 {dimension_numbers = #tpu.dot_dimension_numbers<[1], [0], [0], [1], [0, 0, 1, 1], [], []>} : vector<64x256xbf16>, vector<256x128xbf16>, vector<64x128xf32> -> vector<64x128xf32>
    %70 = arith.truncf %69 : vector<64x128xf32> to vector<64x128xbf16>
    %c8_62 = arith.constant 8 : index
    %c0_63 = arith.constant 0 : index
    %c0_64 = arith.constant 0 : index
    %71 = vector.load %arg3[%c8_62, %c0_63, %c0_64] : memref<9x128x128xbf16, #tpu.memory_space<vmem>>, vector<1x128x128xbf16>
    %72 = vector.shape_cast %71 : vector<1x128x128xbf16> to vector<128x128xbf16>
    %cst_65 = arith.constant dense<0.000000e+00> : vector<64x128xf32>
    %73 = tpu.matmul %70, %72, %cst_65 {dimension_numbers = #tpu.dot_dimension_numbers<[1], [0], [0], [1], [0, 0, 1, 1], [], []>} : vector<64x128xbf16>, vector<128x128xbf16>, vector<64x128xf32> -> vector<64x128xf32>
    %74 = arith.addf %66, %73 : vector<64x128xf32>
    %c0_66 = arith.constant 0 : index
    %c0_67 = arith.constant 0 : index
    %75 = vector.load %arg4[%c0_66, %c0_67] : memref<1x128xf32, #tpu.memory_space<vmem>>, vector<1x128xf32>
    %76 = vector.broadcast %75 : vector<1x128xf32> to vector<64x128xf32>
    %77 = arith.addf %74, %76 : vector<64x128xf32>
    %cst_68 = arith.constant 0.000000e+00 : f32
    %78 = vector.broadcast %cst_68 : f32 to vector<64x128xf32>
    %79 = arith.maximumf %77, %78 : vector<64x128xf32>
    %80 = arith.truncf %79 : vector<64x128xf32> to vector<64x128xbf16>
    %cst_69 = arith.constant 0.000000e+00 : f32
    %81 = vector.broadcast %cst_69 : f32 to vector<16x128xf32>
    %c0_70 = arith.constant 0 : index
    %c0_71 = arith.constant 0 : index
    %c0_72 = arith.constant 0 : index
    %82 = vector.load %arg5[%c0_70, %c0_71, %c0_72] : memref<9x16x64xbf16, #tpu.memory_space<vmem>>, vector<1x16x64xbf16>
    %83 = vector.shape_cast %82 : vector<1x16x64xbf16> to vector<16x64xbf16>
    %cst_73 = arith.constant dense<0.000000e+00> : vector<16x128xf32>
    %84 = tpu.matmul %83, %80, %cst_73 {dimension_numbers = #tpu.dot_dimension_numbers<[1], [0], [0], [1], [0, 0, 1, 1], [], []>} : vector<16x64xbf16>, vector<64x128xbf16>, vector<16x128xf32> -> vector<16x128xf32>
    %85 = arith.truncf %84 : vector<16x128xf32> to vector<16x128xbf16>
    %c0_74 = arith.constant 0 : index
    %c0_75 = arith.constant 0 : index
    %c0_76 = arith.constant 0 : index
    %86 = vector.load %arg6[%c0_74, %c0_75, %c0_76] : memref<9x128x128xbf16, #tpu.memory_space<vmem>>, vector<1x128x128xbf16>
    %87 = vector.shape_cast %86 : vector<1x128x128xbf16> to vector<128x128xbf16>
    %cst_77 = arith.constant dense<0.000000e+00> : vector<16x128xf32>
    %88 = tpu.matmul %85, %87, %cst_77 {dimension_numbers = #tpu.dot_dimension_numbers<[1], [0], [0], [1], [0, 0, 1, 1], [], []>} : vector<16x128xbf16>, vector<128x128xbf16>, vector<16x128xf32> -> vector<16x128xf32>
    %89 = arith.addf %81, %88 : vector<16x128xf32>
    %c1_78 = arith.constant 1 : index
    %c0_79 = arith.constant 0 : index
    %c0_80 = arith.constant 0 : index
    %90 = vector.load %arg5[%c1_78, %c0_79, %c0_80] : memref<9x16x64xbf16, #tpu.memory_space<vmem>>, vector<1x16x64xbf16>
    %91 = vector.shape_cast %90 : vector<1x16x64xbf16> to vector<16x64xbf16>
    %cst_81 = arith.constant dense<0.000000e+00> : vector<16x128xf32>
    %92 = tpu.matmul %91, %80, %cst_81 {dimension_numbers = #tpu.dot_dimension_numbers<[1], [0], [0], [1], [0, 0, 1, 1], [], []>} : vector<16x64xbf16>, vector<64x128xbf16>, vector<16x128xf32> -> vector<16x128xf32>
    %93 = arith.truncf %92 : vector<16x128xf32> to vector<16x128xbf16>
    %c1_82 = arith.constant 1 : index
    %c0_83 = arith.constant 0 : index
    %c0_84 = arith.constant 0 : index
    %94 = vector.load %arg6[%c1_82, %c0_83, %c0_84] : memref<9x128x128xbf16, #tpu.memory_space<vmem>>, vector<1x128x128xbf16>
    %95 = vector.shape_cast %94 : vector<1x128x128xbf16> to vector<128x128xbf16>
    %cst_85 = arith.constant dense<0.000000e+00> : vector<16x128xf32>
    %96 = tpu.matmul %93, %95, %cst_85 {dimension_numbers = #tpu.dot_dimension_numbers<[1], [0], [0], [1], [0, 0, 1, 1], [], []>} : vector<16x128xbf16>, vector<128x128xbf16>, vector<16x128xf32> -> vector<16x128xf32>
    %97 = arith.addf %89, %96 : vector<16x128xf32>
    %c2_86 = arith.constant 2 : index
    %c0_87 = arith.constant 0 : index
    %c0_88 = arith.constant 0 : index
    %98 = vector.load %arg5[%c2_86, %c0_87, %c0_88] : memref<9x16x64xbf16, #tpu.memory_space<vmem>>, vector<1x16x64xbf16>
    %99 = vector.shape_cast %98 : vector<1x16x64xbf16> to vector<16x64xbf16>
    %cst_89 = arith.constant dense<0.000000e+00> : vector<16x128xf32>
    %100 = tpu.matmul %99, %80, %cst_89 {dimension_numbers = #tpu.dot_dimension_numbers<[1], [0], [0], [1], [0, 0, 1, 1], [], []>} : vector<16x64xbf16>, vector<64x128xbf16>, vector<16x128xf32> -> vector<16x128xf32>
    %101 = arith.truncf %100 : vector<16x128xf32> to vector<16x128xbf16>
    %c2_90 = arith.constant 2 : index
    %c0_91 = arith.constant 0 : index
    %c0_92 = arith.constant 0 : index
    %102 = vector.load %arg6[%c2_90, %c0_91, %c0_92] : memref<9x128x128xbf16, #tpu.memory_space<vmem>>, vector<1x128x128xbf16>
    %103 = vector.shape_cast %102 : vector<1x128x128xbf16> to vector<128x128xbf16>
    %cst_93 = arith.constant dense<0.000000e+00> : vector<16x128xf32>
    %104 = tpu.matmul %101, %103, %cst_93 {dimension_numbers = #tpu.dot_dimension_numbers<[1], [0], [0], [1], [0, 0, 1, 1], [], []>} : vector<16x128xbf16>, vector<128x128xbf16>, vector<16x128xf32> -> vector<16x128xf32>
    %105 = arith.addf %97, %104 : vector<16x128xf32>
    %c3_94 = arith.constant 3 : index
    %c0_95 = arith.constant 0 : index
    %c0_96 = arith.constant 0 : index
    %106 = vector.load %arg5[%c3_94, %c0_95, %c0_96] : memref<9x16x64xbf16, #tpu.memory_space<vmem>>, vector<1x16x64xbf16>
    %107 = vector.shape_cast %106 : vector<1x16x64xbf16> to vector<16x64xbf16>
    %cst_97 = arith.constant dense<0.000000e+00> : vector<16x128xf32>
    %108 = tpu.matmul %107, %80, %cst_97 {dimension_numbers = #tpu.dot_dimension_numbers<[1], [0], [0], [1], [0, 0, 1, 1], [], []>} : vector<16x64xbf16>, vector<64x128xbf16>, vector<16x128xf32> -> vector<16x128xf32>
    %109 = arith.truncf %108 : vector<16x128xf32> to vector<16x128xbf16>
    %c3_98 = arith.constant 3 : index
    %c0_99 = arith.constant 0 : index
    %c0_100 = arith.constant 0 : index
    %110 = vector.load %arg6[%c3_98, %c0_99, %c0_100] : memref<9x128x128xbf16, #tpu.memory_space<vmem>>, vector<1x128x128xbf16>
    %111 = vector.shape_cast %110 : vector<1x128x128xbf16> to vector<128x128xbf16>
    %cst_101 = arith.constant dense<0.000000e+00> : vector<16x128xf32>
    %112 = tpu.matmul %109, %111, %cst_101 {dimension_numbers = #tpu.dot_dimension_numbers<[1], [0], [0], [1], [0, 0, 1, 1], [], []>} : vector<16x128xbf16>, vector<128x128xbf16>, vector<16x128xf32> -> vector<16x128xf32>
    %113 = arith.addf %105, %112 : vector<16x128xf32>
    %c4_102 = arith.constant 4 : index
    %c0_103 = arith.constant 0 : index
    %c0_104 = arith.constant 0 : index
    %114 = vector.load %arg5[%c4_102, %c0_103, %c0_104] : memref<9x16x64xbf16, #tpu.memory_space<vmem>>, vector<1x16x64xbf16>
    %115 = vector.shape_cast %114 : vector<1x16x64xbf16> to vector<16x64xbf16>
    %cst_105 = arith.constant dense<0.000000e+00> : vector<16x128xf32>
    %116 = tpu.matmul %115, %80, %cst_105 {dimension_numbers = #tpu.dot_dimension_numbers<[1], [0], [0], [1], [0, 0, 1, 1], [], []>} : vector<16x64xbf16>, vector<64x128xbf16>, vector<16x128xf32> -> vector<16x128xf32>
    %117 = arith.truncf %116 : vector<16x128xf32> to vector<16x128xbf16>
    %c4_106 = arith.constant 4 : index
    %c0_107 = arith.constant 0 : index
    %c0_108 = arith.constant 0 : index
    %118 = vector.load %arg6[%c4_106, %c0_107, %c0_108] : memref<9x128x128xbf16, #tpu.memory_space<vmem>>, vector<1x128x128xbf16>
    %119 = vector.shape_cast %118 : vector<1x128x128xbf16> to vector<128x128xbf16>
    %cst_109 = arith.constant dense<0.000000e+00> : vector<16x128xf32>
    %120 = tpu.matmul %117, %119, %cst_109 {dimension_numbers = #tpu.dot_dimension_numbers<[1], [0], [0], [1], [0, 0, 1, 1], [], []>} : vector<16x128xbf16>, vector<128x128xbf16>, vector<16x128xf32> -> vector<16x128xf32>
    %121 = arith.addf %113, %120 : vector<16x128xf32>
    %c5_110 = arith.constant 5 : index
    %c0_111 = arith.constant 0 : index
    %c0_112 = arith.constant 0 : index
    %122 = vector.load %arg5[%c5_110, %c0_111, %c0_112] : memref<9x16x64xbf16, #tpu.memory_space<vmem>>, vector<1x16x64xbf16>
    %123 = vector.shape_cast %122 : vector<1x16x64xbf16> to vector<16x64xbf16>
    %cst_113 = arith.constant dense<0.000000e+00> : vector<16x128xf32>
    %124 = tpu.matmul %123, %80, %cst_113 {dimension_numbers = #tpu.dot_dimension_numbers<[1], [0], [0], [1], [0, 0, 1, 1], [], []>} : vector<16x64xbf16>, vector<64x128xbf16>, vector<16x128xf32> -> vector<16x128xf32>
    %125 = arith.truncf %124 : vector<16x128xf32> to vector<16x128xbf16>
    %c5_114 = arith.constant 5 : index
    %c0_115 = arith.constant 0 : index
    %c0_116 = arith.constant 0 : index
    %126 = vector.load %arg6[%c5_114, %c0_115, %c0_116] : memref<9x128x128xbf16, #tpu.memory_space<vmem>>, vector<1x128x128xbf16>
    %127 = vector.shape_cast %126 : vector<1x128x128xbf16> to vector<128x128xbf16>
    %cst_117 = arith.constant dense<0.000000e+00> : vector<16x128xf32>
    %128 = tpu.matmul %125, %127, %cst_117 {dimension_numbers = #tpu.dot_dimension_numbers<[1], [0], [0], [1], [0, 0, 1, 1], [], []>} : vector<16x128xbf16>, vector<128x128xbf16>, vector<16x128xf32> -> vector<16x128xf32>
    %129 = arith.addf %121, %128 : vector<16x128xf32>
    %c6_118 = arith.constant 6 : index
    %c0_119 = arith.constant 0 : index
    %c0_120 = arith.constant 0 : index
    %130 = vector.load %arg5[%c6_118, %c0_119, %c0_120] : memref<9x16x64xbf16, #tpu.memory_space<vmem>>, vector<1x16x64xbf16>
    %131 = vector.shape_cast %130 : vector<1x16x64xbf16> to vector<16x64xbf16>
    %cst_121 = arith.constant dense<0.000000e+00> : vector<16x128xf32>
    %132 = tpu.matmul %131, %80, %cst_121 {dimension_numbers = #tpu.dot_dimension_numbers<[1], [0], [0], [1], [0, 0, 1, 1], [], []>} : vector<16x64xbf16>, vector<64x128xbf16>, vector<16x128xf32> -> vector<16x128xf32>
    %133 = arith.truncf %132 : vector<16x128xf32> to vector<16x128xbf16>
    %c6_122 = arith.constant 6 : index
    %c0_123 = arith.constant 0 : index
    %c0_124 = arith.constant 0 : index
    %134 = vector.load %arg6[%c6_122, %c0_123, %c0_124] : memref<9x128x128xbf16, #tpu.memory_space<vmem>>, vector<1x128x128xbf16>
    %135 = vector.shape_cast %134 : vector<1x128x128xbf16> to vector<128x128xbf16>
    %cst_125 = arith.constant dense<0.000000e+00> : vector<16x128xf32>
    %136 = tpu.matmul %133, %135, %cst_125 {dimension_numbers = #tpu.dot_dimension_numbers<[1], [0], [0], [1], [0, 0, 1, 1], [], []>} : vector<16x128xbf16>, vector<128x128xbf16>, vector<16x128xf32> -> vector<16x128xf32>
    %137 = arith.addf %129, %136 : vector<16x128xf32>
    %c7_126 = arith.constant 7 : index
    %c0_127 = arith.constant 0 : index
    %c0_128 = arith.constant 0 : index
    %138 = vector.load %arg5[%c7_126, %c0_127, %c0_128] : memref<9x16x64xbf16, #tpu.memory_space<vmem>>, vector<1x16x64xbf16>
    %139 = vector.shape_cast %138 : vector<1x16x64xbf16> to vector<16x64xbf16>
    %cst_129 = arith.constant dense<0.000000e+00> : vector<16x128xf32>
    %140 = tpu.matmul %139, %80, %cst_129 {dimension_numbers = #tpu.dot_dimension_numbers<[1], [0], [0], [1], [0, 0, 1, 1], [], []>} : vector<16x64xbf16>, vector<64x128xbf16>, vector<16x128xf32> -> vector<16x128xf32>
    %141 = arith.truncf %140 : vector<16x128xf32> to vector<16x128xbf16>
    %c7_130 = arith.constant 7 : index
    %c0_131 = arith.constant 0 : index
    %c0_132 = arith.constant 0 : index
    %142 = vector.load %arg6[%c7_130, %c0_131, %c0_132] : memref<9x128x128xbf16, #tpu.memory_space<vmem>>, vector<1x128x128xbf16>
    %143 = vector.shape_cast %142 : vector<1x128x128xbf16> to vector<128x128xbf16>
    %cst_133 = arith.constant dense<0.000000e+00> : vector<16x128xf32>
    %144 = tpu.matmul %141, %143, %cst_133 {dimension_numbers = #tpu.dot_dimension_numbers<[1], [0], [0], [1], [0, 0, 1, 1], [], []>} : vector<16x128xbf16>, vector<128x128xbf16>, vector<16x128xf32> -> vector<16x128xf32>
    %145 = arith.addf %137, %144 : vector<16x128xf32>
    %c8_134 = arith.constant 8 : index
    %c0_135 = arith.constant 0 : index
    %c0_136 = arith.constant 0 : index
    %146 = vector.load %arg5[%c8_134, %c0_135, %c0_136] : memref<9x16x64xbf16, #tpu.memory_space<vmem>>, vector<1x16x64xbf16>
    %147 = vector.shape_cast %146 : vector<1x16x64xbf16> to vector<16x64xbf16>
    %cst_137 = arith.constant dense<0.000000e+00> : vector<16x128xf32>
    %148 = tpu.matmul %147, %80, %cst_137 {dimension_numbers = #tpu.dot_dimension_numbers<[1], [0], [0], [1], [0, 0, 1, 1], [], []>} : vector<16x64xbf16>, vector<64x128xbf16>, vector<16x128xf32> -> vector<16x128xf32>
    %149 = arith.truncf %148 : vector<16x128xf32> to vector<16x128xbf16>
    %c8_138 = arith.constant 8 : index
    %c0_139 = arith.constant 0 : index
    %c0_140 = arith.constant 0 : index
    %150 = vector.load %arg6[%c8_138, %c0_139, %c0_140] : memref<9x128x128xbf16, #tpu.memory_space<vmem>>, vector<1x128x128xbf16>
    %151 = vector.shape_cast %150 : vector<1x128x128xbf16> to vector<128x128xbf16>
    %cst_141 = arith.constant dense<0.000000e+00> : vector<16x128xf32>
    %152 = tpu.matmul %149, %151, %cst_141 {dimension_numbers = #tpu.dot_dimension_numbers<[1], [0], [0], [1], [0, 0, 1, 1], [], []>} : vector<16x128xbf16>, vector<128x128xbf16>, vector<16x128xf32> -> vector<16x128xf32>
    %153 = arith.addf %145, %152 : vector<16x128xf32>
    %c0_142 = arith.constant 0 : index
    %c0_143 = arith.constant 0 : index
    %154 = vector.load %arg7[%c0_142, %c0_143] : memref<1x128xf32, #tpu.memory_space<vmem>>, vector<1x128xf32>
    %155 = vector.broadcast %154 : vector<1x128xf32> to vector<16x128xf32>
    %156 = arith.addf %153, %155 : vector<16x128xf32>
    %cst_144 = arith.constant 0.000000e+00 : f32
    %157 = vector.broadcast %cst_144 : f32 to vector<16x128xf32>
    %158 = arith.maximumf %156, %157 : vector<16x128xf32>
    %159 = arith.truncf %158 : vector<16x128xf32> to vector<16x128xbf16>
    %c0_145 = arith.constant 0 : index
    %c0_146 = arith.constant 0 : index
    %160 = vector.load %arg8[%c0_145, %c0_146] : memref<128x128xbf16, #tpu.memory_space<vmem>>, vector<128x128xbf16>
    %cst_147 = arith.constant dense<0.000000e+00> : vector<16x128xf32>
    %161 = tpu.matmul %159, %160, %cst_147 {dimension_numbers = #tpu.dot_dimension_numbers<[1], [0], [0], [1], [0, 0, 1, 1], [], []>} : vector<16x128xbf16>, vector<128x128xbf16>, vector<16x128xf32> -> vector<16x128xf32>
    %c0_148 = arith.constant 0 : index
    %c0_149 = arith.constant 0 : index
    %162 = vector.load %arg9[%c0_148, %c0_149] : memref<1x128xf32, #tpu.memory_space<vmem>>, vector<1x128xf32>
    %163 = vector.broadcast %162 : vector<1x128xf32> to vector<16x128xf32>
    %164 = arith.addf %161, %163 : vector<16x128xf32>
    %165 = arith.truncf %164 : vector<16x128xf32> to vector<16x128xbf16>
    %cst_150 = arith.constant 0.000000e+00 : f32
    %166 = vector.broadcast %cst_150 : f32 to vector<16x128xf32>
    %c0_151 = arith.constant 0 : index
    %c0_152 = arith.constant 0 : index
    %c0_153 = arith.constant 0 : index
    %167 = vector.load %arg10[%c0_151, %c0_152, %c0_153] : memref<9x16x16xbf16, #tpu.memory_space<vmem>>, vector<1x16x16xbf16>
    %168 = vector.shape_cast %167 : vector<1x16x16xbf16> to vector<16x16xbf16>
    %cst_154 = arith.constant dense<0.000000e+00> : vector<16x128xf32>
    %169 = tpu.matmul %168, %165, %cst_154 {dimension_numbers = #tpu.dot_dimension_numbers<[1], [0], [0], [1], [0, 0, 1, 1], [], []>} : vector<16x16xbf16>, vector<16x128xbf16>, vector<16x128xf32> -> vector<16x128xf32>
    %170 = arith.truncf %169 : vector<16x128xf32> to vector<16x128xbf16>
    %c0_155 = arith.constant 0 : index
    %c0_156 = arith.constant 0 : index
    %c0_157 = arith.constant 0 : index
    %171 = vector.load %arg11[%c0_155, %c0_156, %c0_157] : memref<9x128x128xbf16, #tpu.memory_space<vmem>>, vector<1x128x128xbf16>
    %172 = vector.shape_cast %171 : vector<1x128x128xbf16> to vector<128x128xbf16>
    %cst_158 = arith.constant dense<0.000000e+00> : vector<16x128xf32>
    %173 = tpu.matmul %170, %172, %cst_158 {dimension_numbers = #tpu.dot_dimension_numbers<[1], [0], [0], [1], [0, 0, 1, 1], [], []>} : vector<16x128xbf16>, vector<128x128xbf16>, vector<16x128xf32> -> vector<16x128xf32>
    %174 = arith.addf %166, %173 : vector<16x128xf32>
    %c1_159 = arith.constant 1 : index
    %c0_160 = arith.constant 0 : index
    %c0_161 = arith.constant 0 : index
    %175 = vector.load %arg10[%c1_159, %c0_160, %c0_161] : memref<9x16x16xbf16, #tpu.memory_space<vmem>>, vector<1x16x16xbf16>
    %176 = vector.shape_cast %175 : vector<1x16x16xbf16> to vector<16x16xbf16>
    %cst_162 = arith.constant dense<0.000000e+00> : vector<16x128xf32>
    %177 = tpu.matmul %176, %165, %cst_162 {dimension_numbers = #tpu.dot_dimension_numbers<[1], [0], [0], [1], [0, 0, 1, 1], [], []>} : vector<16x16xbf16>, vector<16x128xbf16>, vector<16x128xf32> -> vector<16x128xf32>
    %178 = arith.truncf %177 : vector<16x128xf32> to vector<16x128xbf16>
    %c1_163 = arith.constant 1 : index
    %c0_164 = arith.constant 0 : index
    %c0_165 = arith.constant 0 : index
    %179 = vector.load %arg11[%c1_163, %c0_164, %c0_165] : memref<9x128x128xbf16, #tpu.memory_space<vmem>>, vector<1x128x128xbf16>
    %180 = vector.shape_cast %179 : vector<1x128x128xbf16> to vector<128x128xbf16>
    %cst_166 = arith.constant dense<0.000000e+00> : vector<16x128xf32>
    %181 = tpu.matmul %178, %180, %cst_166 {dimension_numbers = #tpu.dot_dimension_numbers<[1], [0], [0], [1], [0, 0, 1, 1], [], []>} : vector<16x128xbf16>, vector<128x128xbf16>, vector<16x128xf32> -> vector<16x128xf32>
    %182 = arith.addf %174, %181 : vector<16x128xf32>
    %c2_167 = arith.constant 2 : index
    %c0_168 = arith.constant 0 : index
    %c0_169 = arith.constant 0 : index
    %183 = vector.load %arg10[%c2_167, %c0_168, %c0_169] : memref<9x16x16xbf16, #tpu.memory_space<vmem>>, vector<1x16x16xbf16>
    %184 = vector.shape_cast %183 : vector<1x16x16xbf16> to vector<16x16xbf16>
    %cst_170 = arith.constant dense<0.000000e+00> : vector<16x128xf32>
    %185 = tpu.matmul %184, %165, %cst_170 {dimension_numbers = #tpu.dot_dimension_numbers<[1], [0], [0], [1], [0, 0, 1, 1], [], []>} : vector<16x16xbf16>, vector<16x128xbf16>, vector<16x128xf32> -> vector<16x128xf32>
    %186 = arith.truncf %185 : vector<16x128xf32> to vector<16x128xbf16>
    %c2_171 = arith.constant 2 : index
    %c0_172 = arith.constant 0 : index
    %c0_173 = arith.constant 0 : index
    %187 = vector.load %arg11[%c2_171, %c0_172, %c0_173] : memref<9x128x128xbf16, #tpu.memory_space<vmem>>, vector<1x128x128xbf16>
    %188 = vector.shape_cast %187 : vector<1x128x128xbf16> to vector<128x128xbf16>
    %cst_174 = arith.constant dense<0.000000e+00> : vector<16x128xf32>
    %189 = tpu.matmul %186, %188, %cst_174 {dimension_numbers = #tpu.dot_dimension_numbers<[1], [0], [0], [1], [0, 0, 1, 1], [], []>} : vector<16x128xbf16>, vector<128x128xbf16>, vector<16x128xf32> -> vector<16x128xf32>
    %190 = arith.addf %182, %189 : vector<16x128xf32>
    %c3_175 = arith.constant 3 : index
    %c0_176 = arith.constant 0 : index
    %c0_177 = arith.constant 0 : index
    %191 = vector.load %arg10[%c3_175, %c0_176, %c0_177] : memref<9x16x16xbf16, #tpu.memory_space<vmem>>, vector<1x16x16xbf16>
    %192 = vector.shape_cast %191 : vector<1x16x16xbf16> to vector<16x16xbf16>
    %cst_178 = arith.constant dense<0.000000e+00> : vector<16x128xf32>
    %193 = tpu.matmul %192, %165, %cst_178 {dimension_numbers = #tpu.dot_dimension_numbers<[1], [0], [0], [1], [0, 0, 1, 1], [], []>} : vector<16x16xbf16>, vector<16x128xbf16>, vector<16x128xf32> -> vector<16x128xf32>
    %194 = arith.truncf %193 : vector<16x128xf32> to vector<16x128xbf16>
    %c3_179 = arith.constant 3 : index
    %c0_180 = arith.constant 0 : index
    %c0_181 = arith.constant 0 : index
    %195 = vector.load %arg11[%c3_179, %c0_180, %c0_181] : memref<9x128x128xbf16, #tpu.memory_space<vmem>>, vector<1x128x128xbf16>
    %196 = vector.shape_cast %195 : vector<1x128x128xbf16> to vector<128x128xbf16>
    %cst_182 = arith.constant dense<0.000000e+00> : vector<16x128xf32>
    %197 = tpu.matmul %194, %196, %cst_182 {dimension_numbers = #tpu.dot_dimension_numbers<[1], [0], [0], [1], [0, 0, 1, 1], [], []>} : vector<16x128xbf16>, vector<128x128xbf16>, vector<16x128xf32> -> vector<16x128xf32>
    %198 = arith.addf %190, %197 : vector<16x128xf32>
    %c4_183 = arith.constant 4 : index
    %c0_184 = arith.constant 0 : index
    %c0_185 = arith.constant 0 : index
    %199 = vector.load %arg10[%c4_183, %c0_184, %c0_185] : memref<9x16x16xbf16, #tpu.memory_space<vmem>>, vector<1x16x16xbf16>
    %200 = vector.shape_cast %199 : vector<1x16x16xbf16> to vector<16x16xbf16>
    %cst_186 = arith.constant dense<0.000000e+00> : vector<16x128xf32>
    %201 = tpu.matmul %200, %165, %cst_186 {dimension_numbers = #tpu.dot_dimension_numbers<[1], [0], [0], [1], [0, 0, 1, 1], [], []>} : vector<16x16xbf16>, vector<16x128xbf16>, vector<16x128xf32> -> vector<16x128xf32>
    %202 = arith.truncf %201 : vector<16x128xf32> to vector<16x128xbf16>
    %c4_187 = arith.constant 4 : index
    %c0_188 = arith.constant 0 : index
    %c0_189 = arith.constant 0 : index
    %203 = vector.load %arg11[%c4_187, %c0_188, %c0_189] : memref<9x128x128xbf16, #tpu.memory_space<vmem>>, vector<1x128x128xbf16>
    %204 = vector.shape_cast %203 : vector<1x128x128xbf16> to vector<128x128xbf16>
    %cst_190 = arith.constant dense<0.000000e+00> : vector<16x128xf32>
    %205 = tpu.matmul %202, %204, %cst_190 {dimension_numbers = #tpu.dot_dimension_numbers<[1], [0], [0], [1], [0, 0, 1, 1], [], []>} : vector<16x128xbf16>, vector<128x128xbf16>, vector<16x128xf32> -> vector<16x128xf32>
    %206 = arith.addf %198, %205 : vector<16x128xf32>
    %c5_191 = arith.constant 5 : index
    %c0_192 = arith.constant 0 : index
    %c0_193 = arith.constant 0 : index
    %207 = vector.load %arg10[%c5_191, %c0_192, %c0_193] : memref<9x16x16xbf16, #tpu.memory_space<vmem>>, vector<1x16x16xbf16>
    %208 = vector.shape_cast %207 : vector<1x16x16xbf16> to vector<16x16xbf16>
    %cst_194 = arith.constant dense<0.000000e+00> : vector<16x128xf32>
    %209 = tpu.matmul %208, %165, %cst_194 {dimension_numbers = #tpu.dot_dimension_numbers<[1], [0], [0], [1], [0, 0, 1, 1], [], []>} : vector<16x16xbf16>, vector<16x128xbf16>, vector<16x128xf32> -> vector<16x128xf32>
    %210 = arith.truncf %209 : vector<16x128xf32> to vector<16x128xbf16>
    %c5_195 = arith.constant 5 : index
    %c0_196 = arith.constant 0 : index
    %c0_197 = arith.constant 0 : index
    %211 = vector.load %arg11[%c5_195, %c0_196, %c0_197] : memref<9x128x128xbf16, #tpu.memory_space<vmem>>, vector<1x128x128xbf16>
    %212 = vector.shape_cast %211 : vector<1x128x128xbf16> to vector<128x128xbf16>
    %cst_198 = arith.constant dense<0.000000e+00> : vector<16x128xf32>
    %213 = tpu.matmul %210, %212, %cst_198 {dimension_numbers = #tpu.dot_dimension_numbers<[1], [0], [0], [1], [0, 0, 1, 1], [], []>} : vector<16x128xbf16>, vector<128x128xbf16>, vector<16x128xf32> -> vector<16x128xf32>
    %214 = arith.addf %206, %213 : vector<16x128xf32>
    %c6_199 = arith.constant 6 : index
    %c0_200 = arith.constant 0 : index
    %c0_201 = arith.constant 0 : index
    %215 = vector.load %arg10[%c6_199, %c0_200, %c0_201] : memref<9x16x16xbf16, #tpu.memory_space<vmem>>, vector<1x16x16xbf16>
    %216 = vector.shape_cast %215 : vector<1x16x16xbf16> to vector<16x16xbf16>
    %cst_202 = arith.constant dense<0.000000e+00> : vector<16x128xf32>
    %217 = tpu.matmul %216, %165, %cst_202 {dimension_numbers = #tpu.dot_dimension_numbers<[1], [0], [0], [1], [0, 0, 1, 1], [], []>} : vector<16x16xbf16>, vector<16x128xbf16>, vector<16x128xf32> -> vector<16x128xf32>
    %218 = arith.truncf %217 : vector<16x128xf32> to vector<16x128xbf16>
    %c6_203 = arith.constant 6 : index
    %c0_204 = arith.constant 0 : index
    %c0_205 = arith.constant 0 : index
    %219 = vector.load %arg11[%c6_203, %c0_204, %c0_205] : memref<9x128x128xbf16, #tpu.memory_space<vmem>>, vector<1x128x128xbf16>
    %220 = vector.shape_cast %219 : vector<1x128x128xbf16> to vector<128x128xbf16>
    %cst_206 = arith.constant dense<0.000000e+00> : vector<16x128xf32>
    %221 = tpu.matmul %218, %220, %cst_206 {dimension_numbers = #tpu.dot_dimension_numbers<[1], [0], [0], [1], [0, 0, 1, 1], [], []>} : vector<16x128xbf16>, vector<128x128xbf16>, vector<16x128xf32> -> vector<16x128xf32>
    %222 = arith.addf %214, %221 : vector<16x128xf32>
    %c7_207 = arith.constant 7 : index
    %c0_208 = arith.constant 0 : index
    %c0_209 = arith.constant 0 : index
    %223 = vector.load %arg10[%c7_207, %c0_208, %c0_209] : memref<9x16x16xbf16, #tpu.memory_space<vmem>>, vector<1x16x16xbf16>
    %224 = vector.shape_cast %223 : vector<1x16x16xbf16> to vector<16x16xbf16>
    %cst_210 = arith.constant dense<0.000000e+00> : vector<16x128xf32>
    %225 = tpu.matmul %224, %165, %cst_210 {dimension_numbers = #tpu.dot_dimension_numbers<[1], [0], [0], [1], [0, 0, 1, 1], [], []>} : vector<16x16xbf16>, vector<16x128xbf16>, vector<16x128xf32> -> vector<16x128xf32>
    %226 = arith.truncf %225 : vector<16x128xf32> to vector<16x128xbf16>
    %c7_211 = arith.constant 7 : index
    %c0_212 = arith.constant 0 : index
    %c0_213 = arith.constant 0 : index
    %227 = vector.load %arg11[%c7_211, %c0_212, %c0_213] : memref<9x128x128xbf16, #tpu.memory_space<vmem>>, vector<1x128x128xbf16>
    %228 = vector.shape_cast %227 : vector<1x128x128xbf16> to vector<128x128xbf16>
    %cst_214 = arith.constant dense<0.000000e+00> : vector<16x128xf32>
    %229 = tpu.matmul %226, %228, %cst_214 {dimension_numbers = #tpu.dot_dimension_numbers<[1], [0], [0], [1], [0, 0, 1, 1], [], []>} : vector<16x128xbf16>, vector<128x128xbf16>, vector<16x128xf32> -> vector<16x128xf32>
    %230 = arith.addf %222, %229 : vector<16x128xf32>
    %c8_215 = arith.constant 8 : index
    %c0_216 = arith.constant 0 : index
    %c0_217 = arith.constant 0 : index
    %231 = vector.load %arg10[%c8_215, %c0_216, %c0_217] : memref<9x16x16xbf16, #tpu.memory_space<vmem>>, vector<1x16x16xbf16>
    %232 = vector.shape_cast %231 : vector<1x16x16xbf16> to vector<16x16xbf16>
    %cst_218 = arith.constant dense<0.000000e+00> : vector<16x128xf32>
    %233 = tpu.matmul %232, %165, %cst_218 {dimension_numbers = #tpu.dot_dimension_numbers<[1], [0], [0], [1], [0, 0, 1, 1], [], []>} : vector<16x16xbf16>, vector<16x128xbf16>, vector<16x128xf32> -> vector<16x128xf32>
    %234 = arith.truncf %233 : vector<16x128xf32> to vector<16x128xbf16>
    %c8_219 = arith.constant 8 : index
    %c0_220 = arith.constant 0 : index
    %c0_221 = arith.constant 0 : index
    %235 = vector.load %arg11[%c8_219, %c0_220, %c0_221] : memref<9x128x128xbf16, #tpu.memory_space<vmem>>, vector<1x128x128xbf16>
    %236 = vector.shape_cast %235 : vector<1x128x128xbf16> to vector<128x128xbf16>
    %cst_222 = arith.constant dense<0.000000e+00> : vector<16x128xf32>
    %237 = tpu.matmul %234, %236, %cst_222 {dimension_numbers = #tpu.dot_dimension_numbers<[1], [0], [0], [1], [0, 0, 1, 1], [], []>} : vector<16x128xbf16>, vector<128x128xbf16>, vector<16x128xf32> -> vector<16x128xf32>
    %238 = arith.addf %230, %237 : vector<16x128xf32>
    %c0_223 = arith.constant 0 : index
    %c0_224 = arith.constant 0 : index
    %239 = vector.load %arg12[%c0_223, %c0_224] : memref<1x128xf32, #tpu.memory_space<vmem>>, vector<1x128xf32>
    %240 = vector.broadcast %239 : vector<1x128xf32> to vector<16x128xf32>
    %241 = arith.addf %238, %240 : vector<16x128xf32>
    %cst_225 = arith.constant 0.000000e+00 : f32
    %242 = vector.broadcast %cst_225 : f32 to vector<16x128xf32>
    %243 = arith.maximumf %241, %242 : vector<16x128xf32>
    %244 = arith.truncf %243 : vector<16x128xf32> to vector<16x128xbf16>
    %c0_226 = arith.constant 0 : index
    %c0_227 = arith.constant 0 : index
    %245 = vector.load %arg13[%c0_226, %c0_227] : memref<128x256xbf16, #tpu.memory_space<vmem>>, vector<128x256xbf16>
    %cst_228 = arith.constant dense<0.000000e+00> : vector<16x256xf32>
    %246 = tpu.matmul %244, %245, %cst_228 {dimension_numbers = #tpu.dot_dimension_numbers<[1], [0], [0], [1], [0, 0, 1, 1], [], []>} : vector<16x128xbf16>, vector<128x256xbf16>, vector<16x256xf32> -> vector<16x256xf32>
    %c0_229 = arith.constant 0 : index
    %c0_230 = arith.constant 0 : index
    %247 = vector.load %arg14[%c0_229, %c0_230] : memref<1x256xf32, #tpu.memory_space<vmem>>, vector<1x256xf32>
    %248 = vector.broadcast %247 : vector<1x256xf32> to vector<16x256xf32>
    %249 = arith.addf %246, %248 : vector<16x256xf32>
    %250 = vector.extract_strided_slice %249 {offsets = [0, 0], sizes = [16, 128], strides = [1, 1]} : vector<16x256xf32> to vector<16x128xf32>
    %251 = arith.truncf %250 : vector<16x128xf32> to vector<16x128xbf16>
    %252 = vector.extract_strided_slice %249 {offsets = [0, 128], sizes = [16, 128], strides = [1, 1]} : vector<16x256xf32> to vector<16x128xf32>
    %c0_231 = arith.constant 0 : index
    %c0_232 = arith.constant 0 : index
    %253 = vector.load %arg15[%c0_231, %c0_232] : memref<256x16xbf16, #tpu.memory_space<vmem>>, vector<256x16xbf16>
    %cst_233 = arith.constant dense<0.000000e+00> : vector<256x128xf32>
    %254 = tpu.matmul %253, %251, %cst_233 {dimension_numbers = #tpu.dot_dimension_numbers<[1], [0], [0], [1], [0, 0, 1, 1], [], []>} : vector<256x16xbf16>, vector<16x128xbf16>, vector<256x128xf32> -> vector<256x128xf32>
    %255 = arith.negf %254 : vector<256x128xf32>
    %256 = math.exp %255 : vector<256x128xf32>
    %cst_234 = arith.constant 1.000000e+00 : f32
    %257 = vector.broadcast %cst_234 : f32 to vector<256x128xf32>
    %258 = arith.addf %257, %256 : vector<256x128xf32>
    %259 = arith.divf %257, %258 : vector<256x128xf32>
    %c0_235 = arith.constant 0 : index
    %c0_236 = arith.constant 0 : index
    %c0_237 = arith.constant 0 : index
    %260 = vector.load %arg16[%c0_235, %c0_236, %c0_237] : memref<1x256x128xf32, #tpu.memory_space<vmem>>, vector<1x256x128xf32>
    %261 = vector.shape_cast %260 : vector<1x256x128xf32> to vector<256x128xf32>
    %262 = vector.shape_cast %259 : vector<256x128xf32> to vector<1x256x128xf32>
    tpu.vector_store %arg16[%c0_235, %c0_236, %c0_237], %262 {strides = array<i32>} : memref<1x256x128xf32, #tpu.memory_space<vmem>>, vector<1x256x128xf32>,
    %cst_238 = arith.constant dense<0.000000e+00> : vector<128xf32>
    %263 = vector.multi_reduction <add>, %252, %cst_238 [0] : vector<16x128xf32> to vector<128xf32>
    %264 = vector.shape_cast %263 : vector<128xf32> to vector<1x128xf32>
    %cst_239 = arith.constant 1.600000e+01 : f32
    %265 = vector.broadcast %cst_239 : f32 to vector<1x128xf32>
    %266 = arith.divf %264, %265 : vector<1x128xf32>
    %267 = arith.negf %266 : vector<1x128xf32>
    %268 = math.exp %267 : vector<1x128xf32>
    %cst_240 = arith.constant 1.000000e+00 : f32
    %269 = vector.broadcast %cst_240 : f32 to vector<1x128xf32>
    %270 = arith.addf %269, %268 : vector<1x128xf32>
    %271 = arith.divf %269, %270 : vector<1x128xf32>
    %c0_241 = arith.constant 0 : index
    %c0_242 = arith.constant 0 : index
    %c0_243 = arith.constant 0 : index
    %272 = vector.load %arg17[%c0_241, %c0_242, %c0_243] : memref<1x1x128xf32, #tpu.memory_space<vmem>>, vector<1x1x128xf32>
    %273 = vector.shape_cast %272 : vector<1x1x128xf32> to vector<1x128xf32>
    %274 = vector.shape_cast %271 : vector<1x128xf32> to vector<1x1x128xf32>
    tpu.vector_store %arg17[%c0_241, %c0_242, %c0_243], %274 {strides = array<i32>} : memref<1x1x128xf32, #tpu.memory_space<vmem>>, vector<1x1x128xf32>,
    return
  }
  func.func @transform_0(%arg0: i32) -> (i32, i32, i32) {
    %c0_i32 = arith.constant 0 : i32
    %c0_i32_0 = arith.constant 0 : i32
    %c0_i32_1 = arith.constant 0 : i32
    return %arg0, %c0_i32, %c0_i32_0 : i32, i32, i32
  }
  func.func @transform_1(%arg0: i32) -> (i32, i32, i32) {
    %c0_i32 = arith.constant 0 : i32
    %c0_i32_0 = arith.constant 0 : i32
    %c0_i32_1 = arith.constant 0 : i32
    %c0_i32_2 = arith.constant 0 : i32
    return %c0_i32, %c0_i32_0, %c0_i32_1 : i32, i32, i32
  }
  func.func @transform_2(%arg0: i32) -> (i32, i32, i32) {
    %c0_i32 = arith.constant 0 : i32
    %c0_i32_0 = arith.constant 0 : i32
    %c0_i32_1 = arith.constant 0 : i32
    %c0_i32_2 = arith.constant 0 : i32
    return %c0_i32, %c0_i32_0, %c0_i32_1 : i32, i32, i32
  }
  func.func @transform_3(%arg0: i32) -> (i32, i32) {
    %c0_i32 = arith.constant 0 : i32
    %c0_i32_0 = arith.constant 0 : i32
    %c0_i32_1 = arith.constant 0 : i32
    return %c0_i32, %c0_i32_0 : i32, i32
  }
  func.func @transform_4(%arg0: i32) -> (i32, i32, i32) {
    %c0_i32 = arith.constant 0 : i32
    %c0_i32_0 = arith.constant 0 : i32
    %c0_i32_1 = arith.constant 0 : i32
    %c0_i32_2 = arith.constant 0 : i32
    return %c0_i32, %c0_i32_0, %c0_i32_1 : i32, i32, i32
  }
  func.func @transform_5(%arg0: i32) -> (i32, i32, i32) {
    %c0_i32 = arith.constant 0 : i32
    %c0_i32_0 = arith.constant 0 : i32
    %c0_i32_1 = arith.constant 0 : i32
    %c0_i32_2 = arith.constant 0 : i32
    return %c0_i32, %c0_i32_0, %c0_i32_1 : i32, i32, i32
  }
  func.func @transform_6(%arg0: i32) -> (i32, i32) {
    %c0_i32 = arith.constant 0 : i32
    %c0_i32_0 = arith.constant 0 : i32
    %c0_i32_1 = arith.constant 0 : i32
    return %c0_i32, %c0_i32_0 : i32, i32
  }
  func.func @transform_7(%arg0: i32) -> (i32, i32) {
    %c0_i32 = arith.constant 0 : i32
    %c0_i32_0 = arith.constant 0 : i32
    %c0_i32_1 = arith.constant 0 : i32
    return %c0_i32, %c0_i32_0 : i32, i32
  }
  func.func @transform_8(%arg0: i32) -> (i32, i32) {
    %c0_i32 = arith.constant 0 : i32
    %c0_i32_0 = arith.constant 0 : i32
    %c0_i32_1 = arith.constant 0 : i32
    return %c0_i32, %c0_i32_0 : i32, i32
  }
  func.func @transform_9(%arg0: i32) -> (i32, i32, i32) {
    %c0_i32 = arith.constant 0 : i32
    %c0_i32_0 = arith.constant 0 : i32
    %c0_i32_1 = arith.constant 0 : i32
    %c0_i32_2 = arith.constant 0 : i32
    return %c0_i32, %c0_i32_0, %c0_i32_1 : i32, i32, i32
  }
  func.func @transform_10(%arg0: i32) -> (i32, i32, i32) {
    %c0_i32 = arith.constant 0 : i32
    %c0_i32_0 = arith.constant 0 : i32
    %c0_i32_1 = arith.constant 0 : i32
    %c0_i32_2 = arith.constant 0 : i32
    return %c0_i32, %c0_i32_0, %c0_i32_1 : i32, i32, i32
  }
  func.func @transform_11(%arg0: i32) -> (i32, i32) {
    %c0_i32 = arith.constant 0 : i32
    %c0_i32_0 = arith.constant 0 : i32
    %c0_i32_1 = arith.constant 0 : i32
    return %c0_i32, %c0_i32_0 : i32, i32
  }
  func.func @transform_12(%arg0: i32) -> (i32, i32) {
    %c0_i32 = arith.constant 0 : i32
    %c0_i32_0 = arith.constant 0 : i32
    %c0_i32_1 = arith.constant 0 : i32
    return %c0_i32, %c0_i32_0 : i32, i32
  }
  func.func @transform_13(%arg0: i32) -> (i32, i32) {
    %c0_i32 = arith.constant 0 : i32
    %c0_i32_0 = arith.constant 0 : i32
    %c0_i32_1 = arith.constant 0 : i32
    return %c0_i32, %c0_i32_0 : i32, i32
  }
  func.func @transform_14(%arg0: i32) -> (i32, i32) {
    %c0_i32 = arith.constant 0 : i32
    %c0_i32_0 = arith.constant 0 : i32
    %c0_i32_1 = arith.constant 0 : i32
    return %c0_i32, %c0_i32_0 : i32, i32
  }
  func.func @transform_15(%arg0: i32) -> (i32, i32, i32) {
    %c0_i32 = arith.constant 0 : i32
    %c0_i32_0 = arith.constant 0 : i32
    %c0_i32_1 = arith.constant 0 : i32
    return %arg0, %c0_i32, %c0_i32_0 : i32, i32, i32
  }
  func.func @transform_16(%arg0: i32) -> (i32, i32, i32) {
    %c0_i32 = arith.constant 0 : i32
    %c0_i32_0 = arith.constant 0 : i32
    %c0_i32_1 = arith.constant 0 : i32
    return %arg0, %c0_i32, %c0_i32_0 : i32, i32, i32
  }
}

</mosaic_0001>

<bundles_post_ra>
// kernel: tpu_custom_call.1
= control target key start
LH: loop header
LB: loop body
LE: loop exit
PB: predicated region body
PF: predicated region fallthrough
CT: control target
= control target key end

     0   :  { %s11208_s0 = inlined_call_operand.hbm [shape: bf16[2,256,128], index: 0, kind: input, shape index: {}]   ;;  %s11209_s1 = inlined_call_operand.hbm [shape: bf16[9,64,256], index: 1, kind: input, shape index: {}]   ;;  %s11210_s2 = inlined_call_operand.hbm [shape: bf16[9,128,128], index: 2, kind: input, shape index: {}]   ;;  %s11211_s3 = inlined_call_operand.vmem [shape: f32[1,128], index: 3, kind: input, shape index: {}]   ;;  %s11212_s4 = inlined_call_operand.hbm [shape: bf16[9,16,64], index: 4, kind: input, shape index: {}]   ;;  %s11213_s5 = inlined_call_operand.hbm [shape: bf16[9,128,128], index: 5, kind: input, shape index: {}]   ;;  %s11214_s6 = inlined_call_operand.vmem [shape: f32[1,128], index: 6, kind: input, shape index: {}]   ;;  %s11215_s7 = inlined_call_operand.hbm [shape: bf16[128,128], index: 7, kind: input, shape index: {}]   ;;  %s11216_s8 = inlined_call_operand.vmem [shape: f32[1,128], index: 8, kind: input, shape index: {}]   ;;  %s11217_s9 = inlined_call_operand.hbm [shape: bf16[9,16,16], index: 9, kind: input, shape index: {}]   ;;  %s11218_s10 = inlined_call_operand.hbm [shape: bf16[9,128,128], index: 10, kind: input, shape index: {}]   ;;  %s11219_s11 = inlined_call_operand.vmem [shape: f32[1,128], index: 11, kind: input, shape index: {}]   ;;  %s11220_s12 = inlined_call_operand.vmem [shape: bf16[128,256], index: 12, kind: input, shape index: {}]   ;;  %s11221_s13 = inlined_call_operand.vmem [shape: f32[1,256], index: 13, kind: input, shape index: {}]   ;;  %s11222_s14 = inlined_call_operand.vmem [shape: bf16[256,16], index: 14, kind: input, shape index: {}]   ;;  %s11223_s15 = inlined_call_operand.hbm [shape: f32[2,256,128], index: 15, kind: output, shape index: {0}]   ;;  %s11224_s16 = inlined_call_operand.hbm [shape: f32[2,1,128], index: 16, kind: output, shape index: {1}]  }
   0x1   :  { %11234 = sst [smem:[#allocation26_spill]] %s11208_s0 }
   0x2   :  { %11235 = sst [smem:[#allocation27_spill]] %s11209_s1 }
   0x3   :  { %11236 = sst [smem:[#allocation28_spill]] %s11210_s2 }
   0x4   :  { %11237 = sst [smem:[#allocation29_spill]] %s11212_s4 }
   0x5   :  { %11238 = sst [smem:[#allocation30_spill]] %s11213_s5 }
   0x6   :  { %11239 = sst [smem:[#allocation31_spill]] %s11215_s7 }
   0x7   :  { %11240 = sst [smem:[#allocation32_spill]] %s11217_s9 }
   0x8   :  { %11241 = sst [smem:[#allocation33_spill]] %s11218_s10 }
   0x9   :  { %11242 = sst [smem:[#allocation34_spill]] %s11221_s13 }
   0xa   :  { %11243 = sst [smem:[#allocation35_spill]] %s11223_s15 }
   0xb   :  { %11244 = sst [smem:[#allocation36_spill]] %s11224_s16 }
   0xc   :  { %22 = vsyncpa [#allocation3], 0 }
   0xd   :  { %24 = vsyncpa [#allocation3 + $0x1], 0 }
   0xe   :  { %25 = vsyncpa [#allocation6], 0 }
   0xf   :  { %26 = vsyncpa [#allocation9], 0 }
  0x10   :  { %27 = vsyncpa [#allocation12], 0 }
  0x11   :  { %28 = vsyncpa [#allocation15], 0 }
  0x12   :  { %29 = vsyncpa [#allocation4], 0 }
  0x13   :  { %31 = vsyncpa [#allocation4 + $0x1], 0 }
  0x14   :  { %32 = vsyncpa [#allocation18], 0 }
  0x15   :  { %34 = vsyncpa [#allocation18 + $0x1], 0  ;;  %s10117_s21 = smov 0   ;;  %s10119_s22 = smov 0  }
  0x16   :  { %s10121_s23 = smov 0   ;;  %s10123_s24 = smov 0  }
  0x17 LB: > { %s10013_s25 = smov [#allocation5]   ;;  %s10138_s27 = sadd.s32 4294967295, %s10011_s24   ;;  %s10011_s24 = sphi %s10123_s24, %s11281_s24   ;;  %s10007_s23 = sphi %s10121_s23, %s11280_s23   ;;  %s10003_s22 = sphi %s10119_s22, %s11279_s22   ;;  %s9999_s21 = sphi %s10117_s21, %s11278_s21  }
  0x18   : > { %s429_s26 = sshll.u32 %s10013_s25, 4  ;;  %p7032_p0 = scmp.ge.s32.totalorder %s10011_s24, 1  ;;  %s430_s26 = int_to_ptr.vmem [resolvable:$true] %s429_s26 }
  0x19   : > { %p11230_p1 = scmp.eq.s32.totalorder %s10138_s27, 0  ;;  %p417_p2 = scmp.lt.s32.totalorder %s10011_s24, 3 }
  0x1a   : > { %s10014_s30 = smov [#allocation8]   ;;  %s10015_s17 = smov [#allocation11]  }
  0x1b   : > { %p10143_p3 = pnand %p7032_p0, %p417_p2  ;;  %s458_s0 = sshll.u32 %s10014_s30, 4  ;;  %s10156_s0 = int_to_ptr.vmem [resolvable:$true] %s458_s0 }
  0x1c   : > { %s10158_s18 = sshll.u32 %s10015_s17, 4  ;;  %s9702_s20 = scalar_lea.vmem %s430_s26, 9216  ;;  %s488_s18 = int_to_ptr.vmem [resolvable:$true] %s10158_s18 }
  0x1d   : > { %s11245_s28 = scalar_select %p10143_p3, 1, 0 }
  0x1e   : > { %p9040_p5 = pneg %p10143_p3  ;;  %p9703_p8 = scmp.ne.s32.totalorder %s430_s26, %s9702_s20 }
  0x1f   : > { %p9710_p11 = scmp.lt.s32.totalorder %s430_s26, %s430_s26  ;;  %p9711_p12 = scmp.lt.s32.totalorder %s9702_s20, %s9702_s20 }
  0x20   : > { %p10152_p6 = pnand %p9040_p5, %p11230_p1 }
  0x21   : > { %p9712_p13 = por %p9711_p12, %p9710_p11 }
  0x22   : > { %p10162_p7 = pneg %p10152_p6 }
  0x24   : > { %p9705_p9 = pnand %p9703_p8, %p10162_p7 }
  0x26   : > { %p9706_p10 = pneg %p9705_p9 }
  0x28   : > { %p9713_p0 = pnand %p9712_p13, %p9706_p10 }
  0x2a   : > { %9716 = shalt.err (!%p9713_p0)
}
  0x2b   : > { %s10016_s25 = smov 128   ;;  %s10017_s30 = smov 8  }
  0x2c   : > { %s11248_s1 = sld [smem:[#allocation27_spill]]  ;;  %s9728_s16 = scalar_lea.vmem %s10156_s0, 1152 }
  0x2d   : > { %p9729_p2 = scmp.ne.s32.totalorder %s10156_s0, %s9728_s16  ;;  %p9736_p9 = scmp.lt.s32.totalorder %s10156_s0, %s10156_s0 }
  0x2e   : > { %p9737_p10 = scmp.lt.s32.totalorder %s9728_s16, %s9728_s16 }
  0x2f   : > { %p9731_p5 = pnand %p9729_p2, %p10162_p7 }
  0x30   : > { %p9738_p11 = por %p9737_p10, %p9736_p9 }
  0x31   : > { %p9732_p8 = pneg %p9731_p5 }
  0x32   : > { %9043 = dma.hbm_to_vmem [thread:$0]  (!%p10152_p6), %s11248_s1, 9216, %s430_s26, [#allocation6], %s10016_s25, %s10016_s25, %s10017_s30  }
  0x33   : > { %p9739_p12 = pnand %p9738_p11, %p9732_p8 }
  0x35   : > { %9742 = shalt.err (!%p9739_p12)
}
  0x36   : > { %s11228_s20 = smov 64   ;;  %s11229_s13 = smov 4  }
  0x37   : > { %s11249_s4 = sld [smem:[#allocation29_spill]]  ;;  %s9754_s25 = scalar_lea.vmem %s488_s18, 1024 }
  0x38   : > { %p9755_p13 = scmp.ne.s32.totalorder %s488_s18, %s9754_s25  ;;  %p9762_p5 = scmp.lt.s32.totalorder %s488_s18, %s488_s18 }
  0x39   : > { %p9763_p8 = scmp.lt.s32.totalorder %s9754_s25, %s9754_s25 }
  0x3a   : > { %p9757_p0 = pnand %p9755_p13, %p10162_p7 }
  0x3b   : > { %p9764_p9 = por %p9763_p8, %p9762_p5 }
  0x3c   : > { %p9758_p2 = pneg %p9757_p0 }
  0x3d   : > { %9049 = dma.hbm_to_vmem [thread:$0]  (!%p10152_p6), %s11249_s4, 1152, %s10156_s0, [#allocation9], %s11228_s20, %s11228_s20, %s11229_s13  }
  0x3e   : > { %p9765_p10 = pnand %p9764_p9, %p9758_p2 }
  0x40   : > { %9768 = shalt.err (!%p9765_p10)
}
  0x41   : > { %s11250_s7 = sld [smem:[#allocation31_spill]]  ;;  %s10020_s0 = smov [#allocation7]  }
  0x42   : > { %s442_s17 = sshll.u32 %s10020_s0, 4  ;;  %s10021_s15 = smov [#allocation10]   ;;  %s443_s17 = int_to_ptr.vmem [resolvable:$true] %s442_s17 }
  0x43   : > { %s471_s26 = sshll.u32 %s10021_s15, 4  ;;  %s9780_s1 = scalar_lea.vmem %s443_s17, 9216  ;;  %s472_s26 = int_to_ptr.vmem [resolvable:$true] %s471_s26 }
  0x44   : > { %p9781_p11 = scmp.ne.s32.totalorder %s443_s17, %s9780_s1  ;;  %p9788_p0 = scmp.lt.s32.totalorder %s443_s17, %s443_s17 }
  0x45   : > { %p9789_p2 = scmp.lt.s32.totalorder %s9780_s1, %s9780_s1 }
  0x46   : > { %p9783_p12 = pnand %p9781_p11, %p10162_p7 }
  0x47   : > { %9055 = dma.hbm_to_vmem [thread:$0]  (!%p10152_p6), %s11250_s7, 1024, %s488_s18, [#allocation12], %s11228_s20, %s11228_s20, %s11229_s13  }
  0x48   : > { %p9784_p13 = pneg %p9783_p12  ;;  %p9790_p5 = por %p9789_p2, %p9788_p0 }
  0x4a   : > { %p9791_p8 = pnand %p9790_p5, %p9784_p13 }
  0x4c   : > { %9794 = shalt.err (!%p9791_p8)
}
  0x4d   : > { %s11251_s2 = sld [smem:[#allocation28_spill]]  ;;  %s9806_s16 = scalar_lea.vmem %s472_s26, 9216 }
  0x4e   : > { %p9807_p9 = scmp.ne.s32.totalorder %s472_s26, %s9806_s16  ;;  %p9814_p12 = scmp.lt.s32.totalorder %s472_s26, %s472_s26 }
  0x4f   : > { %p9815_p0 = scmp.lt.s32.totalorder %s9806_s16, %s9806_s16 }
  0x50   : > { %p9809_p10 = pnand %p9807_p9, %p10162_p7 }
  0x51   : > { %p9816_p13 = por %p9815_p0, %p9814_p12 }
  0x52   : > { %p9810_p11 = pneg %p9809_p10 }
  0x53   : > { %9046 = dma.hbm_to_vmem [thread:$0]  (!%p10152_p6), %s11251_s2, 9216, %s443_s17, [#allocation6], %s11228_s20, %s11228_s20, %s11229_s13  }
  0x54   : > { %p9817_p2 = pnand %p9816_p13, %p9810_p11 }
  0x56   : > { %9820 = shalt.err (!%p9817_p2)
}
  0x57   : > { %s11252_s5 = sld [smem:[#allocation30_spill]]  ;;  %s10022_s0 = smov [#allocation13]  }
  0x58   : > { %s503_s17 = sshll.u32 %s10022_s0, 4  ;;  %s10023_s15 = smov [#allocation14]   ;;  %s504_s17 = int_to_ptr.vmem [resolvable:$true] %s503_s17 }
  0x59   : > { %s516_s18 = sshll.u32 %s10023_s15, 4  ;;  %s9832_s25 = scalar_lea.vmem %s504_s17, 1152  ;;  %s517_s18 = int_to_ptr.vmem [resolvable:$true] %s516_s18 }
  0x5a   : > { %p9833_p5 = scmp.ne.s32.totalorder %s504_s17, %s9832_s25  ;;  %p9840_p10 = scmp.lt.s32.totalorder %s504_s17, %s504_s17 }
  0x5b   : > { %p9841_p11 = scmp.lt.s32.totalorder %s9832_s25, %s9832_s25 }
  0x5c   : > { %p9835_p8 = pnand %p9833_p5, %p10162_p7 }
  0x5d   : > { %9052 = dma.hbm_to_vmem [thread:$0]  (!%p10152_p6), %s11252_s5, 9216, %s472_s26, [#allocation9], %s11228_s20, %s11228_s20, %s11229_s13  }
  0x5e   : > { %p9836_p9 = pneg %p9835_p8  ;;  %p9842_p12 = por %p9841_p11, %p9840_p10 }
  0x60   : > { %p9843_p0 = pnand %p9842_p12, %p9836_p9 }
  0x62   : > { %9846 = shalt.err (!%p9843_p0)
}
  0x63   : > { %s11253_s9 = sld [smem:[#allocation32_spill]]  ;;  %s9858_s1 = scalar_lea.vmem %s517_s18, 9216 }
  0x64   : > { %p9859_p13 = scmp.ne.s32.totalorder %s517_s18, %s9858_s1  ;;  %p9866_p8 = scmp.lt.s32.totalorder %s517_s18, %s517_s18 }
  0x65   : > { %p9867_p10 = scmp.lt.s32.totalorder %s9858_s1, %s9858_s1 }
  0x66   : > { %p9861_p2 = pnand %p9859_p13, %p10162_p7 }
  0x67   : > { %p9868_p9 = por %p9867_p10, %p9866_p8 }
  0x68   : > { %p9862_p5 = pneg %p9861_p2 }
  0x69   : > { %9058 = dma.hbm_to_vmem [thread:$0]  (!%p10152_p6), %s11253_s9, 1152, %s504_s17, [#allocation12], %s11228_s20, %s11228_s20, %s11229_s13  }
  0x6a   : > { %p9869_p11 = pnand %p9868_p9, %p9862_p5 }
  0x6c   : > { %9872 = shalt.err (!%p9869_p11)
}
  0x6d   : > { %s11254_s10 = sld [smem:[#allocation33_spill]]  ;;  %s7031_s29 = sadd.s32 4294967294, %s10011_s24  }
  0x6e   : > { %s10241_s19 = sadd.s32 1, %s10011_s24   ;;  %s47_s17 = sadd.s32 1, %s10007_s23 }
  0x6f   : > { %s44_s15 = ssub.s32 %s10011_s24, %s10241_s19  ;;  %p54_p7 = scmp.ne.s32.totalorder %s10007_s23, %s10003_s22 }
  0x70   : > { %p45_p12 = scmp.eq.s32.totalorder %s44_s15, 0  ;;  %p55_p0 = scmp.eq.s32.totalorder %s10011_s24, 0 }
  0x71   : > { %p60_p13 = scmp.ne.s32.totalorder %s10003_s22, %s9999_s21  ;;  %p378_p2 = scmp.eq.s32.totalorder %s10138_s27, 1 }
  0x72   : > { %s10253_s25 = scalar_select %p45_p12, %s10007_s23, %s47_s17  }
  0x73   : > { %9061 = dma.hbm_to_vmem [thread:$0]  (!%p10152_p6), %s11254_s10, 9216, %s517_s18, [#allocation15], %s11228_s20, %s11228_s20, %s11229_s13  }
  0x74   : > { %p56_p5 = por %p55_p0, %p54_p7  ;;  %p10257_p8 = por %p11230_p1, %p60_p13 }
  0x75   : > { %p10261_p6 = por %p378_p2, %p54_p7  ;;  %p384_p10 = scmp.eq.s32.totalorder %s7031_s29, 1 }
  0x76   : > { %s11255_s26 = scalar_select %p10257_p8, 1, 0 }
  0x77   : > { %s11256_s18 = scalar_select %p10261_p6, 1, 0 }
  0x78   : > { %p9080_p9 = scmp.lt.s32.totalorder %s10011_s24, 2  ;;  %s542_s16 = sand.u32 1, %s10007_s23  }
  0x79   : > { %p10267_p11 = por %p384_p10, %p60_p13  ;;  %s7041_s30 = sshll.u32 %s542_s16, 7 }
  0x7a   : > { %s7493_s0 = sshll.u32 %s10011_s24, 11  ;;  %s11258_s20 = sld [smem:[#allocation26_spill]] }
  0x7b   : > { %s11257_s1 = scalar_select %p10267_p11, 1, 0 }
  0x7c   : > { %s546_s2 = scalar_lea.vmem [#allocation2], %s7041_s30  ;;  %p10277_p7 = pnand %p9080_p9, %p56_p5 }
  0x7d   : > { %s553_s4 = sshll.u32 %s546_s2, 4  ;;  %s10283_s5 = scalar_lea.sflag [#allocation3], %s542_s16  ;;  %s10281_s4 = int_to_ptr.vmem [resolvable:$true] %s553_s4 }
  0x7e   : > { %p9875_p0 = pneg %p10277_p7 }
  0x80   : > { %s10275_s13 = scalar_lea.hbm %s11258_s20, %s7493_s0  ;;  %s9878_s30 = scalar_lea.hbm %s11258_s20, 4096 }
  0x81   : > { %s9873_s7 = scalar_lea.hbm %s10275_s13, 2048  ;;  %p9879_p5 = scmp.lt.s32.totalorder %s10275_s13, %s11258_s20 }
  0x82   : > { %p9874_p12 = scmp.ne.s32.totalorder %s10275_s13, %s9873_s7  ;;  %p9880_p10 = scmp.lt.s32.totalorder %s9878_s30, %s9873_s7 }
  0x84   : > { %p9876_p13 = pnand %p9875_p0, %p9874_p12  ;;  %p9881_p9 = por %p9880_p10, %p9879_p5 }
  0x86   : > { %p9877_p2 = pneg %p9876_p13 }
  0x88   : > { %p9882_p4 = pnand %p9881_p9, %p9877_p2 }
  0x8a   : > { %9885 = shalt.err (!%p9882_p4)
}
  0x8b   : > { %s9886_s16 = scalar_lea.vmem %s10281_s4, 2048  ;;  %s10024_s9 = smov [#allocation2]  }
  0x8c   : > { %p9887_p1 = scmp.ne.s32.totalorder %s10281_s4, %s9886_s16  ;;  %s9891_s10 = sshll.u32 %s10024_s9, 4  ;;  %s9892_s10 = int_to_ptr.vmem [resolvable:$false] %s9891_s10 }
  0x8d   : > { %s9893_s0 = scalar_lea.vmem %s9892_s10, 4096  ;;  %p9894_p13 = scmp.lt.s32.totalorder %s10281_s4, %s9892_s10 }
  0x8e   : > { %p9889_p11 = pnand %p9887_p1, %p9875_p0  ;;  %p9895_p6 = scmp.lt.s32.totalorder %s9893_s0, %s9886_s16 }
  0x90   : > { %p9890_p12 = pneg %p9889_p11  ;;  %p9896_p8 = por %p9895_p6, %p9894_p13 }
  0x92   : > { %p9897_p3 = pnand %p9896_p8, %p9890_p12 }
  0x94   : > { %9900 = shalt.err (!%p9897_p3)
}
  0x95   : > { %s11260_s7 = smov 4   ;;  %s11261_s17 = smov 64  }
  0x96   : > { %9065 = dma.hbm_to_vmem [thread:$0]  (!%p10277_p7), %s10275_s13, 2048, %s10281_s4, %s10283_s5, %s11261_s17, %s11261_s17, %s11260_s7  }
  0x97   : > { %p11262_p1 = scmp.ne.s32.totalorder %s11245_s28, 0 }
  0x98   : > { %s10310_s9 = sand.u32 (!%p11262_p1), 1, %s10003_s22   ;;  %p11263_p3 = scmp.ne.s32.totalorder (!%p11262_p1), %s11255_s26, 0 }
  0x99   : > { %565 = sbr.rel (%p11262_p1) target bundleno = 4294 (0x10c6), region = 80  ;;  %s7045_s10 = sshll.u32 (!%p11262_p1), %s10310_s9, 7 }
  0x9a   : > { %s568_s30 = scalar_lea.sflag (!%p11262_p1), [#allocation3], %s10310_s9  ;;  %s10314_s2 = scalar_lea.vmem (!%p11262_p1), [#allocation2], %s7045_s10 }
  0x9e   : > { %9970 = dma.done.wait (%p11263_p3), %s568_s30, 2048  }
  0x9f   : > { %9972 = vsyncadd (%p11263_p3), %s568_s30, 4294965248  ;;  %p11264_p4 = scmp.eq.s32.totalorder %s10138_s27, 0 }
  0xa1   : > { %9974 = dma.done.wait (%p11264_p4), [#allocation6], 18432   ;;  %p11265_p8 = pmov %p11264_p4 }
  0xa2   : > { %p11266_p6 = pmov %p11264_p4 }
  0xa3   : > { %9976 = vsyncadd (%p11265_p8), [#allocation6], 4294948864 }
  0xa4   : > { %9978 = dma.done.wait (%p11266_p6), [#allocation9], 10368   ;;  %p11267_p11 = pmov %p11264_p4 }
  0xa5   : > { %p11268_p7 = pmov %p11264_p4 }
  0xa6   : > { %9980 = vsyncadd (%p11267_p11), [#allocation9], 4294956928 }
  0xa7   : > { %9982 = dma.done.wait (%p11268_p7), [#allocation12], 2176   ;;  %p11269_p0 = pmov %p11264_p4 }
  0xa9   : > { %9984 = vsyncadd (%p11269_p0), [#allocation12], 4294965120  ;;  %p11270_p2 = pmov %p11269_p0 }
  0xaa   : > { %p11271_p5 = pmov %p11269_p0 }
  0xab   : > { %9986 = dma.done.wait (%p11270_p2), [#allocation15], 9216  }
  0xac   : > { %9988 = vsyncadd (%p11271_p5), [#allocation15], 4294958080  ;;  %v10337_v0 = vld [vmem:[%s10314_s2 + $0x78] sm:$0xff]   ;;  %v9139_v2 = vld [vmem:[%s10314_s2 + $0x70] sm:$0xff]   ;;  %vm10026_vm0 = vmmov 0   ;;  %vm3101_vm1 = vcmask 523264  }
  0xad   : > { %v9138_v1 = vld [vmem:[%s10314_s2 + $0x38] sm:$0xff]   ;;  %7495 = vmatprep.subr.bf16.mxu0 %v10337_v0  ;;  %7535 = vmatprep.subr.bf16.mxu1 %v10337_v0  ;;  %v9140_v3 = vld [vmem:[%s10314_s2 + $0x30] sm:$0xff]   ;;  %v9141_v4 = vld [vmem:[%s10314_s2 + $0x68] sm:$0xff]   ;;  %vm4670_vm2 = vcmask 130048   ;;  %s11272_s13 = sld [smem:[#allocation34_spill]]  ;;  %s651_s5 = scalar_lea.vmem [#allocation17], %s10310_s9 }
  0xae   : > { %7496 = vmatpush3.bf16.msra.mxu0 %v9138_v1  ;;  %7536 = vmatpush3.bf16.msra.mxu1 %v9138_v1  ;;  %v9142_v5 = vld [vmem:[%s10314_s2 + $0x28] sm:$0xff]   ;;  %v9143_v6 = vld [vmem:[%s10314_s2 + $0x60] sm:$0xff]   ;;  %v9145_v8 = vld [vmem:[%s10314_s2 + $0x58] sm:$0xff]   ;;  %s7490_s15 = sshll.u32 %s10138_s27, 4  ;;  %s6866_s16 = sshll.u32 %s651_s5, 4  ;;  %s6867_s16 = int_to_ptr.vmem [resolvable:$true] %s6866_s16 }
  0xaf   : > { %7497 = vmatprep.subr.bf16.mxu0 %v9139_v2  ;;  %7537 = vmatprep.subr.bf16.mxu1 %v9139_v2  ;;  %v9144_v7 = vld [vmem:[%s10314_s2 + $0x20] sm:$0xff]   ;;  %v9146_v9 = vld [vmem:[%s10314_s2 + $0x18] sm:$0xff]   ;;  %v9147_v10 = vld [vmem:[%s10314_s2 + $0x50] sm:$0xff]   ;;  %s11273_s17 = sld [smem:[#allocation36_spill]]  ;;  %s6838_s30 = scalar_lea.sflag [#allocation18], %s10310_s9 }
  0xb0   : > { %v9155_v11 = vld [vmem:[#allocation5 + $0x4] ss:$8 sps:$4 sm:$0xff]   ;;  %v9148_v13 = vld [vmem:[%s10314_s2 + $0x10] sm:$0xff]   ;;  %v9177_v18 = vld [vmem:[#allocation7 + $0x78] sm:$0xff]   ;;  %p11274_p9 = scmp.ne.s32.totalorder %s11256_s18, 0  ;;  %s10028_s4 = smov [#allocation17]  }
  0xb1   : > { %v9158_v12 = vld [vmem:[#allocation5 + $0x44] ss:$8 sps:$4 sm:$0xff]   ;;  %861 = vmatprep.mubr.bf16.mxu0 %v9155_v11  ;;  %v9153_v19 = vld [vmem:[#allocation5] ss:$8 sps:$4 sm:$0xff]   ;;  %v9178_v20 = vld [vmem:[#allocation7 + $0x38] sm:$0xff]  }
  0xb2   : > { %7498 = vmatpush3.bf16.msra.mxu0 %v9140_v3  ;;  %7538 = vmatpush3.bf16.msra.mxu1 %v9140_v3  ;;  %v9149_v14 = vld [vmem:[%s10314_s2 + $0x48] sm:$0xff]   ;;  %v9151_v16 = vld [vmem:[%s10314_s2 + $0x40] sm:$0xff]   ;;  %v9159_v22 = vld [vmem:[#allocation5 + $0x14] ss:$8 sps:$4 sm:$0xff]  }
  0xb3   : > { %7499 = vmatprep.subr.bf16.mxu0 %v9141_v4  ;;  %7539 = vmatprep.subr.bf16.mxu1 %v9141_v4  ;;  %v9150_v15 = vld [vmem:[%s10314_s2 + $0x8] sm:$0xff]   ;;  %v9152_v17 = vld [vmem:[%s10314_s2] sm:$0xff]   ;;  %v9161_v23 = vld [vmem:[#allocation5 + $0x54] ss:$8 sps:$4 sm:$0xff]  }
  0xb4   : > { %995 = vmatprep.mubr.bf16.mxu1 %v9158_v12  ;;  %v9156_v21 = vld [vmem:[#allocation5 + $0x40] ss:$8 sps:$4 sm:$0xff]   ;;  %v9179_v24 = vld [vmem:[#allocation7 + $0x70] sm:$0xff]   ;;  %v9165_v30 = vld [vmem:[#allocation5 + $0x24] ss:$8 sps:$4 sm:$0xff]  }
  0xb5   : > { %v9180_v25 = vld [vmem:[#allocation7 + $0x30] sm:$0xff]   ;;  %v9181_v26 = vld [vmem:[#allocation7 + $0x68] sm:$0xff]   ;;  %v9183_v32 = vld [vmem:[#allocation7 + $0x60] sm:$0xff]   ;;  %s6864_s10 = scalar_lea.hbm %s11273_s17, %s7490_s15 }
  0xb6   : > { %7500 = vmatpush3.bf16.msra.mxu0 %v9142_v5  ;;  %7540 = vmatpush3.bf16.msra.mxu1 %v9142_v5  ;;  %v9182_v27 = vld [vmem:[#allocation7 + $0x28] sm:$0xff]   ;;  %v9163_v28 = vld [vmem:[#allocation5 + $0x10] ss:$8 sps:$4 sm:$0xff]   ;;  %v9184_v33 = vld [vmem:[#allocation7 + $0x20] sm:$0xff]  }
  0xb7   : > { %7501 = vmatprep.subr.bf16.mxu0 %v9143_v6  ;;  %7541 = vmatprep.subr.bf16.mxu1 %v9143_v6  ;;  %v9164_v29 = vld [vmem:[#allocation5 + $0x50] ss:$8 sps:$4 sm:$0xff]   ;;  %v9167_v31 = vld [vmem:[#allocation5 + $0x64] ss:$8 sps:$4 sm:$0xff]   ;;  %v9169_v34 = vld [vmem:[#allocation5 + $0x20] ss:$8 sps:$4 sm:$0xff]  }
  0xb8   : > { %v9170_v35 = vld [vmem:[#allocation5 + $0x60] ss:$8 sps:$4 sm:$0xff]   ;;  %v9171_v36 = vld [vmem:[#allocation5 + $0x34] ss:$8 sps:$4 sm:$0xff]   ;;  %v9175_v38 = vld [vmem:[#allocation5 + $0x30] ss:$8 sps:$4 sm:$0xff]  }
  0xb9   : > { %v9173_v37 = vld [vmem:[#allocation5 + $0x74] ss:$8 sps:$4 sm:$0xff]   ;;  %v9176_v39 = vld [vmem:[#allocation5 + $0x70] ss:$8 sps:$4 sm:$0xff]   ;;  %v9189_v44 = vld [vmem:[#allocation7 + $0x48] sm:$0xff]  }
  0xba   : > { %7502 = vmatpush3.bf16.msra.mxu0 %v9144_v7  ;;  %7542 = vmatpush3.bf16.msra.mxu1 %v9144_v7  ;;  %v9185_v40 = vld [vmem:[#allocation7 + $0x58] sm:$0xff]   ;;  %v9187_v42 = vld [vmem:[#allocation7 + $0x50] sm:$0xff]   ;;  %v9190_v45 = vld [vmem:[#allocation7 + $0x8] sm:$0xff]  }
  0xbb   : > { %7503 = vmatprep.subr.bf16.mxu0 %v9145_v8  ;;  %7543 = vmatprep.subr.bf16.mxu1 %v9145_v8  ;;  %v9186_v41 = vld [vmem:[#allocation7 + $0x18] sm:$0xff]   ;;  %v9188_v43 = vld [vmem:[#allocation7 + $0x10] sm:$0xff]   ;;  %v9191_v46 = vld [vmem:[#allocation7 + $0x40] sm:$0xff]  }
  0xbc   : > { %v9192_v47 = vld [vmem:[#allocation7] sm:$0xff]  }
  0xbe   : > { %7504 = vmatpush3.bf16.msra.mxu0 %v9146_v9  ;;  %7544 = vmatpush3.bf16.msra.mxu1 %v9146_v9 }
  0xbf   : > { %7505 = vmatprep.subr.bf16.mxu0 %v9147_v10  ;;  %7545 = vmatprep.subr.bf16.mxu1 %v9147_v10 }
  0xc2   : > { %7506 = vmatpush3.bf16.msra.mxu0 %v9148_v13  ;;  %7546 = vmatpush3.bf16.msra.mxu1 %v9148_v13 }
  0xc3   : > { %7507 = vmatprep.subr.bf16.mxu0 %v9149_v14  ;;  %7547 = vmatprep.subr.bf16.mxu1 %v9149_v14 }
  0xc6   : > { %7508 = vmatpush3.bf16.msra.mxu0 %v9150_v15  ;;  %7548 = vmatpush3.bf16.msra.mxu1 %v9150_v15 }
  0xc7   : > { %7509 = vmatprep.subr.bf16.mxu0 %v9151_v16  ;;  %7549 = vmatprep.subr.bf16.mxu1 %v9151_v16  ;;  %v10358_v16 = vld [vmem:[%s10314_s2 + $0x38] sm:$0xff]  }
  0xca   : > { %7510 = vmatpush3.bf16.msra.mxu0 %v9152_v17  ;;  %7550 = vmatpush3.bf16.msra.mxu1 %v9152_v17 }
  0xcb   : > { %8214 = vmatprep.subr.bf16.mxu0 %v9177_v18  ;;  %8238 = vmatprep.subr.bf16.mxu1 %v9178_v20 }
  0xcd   : > { %862 = vmatmul.mubr.bf16.vlgmr.msra.gmra.mxu0 %v9153_v19  ;;  %996 = vmatmul.mubr.bf16.vlgmr.msra.gmra.mxu1 %v9156_v21  ;;  %v10362_v21 = vld [vmem:[%s10314_s2 + $0x70] sm:$0xff]  }
  0xce   : > { %869 = vmatprep.mubr.bf16.mxu0 %v9159_v22  ;;  %1003 = vmatprep.mubr.bf16.mxu1 %v9161_v23 }
  0xcf   : > { %8215 = vmatpush3.bf16.msra.mxu0 %v9177_v18  ;;  %8239 = vmatpush3.bf16.msra.mxu1 %v9178_v20 }
  0xd0   : > { %8216 = vmatprep.subr.bf16.mxu0 %v9179_v24  ;;  %8240 = vmatprep.subr.bf16.mxu1 %v9180_v25 }
  0xd3   : > { %8217 = vmatpush3.bf16.msra.mxu0 %v9179_v24  ;;  %8241 = vmatpush3.bf16.msra.mxu1 %v9180_v25 }
  0xd4   : > { %8218 = vmatprep.subr.bf16.mxu0 %v9181_v26  ;;  %8242 = vmatprep.subr.bf16.mxu1 %v9182_v27 }
  0xd5   : > { %870 = vmatmul.mubr.bf16.gmra.mxu0 %v9163_v28  ;;  %1004 = vmatmul.mubr.bf16.gmra.mxu1 %v9164_v29 }
  0xd6   : > { %877 = vmatprep.mubr.bf16.mxu0 %v9165_v30  ;;  %1011 = vmatprep.mubr.bf16.mxu1 %v9167_v31  ;;  %v10370_v31 = vld [vmem:[%s10314_s2 + $0x68] sm:$0xff]  }
  0xd7   : > { %8219 = vmatpush3.bf16.msra.mxu0 %v9181_v26  ;;  %8243 = vmatpush3.bf16.msra.mxu1 %v9182_v27  ;;  %v10366_v26 = vld [vmem:[%s10314_s2 + $0x30] sm:$0xff]  }
  0xd8   : > { %8220 = vmatprep.subr.bf16.mxu0 %v9183_v32  ;;  %8244 = vmatprep.subr.bf16.mxu1 %v9184_v33 }
  0xdb   : > { %8221 = vmatpush3.bf16.msra.mxu0 %v9183_v32  ;;  %8245 = vmatpush3.bf16.msra.mxu1 %v9184_v33 }
  0xdc   : > { %8222 = vmatprep.subr.bf16.mxu0 %v9185_v40  ;;  %8246 = vmatprep.subr.bf16.mxu1 %v9186_v41 }
  0xdd   : > { %878 = vmatmul.mubr.bf16.gmra.mxu0 %v9169_v34  ;;  %1012 = vmatmul.mubr.bf16.gmra.mxu1 %v9170_v35  ;;  %v10374_v34 = vld [vmem:[%s10314_s2 + $0x28] sm:$0xff]  }
  0xde   : > { %885 = vmatprep.mubr.bf16.mxu0 %v9171_v36  ;;  %1019 = vmatprep.mubr.bf16.mxu1 %v9173_v37 }
  0xdf   : > { %8223 = vmatpush3.bf16.msra.mxu0 %v9185_v40  ;;  %8247 = vmatpush3.bf16.msra.mxu1 %v9186_v41 }
  0xe0   : > { %8224 = vmatprep.subr.bf16.mxu0 %v9187_v42  ;;  %8248 = vmatprep.subr.bf16.mxu1 %v9188_v43 }
  0xe3   : > { %8225 = vmatpush3.bf16.msra.mxu0 %v9187_v42  ;;  %8249 = vmatpush3.bf16.msra.mxu1 %v9188_v43 }
  0xe4   : > { %8226 = vmatprep.subr.bf16.mxu0 %v9189_v44  ;;  %8250 = vmatprep.subr.bf16.mxu1 %v9190_v45 }
  0xe5   : > { %886 = vmatmul.mubr.bf16.gmra.mxu0 %v9175_v38  ;;  %1020 = vmatmul.mubr.bf16.gmra.mxu1 %v9176_v39  ;;  %v10378_v39 = vld [vmem:[%s10314_s2 + $0x60] sm:$0xff]  }
  0xe7   : > { %8227 = vmatpush3.bf16.msra.mxu0 %v9189_v44  ;;  %8251 = vmatpush3.bf16.msra.mxu1 %v9190_v45  ;;  %v10382_v44 = vld [vmem:[%s10314_s2 + $0x20] sm:$0xff]  }
  0xe8   : > { %8228 = vmatprep.subr.bf16.mxu0 %v9191_v46  ;;  %8252 = vmatprep.subr.bf16.mxu1 %v9192_v47  ;;  %v9195_v45 = vld [vmem:[#allocation5 + $0x84] ss:$8 sps:$4 sm:$0xff]  }
  0xeb   : > { %8229 = vmatpush3.bf16.msra.mxu0 %v9191_v46  ;;  %8253 = vmatpush3.bf16.msra.mxu1 %v9192_v47 }
  0xec   : > { %7599 = vmatprep.subr.bf16.mxu0 %v10337_v0 }
 0x18d   : > { %v7511_v48 = vpop.f32.mrf.mxu0  ;;  %v7551_v49 = vpop.f32.mrf.mxu1 }
 0x18f   : > { %v7512_v50 = vpop.f32.mrf.mxu0  ;;  %v7552_v51 = vpop.f32.mrf.mxu1 }
 0x190   : > { %v7513_v54 = vadd.f32 %v7512_v50, %v7511_v48  ;;  %v7553_v57 = vadd.f32 %v7552_v51, %v7551_v49  ;;  %v10386_v48 = vld [vmem:[%s10314_s2 + $0x58] sm:$0xff]   ;;  %v10394_v50 = vld [vmem:[%s10314_s2 + $0x50] sm:$0xff]  }
 0x191   : > { %v7514_v52 = vpop.f32.mrf.mxu0  ;;  %v7554_v53 = vpop.f32.mrf.mxu1  ;;  %v10390_v49 = vld [vmem:[%s10314_s2 + $0x18] sm:$0xff]   ;;  %v10398_v51 = vld [vmem:[%s10314_s2 + $0x10] sm:$0xff]  }
 0x193   : > { %v7515_v55 = vpop.f32.mrf.mxu0  ;;  %v7555_v56 = vpop.f32.mrf.mxu1 }
 0x194   : > { %v7516_v58 = vadd.f32 %v7515_v55, %v7514_v52  ;;  %v7556_v59 = vadd.f32 %v7555_v56, %v7554_v53  ;;  %v10402_v52 = vld [vmem:[%s10314_s2 + $0x48] sm:$0xff]   ;;  %v10414_v56 = vld [vmem:[%s10314_s2] sm:$0xff]  }
 0x195   : > { %v7517_v60 = vpop.f32.mrf.mxu0  ;;  %v7557_v61 = vpop.f32.mrf.mxu1  ;;  %v10406_v53 = vld [vmem:[%s10314_s2 + $0x8] sm:$0xff]  }
 0x196   : > { %v894_v62 = vpack.c.bf16 %v7516_v58, %v7513_v54  ;;  %v1028_v63 = vpack.c.bf16 %v7556_v59, %v7553_v57  ;;  %v10410_v54 = vld [vmem:[%s10314_s2 + $0x40] sm:$0xff]   ;;  %v9196_v57 = vld [vmem:[#allocation5 + $0x94] ss:$8 sps:$4 sm:$0xff]   ;;  %v9198_v59 = vld [vmem:[#allocation5 + $0x90] ss:$8 sps:$4 sm:$0xff]  }
 0x197   : > { %v7518_v1 = vpop.f32.mrf.mxu0  ;;  %v7558_v2 = vpop.f32.mrf.mxu1  ;;  %v9193_v55 = vld [vmem:[#allocation5 + $0x80] ss:$8 sps:$4 sm:$0xff]   ;;  %v10418_v58 = vld [vmem:[%s10314_s2 + $0x78] sm:$0xff]   ;;  %s9901_s2 = scalar_lea.vmem %s6867_s16, 16 }
 0x198   : > { %8230 = vmatprep.mubr.bf16.mxu0 %v1028_v63  ;;  %8254 = vmatprep.mubr.bf16.mxu1 %v894_v62  ;;  %v7519_v4 = vadd.f32 %v7518_v1, %v7517_v60  ;;  %v7559_v7 = vadd.f32 %v7558_v2, %v7557_v61  ;;  %v9199_v60 = vld [vmem:[#allocation5 + $0xa4] ss:$8 sps:$4 sm:$0xff]   ;;  %v9201_v61 = vld [vmem:[#allocation5 + $0xa0] ss:$8 sps:$4 sm:$0xff]   ;;  %v9202_v62 = vld [vmem:[#allocation5 + $0xb4] ss:$8 sps:$4 sm:$0xff]   ;;  %p9902_p10 = scmp.ne.s32.totalorder %s6867_s16, %s9901_s2 }
 0x199   : > { %v7520_v0 = vpop.f32.mrf.mxu0  ;;  %v7560_v3 = vpop.f32.mrf.mxu1  ;;  %v9204_v63 = vld [vmem:[#allocation5 + $0xb0] ss:$8 sps:$4 sm:$0xff]   ;;  %v9207_v1 = vld [vmem:[#allocation5 + $0xc4] ss:$8 sps:$4 sm:$0xff]   ;;  %v9205_v2 = vld [vmem:[#allocation5 + $0xc0] ss:$8 sps:$4 sm:$0xff]  }
 0x19a   : > { %p9903_p12 = pnand %p9902_p10, %p11274_p9 }
 0x19b   : > { %v7521_v5 = vpop.f32.mrf.mxu0  ;;  %v7561_v6 = vpop.f32.mrf.mxu1 }
 0x19c   : > { %v7522_v8 = vadd.f32 %v7521_v5, %v7520_v0  ;;  %v7562_v9 = vadd.f32 %v7561_v6, %v7560_v3  ;;  %v9208_v0 = vld [vmem:[#allocation5 + $0xd4] ss:$8 sps:$4 sm:$0xff]   ;;  %v9210_v3 = vld [vmem:[#allocation5 + $0xd0] ss:$8 sps:$4 sm:$0xff]   ;;  %v9213_v5 = vld [vmem:[#allocation5 + $0xe0] ss:$8 sps:$4 sm:$0xff]   ;;  %p9904_p13 = pneg %p9903_p12 }
 0x19d   : > { %v7523_v10 = vpop.f32.mrf.mxu0  ;;  %v7563_v11 = vpop.f32.mrf.mxu1  ;;  %v9214_v6 = vld [vmem:[#allocation5 + $0xf4] ss:$8 sps:$4 sm:$0xff]  }
 0x19e   : > { %v895_v12 = vpack.c.bf16 %v7522_v8, %v7519_v4  ;;  %v1029_v13 = vpack.c.bf16 %v7562_v9, %v7559_v7  ;;  %v9211_v4 = vld [vmem:[#allocation5 + $0xe4] ss:$8 sps:$4 sm:$0xff]   ;;  %v9262_v7 = vld [vmem:[#allocation7 + $0xb8] sm:$0xff]  }
 0x19f   : > { %v7524_v14 = vpop.f32.mrf.mxu0  ;;  %v7564_v15 = vpop.f32.mrf.mxu1  ;;  %8262 = vmatprep.subr.bf16.mxu1 %v9262_v7  ;;  %v9216_v8 = vld [vmem:[#allocation5 + $0xf0] ss:$8 sps:$4 sm:$0xff]   ;;  %v9219_v9 = vld [vmem:[#allocation5 + $0x104] ss:$8 sps:$4 sm:$0xff]  }
 0x1a0   : > { %8231 = vmatmul.mubr.bf16.vlgmr.msra.gmra.mxu0 %v1029_v13  ;;  %8255 = vmatmul.mubr.bf16.vlgmr.msra.gmra.mxu1 %v895_v12  ;;  %v7525_v19 = vadd.f32 %v7524_v14, %v7523_v10  ;;  %v7565_v20 = vadd.f32 %v7564_v15, %v7563_v11  ;;  %v9263_v10 = vld [vmem:[#allocation7 + $0xb0] sm:$0xff]   ;;  %v9267_v11 = vld [vmem:[#allocation7 + $0xa8] sm:$0xff]   ;;  %v9268_v14 = vld [vmem:[#allocation7 + $0xa0] sm:$0xff]  }
 0x1a1   : > { %7600 = vmatpush3.bf16.msra.mxu0 %v10358_v16  ;;  %v7526_v17 = vpop.f32.mrf.mxu0  ;;  %v7566_v18 = vpop.f32.mrf.mxu1  ;;  %8263 = vmatpush3.bf16.msra.mxu1 %v9262_v7  ;;  %v9217_v12 = vld [vmem:[#allocation5 + $0x100] ss:$8 sps:$4 sm:$0xff]   ;;  %v9220_v13 = vld [vmem:[#allocation5 + $0x114] ss:$8 sps:$4 sm:$0xff]  }
 0x1a2   : > { %7601 = vmatprep.subr.bf16.mxu0 %v10362_v21  ;;  %8264 = vmatprep.subr.bf16.mxu1 %v9263_v10  ;;  %v9272_v15 = vld [vmem:[#allocation7 + $0x98] sm:$0xff]  }
 0x1a3   : > { %v7527_v22 = vpop.f32.mrf.mxu0  ;;  %v7567_v23 = vpop.f32.mrf.mxu1 }
 0x1a4   : > { %v7528_v24 = vadd.f32 %v7527_v22, %v7526_v17  ;;  %v7568_v25 = vadd.f32 %v7567_v23, %v7566_v18  ;;  %v9222_v17 = vld [vmem:[#allocation5 + $0x110] ss:$8 sps:$4 sm:$0xff]   ;;  %v9223_v18 = vld [vmem:[#allocation5 + $0x124] ss:$8 sps:$4 sm:$0xff]   ;;  %v9225_v22 = vld [vmem:[#allocation5 + $0x120] ss:$8 sps:$4 sm:$0xff]  }
 0x1a5   : > { %7602 = vmatpush3.bf16.msra.mxu0 %v10366_v26  ;;  %v7529_v27 = vpop.f32.mrf.mxu0  ;;  %v7569_v28 = vpop.f32.mrf.mxu1  ;;  %8265 = vmatpush3.bf16.msra.mxu1 %v9263_v10  ;;  %v9226_v23 = vld [vmem:[#allocation5 + $0x134] ss:$8 sps:$4 sm:$0xff]  }
 0x1a6   : > { %v896_v29 = vpack.c.bf16 %v7528_v24, %v7525_v19  ;;  %v1030_v30 = vpack.c.bf16 %v7568_v25, %v7565_v20  ;;  %7603 = vmatprep.subr.bf16.mxu0 %v10370_v31  ;;  %8266 = vmatprep.subr.bf16.mxu1 %v9267_v11  ;;  %v9273_v19 = vld [vmem:[#allocation7 + $0x90] sm:$0xff]   ;;  %v9277_v20 = vld [vmem:[#allocation7 + $0x88] sm:$0xff]   ;;  %v9278_v24 = vld [vmem:[#allocation7 + $0x80] sm:$0xff]  }
 0x1a7   : > { %v7530_v32 = vpop.f32.mrf.mxu0  ;;  %v7570_v33 = vpop.f32.mrf.mxu1  ;;  %v10462_v25 = vld [vmem:[#allocation7 + $0xf8] sm:$0xff]  }
 0x1a8   : > { %8234 = vmatprep.mubr.bf16.mxu0 %v1030_v30  ;;  %8258 = vmatprep.mubr.bf16.mxu1 %v896_v29  ;;  %v7531_v37 = vadd.f32 %v7530_v32, %v7529_v27  ;;  %v7571_v38 = vadd.f32 %v7570_v33, %v7569_v28  ;;  %v9228_v27 = vld [vmem:[#allocation5 + $0x130] ss:$8 sps:$4 sm:$0xff]   ;;  %v9231_v28 = vld [vmem:[#allocation5 + $0x144] ss:$8 sps:$4 sm:$0xff]   ;;  %v9229_v29 = vld [vmem:[#allocation5 + $0x140] ss:$8 sps:$4 sm:$0xff]  }
 0x1a9   : > { %7604 = vmatpush3.bf16.msra.mxu0 %v10374_v34  ;;  %v7532_v35 = vpop.f32.mrf.mxu0  ;;  %v7572_v36 = vpop.f32.mrf.mxu1  ;;  %8267 = vmatpush3.bf16.msra.mxu1 %v9267_v11  ;;  %v9232_v30 = vld [vmem:[#allocation5 + $0x154] ss:$8 sps:$4 sm:$0xff]   ;;  %v9234_v32 = vld [vmem:[#allocation5 + $0x150] ss:$8 sps:$4 sm:$0xff]   ;;  %v9235_v33 = vld [vmem:[#allocation5 + $0x164] ss:$8 sps:$4 sm:$0xff]  }
 0x1aa   : > { %7605 = vmatprep.subr.bf16.mxu0 %v10378_v39  ;;  %8268 = vmatprep.subr.bf16.mxu1 %v9268_v14  ;;  %v9264_v11 = vld [vmem:[#allocation5 + $0x1f0] ss:$8 sps:$4 sm:$0xff]  }
 0x1ab   : > { %v7533_v40 = vpop.f32.mrf.mxu0  ;;  %v7573_v41 = vpop.f32.mrf.mxu1 }
 0x1ac   : > { %v7534_v42 = vadd.f32 %v7533_v40, %v7532_v35  ;;  %v7574_v43 = vadd.f32 %v7573_v41, %v7572_v36  ;;  %v9237_v35 = vld [vmem:[#allocation5 + $0x160] ss:$8 sps:$4 sm:$0xff]   ;;  %v9238_v36 = vld [vmem:[#allocation5 + $0x174] ss:$8 sps:$4 sm:$0xff]  }
 0x1ad   : > { %7606 = vmatpush3.bf16.msra.mxu0 %v10382_v44  ;;  %8269 = vmatpush3.bf16.msra.mxu1 %v9268_v14  ;;  %v9241_v40 = vld [vmem:[#allocation5 + $0x180] ss:$8 sps:$4 sm:$0xff]   ;;  %v9244_v41 = vld [vmem:[#allocation5 + $0x194] ss:$8 sps:$4 sm:$0xff]  }
 0x1ae   : > { %v897_v46 = vpack.c.bf16 %v7534_v42, %v7531_v37  ;;  %v1031_v47 = vpack.c.bf16 %v7574_v43, %v7571_v38  ;;  %7607 = vmatprep.subr.bf16.mxu0 %v10386_v48  ;;  %8270 = vmatprep.subr.bf16.mxu1 %v9272_v15  ;;  %v9240_v37 = vld [vmem:[#allocation5 + $0x170] ss:$8 sps:$4 sm:$0xff]   ;;  %v9243_v38 = vld [vmem:[#allocation5 + $0x184] ss:$8 sps:$4 sm:$0xff]  }
 0x1af   : > { %v9246_v42 = vld [vmem:[#allocation5 + $0x190] ss:$8 sps:$4 sm:$0xff]   ;;  %v9247_v43 = vld [vmem:[#allocation5 + $0x1a4] ss:$8 sps:$4 sm:$0xff]  }
 0x1b0   : > { %8235 = vmatmul.mubr.bf16.gmra.mxu0 %v1031_v47  ;;  %8259 = vmatmul.mubr.bf16.gmra.mxu1 %v897_v46  ;;  %v9250_v46 = vld [vmem:[#allocation5 + $0x1b4] ss:$8 sps:$4 sm:$0xff]   ;;  %v9252_v47 = vld [vmem:[#allocation5 + $0x1b0] ss:$8 sps:$4 sm:$0xff]  }
 0x1b1   : > { %7608 = vmatpush3.bf16.msra.mxu0 %v10390_v49  ;;  %1356 = vmatprep.mubr.bf16.mxu0 %v9195_v45  ;;  %v9249_v45 = vld [vmem:[#allocation5 + $0x1a0] ss:$8 sps:$4 sm:$0xff]  }
 0x1b2   : > { %7609 = vmatprep.subr.bf16.mxu0 %v10394_v50  ;;  %8271 = vmatpush3.bf16.msra.mxu1 %v9272_v15 }
 0x1b3   : > { %8272 = vmatprep.subr.bf16.mxu1 %v9273_v19 }
 0x1b5   : > { %7610 = vmatpush3.bf16.msra.mxu0 %v10398_v51 }
 0x1b6   : > { %7611 = vmatprep.subr.bf16.mxu0 %v10402_v52  ;;  %8273 = vmatpush3.bf16.msra.mxu1 %v9273_v19 }
 0x1b7   : > { %8274 = vmatprep.subr.bf16.mxu1 %v9277_v20 }
 0x1b9   : > { %7612 = vmatpush3.bf16.msra.mxu0 %v10406_v53 }
 0x1ba   : > { %7613 = vmatprep.subr.bf16.mxu0 %v10410_v54  ;;  %8275 = vmatpush3.bf16.msra.mxu1 %v9277_v20 }
 0x1bb   : > { %8276 = vmatprep.subr.bf16.mxu1 %v9278_v24 }
 0x1bd   : > { %7614 = vmatpush3.bf16.msra.mxu0 %v10414_v56 }
 0x1be   : > { %7651 = vmatprep.subr.bf16.mxu0 %v10418_v58  ;;  %8277 = vmatpush3.bf16.msra.mxu1 %v9278_v24  ;;  %v9286_v24 = vld [vmem:[#allocation5 + $0x234] ss:$8 sps:$4 sm:$0xff]  }
 0x1bf   : > { %8286 = vmatprep.subr.bf16.mxu1 %v10462_v25 }
 0x1c0   : > { %1357 = vmatmul.mubr.bf16.vlgmr.msra.gmra.mxu0 %v9193_v55  ;;  %v9255_v55 = vld [vmem:[#allocation5 + $0x1c4] ss:$8 sps:$4 sm:$0xff]  }
 0x1c1   : > { %7652 = vmatpush3.bf16.msra.mxu0 %v10358_v16  ;;  %1364 = vmatprep.mubr.bf16.mxu0 %v9196_v57  ;;  %v9253_v57 = vld [vmem:[#allocation5 + $0x1c0] ss:$8 sps:$4 sm:$0xff]  }
 0x1c2   : > { %7653 = vmatprep.subr.bf16.mxu0 %v10362_v21 }
 0x1c5   : > { %7654 = vmatpush3.bf16.msra.mxu0 %v10366_v26 }
 0x1c6   : > { %7655 = vmatprep.subr.bf16.mxu0 %v10370_v31 }
 0x1c8   : > { %1365 = vmatmul.mubr.bf16.gmra.mxu0 %v9198_v59  ;;  %v9256_v59 = vld [vmem:[#allocation5 + $0x1d4] ss:$8 sps:$4 sm:$0xff]  }
 0x1c9   : > { %7656 = vmatpush3.bf16.msra.mxu0 %v10374_v34  ;;  %1372 = vmatprep.mubr.bf16.mxu0 %v9199_v60 }
 0x1ca   : > { %7657 = vmatprep.subr.bf16.mxu0 %v10378_v39 }
 0x1cd   : > { %7658 = vmatpush3.bf16.msra.mxu0 %v10382_v44 }
 0x1ce   : > { %7659 = vmatprep.subr.bf16.mxu0 %v10386_v48 }
 0x1d0   : > { %1373 = vmatmul.mubr.bf16.gmra.mxu0 %v9201_v61 }
 0x1d1   : > { %7660 = vmatpush3.bf16.msra.mxu0 %v10390_v49  ;;  %1380 = vmatprep.mubr.bf16.mxu0 %v9202_v62 }
 0x1d2   : > { %7661 = vmatprep.subr.bf16.mxu0 %v10394_v50 }
 0x1d5   : > { %7662 = vmatpush3.bf16.msra.mxu0 %v10398_v51 }
 0x1d6   : > { %7663 = vmatprep.subr.bf16.mxu0 %v10402_v52 }
 0x1d8   : > { %1381 = vmatmul.mubr.bf16.gmra.mxu0 %v9204_v63 }
 0x1d9   : > { %7664 = vmatpush3.bf16.msra.mxu0 %v10406_v53  ;;  %1612 = vmatprep.mubr.bf16.mxu0 %v9207_v1 }
 0x1da   : > { %7665 = vmatprep.subr.bf16.mxu0 %v10410_v54 }
 0x1dd   : > { %7666 = vmatpush3.bf16.msra.mxu0 %v10414_v56 }
 0x1de   : > { %7703 = vmatprep.subr.bf16.mxu0 %v10418_v58 }
 0x1e0   : > { %1613 = vmatmul.mubr.bf16.vlgmr.msra.gmra.mxu0 %v9205_v2 }
 0x1e1   : > { %7704 = vmatpush3.bf16.msra.mxu0 %v10358_v16  ;;  %1620 = vmatprep.mubr.bf16.mxu0 %v9208_v0 }
 0x1e2   : > { %7705 = vmatprep.subr.bf16.mxu0 %v10362_v21 }
 0x1e5   : > { %7706 = vmatpush3.bf16.msra.mxu0 %v10366_v26 }
 0x1e6   : > { %7707 = vmatprep.subr.bf16.mxu0 %v10370_v31 }
 0x1e8   : > { %1621 = vmatmul.mubr.bf16.gmra.mxu0 %v9210_v3 }
 0x1e9   : > { %7708 = vmatpush3.bf16.msra.mxu0 %v10374_v34  ;;  %1628 = vmatprep.mubr.bf16.mxu0 %v9211_v4  ;;  %v9258_v4 = vld [vmem:[#allocation5 + $0x1d0] ss:$8 sps:$4 sm:$0xff]  }
 0x1ea   : > { %7709 = vmatprep.subr.bf16.mxu0 %v10378_v39 }
 0x1ed   : > { %7710 = vmatpush3.bf16.msra.mxu0 %v10382_v44 }
 0x1ee   : > { %7711 = vmatprep.subr.bf16.mxu0 %v10386_v48 }
 0x1f0   : > { %1629 = vmatmul.mubr.bf16.gmra.mxu0 %v9213_v5 }
 0x1f1   : > { %7712 = vmatpush3.bf16.msra.mxu0 %v10390_v49  ;;  %1636 = vmatprep.mubr.bf16.mxu0 %v9214_v6 }
 0x1f2   : > { %7713 = vmatprep.subr.bf16.mxu0 %v10394_v50 }
 0x1f5   : > { %7714 = vmatpush3.bf16.msra.mxu0 %v10398_v51 }
 0x1f6   : > { %7715 = vmatprep.subr.bf16.mxu0 %v10402_v52 }
 0x1f8   : > { %1637 = vmatmul.mubr.bf16.gmra.mxu0 %v9216_v8 }
 0x1f9   : > { %7716 = vmatpush3.bf16.msra.mxu0 %v10406_v53  ;;  %1868 = vmatprep.mubr.bf16.mxu0 %v9219_v9 }
 0x1fa   : > { %7717 = vmatprep.subr.bf16.mxu0 %v10410_v54 }
 0x1fd   : > { %7718 = vmatpush3.bf16.msra.mxu0 %v10414_v56 }
 0x1fe   : > { %7755 = vmatprep.subr.bf16.mxu0 %v10418_v58 }
 0x200   : > { %1869 = vmatmul.mubr.bf16.vlgmr.msra.gmra.mxu0 %v9217_v12 }
 0x201   : > { %7756 = vmatpush3.bf16.msra.mxu0 %v10358_v16  ;;  %1876 = vmatprep.mubr.bf16.mxu0 %v9220_v13 }
 0x202   : > { %7757 = vmatprep.subr.bf16.mxu0 %v10362_v21 }
 0x205   : > { %7758 = vmatpush3.bf16.msra.mxu0 %v10366_v26 }
 0x206   : > { %7759 = vmatprep.subr.bf16.mxu0 %v10370_v31 }
 0x208   : > { %1877 = vmatmul.mubr.bf16.gmra.mxu0 %v9222_v17  ;;  %v9274_v17 = vld [vmem:[#allocation5 + $0x210] ss:$8 sps:$4 sm:$0xff]  }
 0x209   : > { %7760 = vmatpush3.bf16.msra.mxu0 %v10374_v34  ;;  %1884 = vmatprep.mubr.bf16.mxu0 %v9223_v18  ;;  %v9281_v18 = vld [vmem:[#allocation5 + $0x224] ss:$8 sps:$4 sm:$0xff]  }
 0x20a   : > { %7761 = vmatprep.subr.bf16.mxu0 %v10378_v39 }
 0x20d   : > { %7762 = vmatpush3.bf16.msra.mxu0 %v10382_v44 }
 0x20e   : > { %7763 = vmatprep.subr.bf16.mxu0 %v10386_v48 }
 0x210   : > { %1885 = vmatmul.mubr.bf16.gmra.mxu0 %v9225_v22 }
 0x211   : > { %7764 = vmatpush3.bf16.msra.mxu0 %v10390_v49  ;;  %1892 = vmatprep.mubr.bf16.mxu0 %v9226_v23  ;;  %v9279_v23 = vld [vmem:[#allocation5 + $0x220] ss:$8 sps:$4 sm:$0xff]  }
 0x212   : > { %7765 = vmatprep.subr.bf16.mxu0 %v10394_v50 }
 0x215   : > { %7766 = vmatpush3.bf16.msra.mxu0 %v10398_v51 }
 0x216   : > { %7767 = vmatprep.subr.bf16.mxu0 %v10402_v52 }
 0x218   : > { %1893 = vmatmul.mubr.bf16.gmra.mxu0 %v9228_v27 }
 0x219   : > { %7768 = vmatpush3.bf16.msra.mxu0 %v10406_v53  ;;  %2124 = vmatprep.mubr.bf16.mxu0 %v9231_v28 }
 0x21a   : > { %7769 = vmatprep.subr.bf16.mxu0 %v10410_v54 }
 0x21d   : > { %7770 = vmatpush3.bf16.msra.mxu0 %v10414_v56 }
 0x21e   : > { %7807 = vmatprep.subr.bf16.mxu0 %v10418_v58 }
 0x220   : > { %2125 = vmatmul.mubr.bf16.vlgmr.msra.gmra.mxu0 %v9229_v29 }
 0x221   : > { %7808 = vmatpush3.bf16.msra.mxu0 %v10358_v16  ;;  %2132 = vmatprep.mubr.bf16.mxu0 %v9232_v30 }
 0x222   : > { %7809 = vmatprep.subr.bf16.mxu0 %v10362_v21 }
 0x225   : > { %7810 = vmatpush3.bf16.msra.mxu0 %v10366_v26 }
 0x226   : > { %7811 = vmatprep.subr.bf16.mxu0 %v10370_v31 }
 0x228   : > { %2133 = vmatmul.mubr.bf16.gmra.mxu0 %v9234_v32 }
 0x229   : > { %7812 = vmatpush3.bf16.msra.mxu0 %v10374_v34  ;;  %2140 = vmatprep.mubr.bf16.mxu0 %v9235_v33  ;;  %v9283_v33 = vld [vmem:[#allocation7 + $0xf0] sm:$0xff]  }
 0x22a   : > { %7813 = vmatprep.subr.bf16.mxu0 %v10378_v39 }
 0x22d   : > { %7814 = vmatpush3.bf16.msra.mxu0 %v10382_v44 }
 0x22e   : > { %7815 = vmatprep.subr.bf16.mxu0 %v10386_v48 }
 0x230   : > { %2141 = vmatmul.mubr.bf16.gmra.mxu0 %v9237_v35 }
 0x231   : > { %7816 = vmatpush3.bf16.msra.mxu0 %v10390_v49  ;;  %2148 = vmatprep.mubr.bf16.mxu0 %v9238_v36 }
 0x232   : > { %7817 = vmatprep.subr.bf16.mxu0 %v10394_v50 }
 0x235   : > { %7818 = vmatpush3.bf16.msra.mxu0 %v10398_v51 }
 0x236   : > { %7819 = vmatprep.subr.bf16.mxu0 %v10402_v52 }
 0x238   : > { %2149 = vmatmul.mubr.bf16.gmra.mxu0 %v9240_v37  ;;  %v9284_v37 = vld [vmem:[#allocation5 + $0x230] ss:$8 sps:$4 sm:$0xff]  }
 0x239   : > { %7820 = vmatpush3.bf16.msra.mxu0 %v10406_v53  ;;  %2380 = vmatprep.mubr.bf16.mxu0 %v9243_v38  ;;  %v9287_v38 = vld [vmem:[#allocation7 + $0xe8] sm:$0xff]  }
 0x23a   : > { %7821 = vmatprep.subr.bf16.mxu0 %v10410_v54 }
 0x23d   : > { %7822 = vmatpush3.bf16.msra.mxu0 %v10414_v56 }
 0x23e   : > { %7859 = vmatprep.subr.bf16.mxu0 %v10418_v58 }
 0x240   : > { %2381 = vmatmul.mubr.bf16.vlgmr.msra.gmra.mxu0 %v9241_v40 }
 0x241   : > { %7860 = vmatpush3.bf16.msra.mxu0 %v10358_v16  ;;  %2388 = vmatprep.mubr.bf16.mxu0 %v9244_v41 }
 0x242   : > { %7861 = vmatprep.subr.bf16.mxu0 %v10362_v21 }
 0x245   : > { %7862 = vmatpush3.bf16.msra.mxu0 %v10366_v26 }
 0x246   : > { %7863 = vmatprep.subr.bf16.mxu0 %v10370_v31 }
 0x248   : > { %2389 = vmatmul.mubr.bf16.gmra.mxu0 %v9246_v42 }
 0x249   : > { %7864 = vmatpush3.bf16.msra.mxu0 %v10374_v34  ;;  %2396 = vmatprep.mubr.bf16.mxu0 %v9247_v43 }
 0x24a   : > { %7865 = vmatprep.subr.bf16.mxu0 %v10378_v39 }
 0x24d   : > { %7866 = vmatpush3.bf16.msra.mxu0 %v10382_v44 }
 0x24e   : > { %7867 = vmatprep.subr.bf16.mxu0 %v10386_v48 }
 0x250   : > { %2397 = vmatmul.mubr.bf16.gmra.mxu0 %v9249_v45 }
 0x251   : > { %7868 = vmatpush3.bf16.msra.mxu0 %v10390_v49  ;;  %2404 = vmatprep.mubr.bf16.mxu0 %v9250_v46  ;;  %v9288_v46 = vld [vmem:[#allocation7 + $0xe0] sm:$0xff]  }
 0x252   : > { %7869 = vmatprep.subr.bf16.mxu0 %v10394_v50 }
 0x255   : > { %7870 = vmatpush3.bf16.msra.mxu0 %v10398_v51 }
 0x256   : > { %7871 = vmatprep.subr.bf16.mxu0 %v10402_v52 }
 0x258   : > { %2405 = vmatmul.mubr.bf16.gmra.mxu0 %v9252_v47 }
 0x259   : > { %7872 = vmatpush3.bf16.msra.mxu0 %v10406_v53  ;;  %2636 = vmatprep.mubr.bf16.mxu0 %v9255_v55 }
 0x25a   : > { %7873 = vmatprep.subr.bf16.mxu0 %v10410_v54 }
 0x25d   : > { %7874 = vmatpush3.bf16.msra.mxu0 %v10414_v56 }
 0x25e   : > { %7911 = vmatprep.subr.bf16.mxu0 %v10418_v58  ;;  %v9261_v58 = vld [vmem:[#allocation5 + $0x1e4] ss:$8 sps:$4 sm:$0xff]  }
 0x260   : > { %2637 = vmatmul.mubr.bf16.vlgmr.msra.gmra.mxu0 %v9253_v57  ;;  %v8232_v60 = vpop.f32.mrf.mxu0  ;;  %v8256_v61 = vpop.f32.mrf.mxu1  ;;  %v9289_v57 = vld [vmem:[#allocation7 + $0xd8] sm:$0xff]  }
 0x261   : > { %v10504_v62 = vadd.f32 %v8256_v61, %v8232_v60  ;;  %7912 = vmatpush3.bf16.msra.mxu0 %v10358_v16  ;;  %2644 = vmatprep.mubr.bf16.mxu0 %v9256_v59  ;;  %v9259_v16 = vld [vmem:[#allocation5 + $0x1e0] ss:$8 sps:$4 sm:$0xff]  }
 0x262   : > { %v1131_v63 = vpop.f32.mrf.mxu0  ;;  %v1244_v1 = vpop.f32.mrf.mxu1  ;;  %7913 = vmatprep.subr.bf16.mxu0 %v10362_v21  ;;  %v9266_v21 = vld [vmem:[#allocation5 + $0x1f4] ss:$8 sps:$4 sm:$0xff]  }
 0x263   : > { %v10508_v2 = vadd.f32 %v1244_v1, %v1131_v63  ;;  %v9290_v1 = vld [vmem:[#allocation7 + $0xd0] sm:$0xff]  }
 0x264   : > { %v8233_v0 = vpop.f32.mrf.mxu0  ;;  %v8257_v3 = vpop.f32.mrf.mxu1 }
 0x265   : > { %v10510_v5 = vadd.f32 %v8257_v3, %v8233_v0  ;;  %7914 = vmatpush3.bf16.msra.mxu0 %v10366_v26 }
 0x266   : > { %7915 = vmatprep.subr.bf16.mxu0 %v10370_v31  ;;  %v10517_v6 = vpop.f32.mrf.mxu0  ;;  %v10519_v7 = vpop.f32.mrf.mxu1 }
 0x268   : > { %2645 = vmatmul.mubr.bf16.gmra.mxu0 %v9258_v4  ;;  %v9291_v4 = vld [vmem:[#allocation7 + $0xc8] sm:$0xff]  }
 0x269   : > { %7916 = vmatpush3.bf16.msra.mxu0 %v10374_v34  ;;  %2652 = vmatprep.mubr.bf16.mxu0 %v9261_v58 }
 0x26a   : > { %7917 = vmatprep.subr.bf16.mxu0 %v10378_v39 }
 0x26d   : > { %7918 = vmatpush3.bf16.msra.mxu0 %v10382_v44 }
 0x26e   : > { %7919 = vmatprep.subr.bf16.mxu0 %v10386_v48  ;;  %v9271_v48 = vld [vmem:[#allocation5 + $0x204] ss:$8 sps:$4 sm:$0xff]  }
 0x270   : > { %2653 = vmatmul.mubr.bf16.gmra.mxu0 %v9259_v16  ;;  %v8236_v26 = vpop.f32.mrf.mxu0  ;;  %v8260_v8 = vpop.f32.mrf.mxu1 }
 0x271   : > { %v10522_v31 = vadd.f32 %v8260_v8, %v8236_v26  ;;  %7920 = vmatpush3.bf16.msra.mxu0 %v10390_v49  ;;  %2660 = vmatprep.mubr.bf16.mxu0 %v9266_v21  ;;  %v9269_v49 = vld [vmem:[#allocation5 + $0x200] ss:$8 sps:$4 sm:$0xff]  }
 0x272   : > { %v1147_v34 = vpop.f32.mrf.mxu0  ;;  %v1260_v39 = vpop.f32.mrf.mxu1  ;;  %7921 = vmatprep.subr.bf16.mxu0 %v10394_v50  ;;  %v9276_v50 = vld [vmem:[#allocation5 + $0x214] ss:$8 sps:$4 sm:$0xff]  }
 0x273   : > { %v10526_v44 = vadd.f32 %v1260_v39, %v1147_v34  ;;  %v9292_v34 = vld [vmem:[#allocation7 + $0xc0] sm:$0xff]  }
 0x274   : > { %v8237_v9 = vpop.f32.mrf.mxu0  ;;  %v8261_v10 = vpop.f32.mrf.mxu1 }
 0x275   : > { %v10528_v12 = vadd.f32 %v8261_v10, %v8237_v9  ;;  %7922 = vmatpush3.bf16.msra.mxu0 %v10398_v51  ;;  %v9293_v10 = vld [vmem:[#allocation7 + $0x138] sm:$0xff]  }
 0x276   : > { %7923 = vmatprep.subr.bf16.mxu0 %v10402_v52  ;;  %v10535_v13 = vpop.f32.mrf.mxu0 }
 0x278   : > { %2661 = vmatmul.mubr.bf16.gmra.mxu0 %v9264_v11 }
 0x279   : > { %7924 = vmatpush3.bf16.msra.mxu0 %v10406_v53  ;;  %2892 = vmatprep.mubr.bf16.mxu0 %v9271_v48 }
 0x27a   : > { %7925 = vmatprep.subr.bf16.mxu0 %v10410_v54 }
 0x27d   : > { %7926 = vmatpush3.bf16.msra.mxu0 %v10414_v56 }
 0x280   : > { %v7615_v14 = vpop.f32.mrf.mxu0  ;;  %2893 = vmatmul.mubr.bf16.vlgmr.msra.gmra.mxu0 %v9269_v49 }
 0x281   : > { %2900 = vmatprep.mubr.bf16.mxu0 %v9276_v50 }
 0x282   : > { %v7616_v15 = vpop.f32.mrf.mxu0 }
 0x283   : > { %v7617_v19 = vadd.f32 %v7616_v15, %v7615_v14  ;;  %v9294_v15 = vld [vmem:[#allocation7 + $0x130] sm:$0xff]  }
 0x284   : > { %v7618_v51 = vpop.f32.mrf.mxu0 }
 0x286   : > { %v7619_v52 = vpop.f32.mrf.mxu0 }
 0x287   : > { %v7620_v20 = vadd.f32 %v7619_v52, %v7618_v51  ;;  %v9325_v51 = vld [vmem:[#allocation7 + $0x238] sm:$0xff]   ;;  %v9295_v52 = vld [vmem:[#allocation7 + $0x128] sm:$0xff]  }
 0x288   : > { %v7621_v53 = vpop.f32.mrf.mxu0  ;;  %2901 = vmatmul.mubr.bf16.gmra.mxu0 %v9274_v17  ;;  %8406 = vmatprep.subr.bf16.mxu0 %v9325_v51 }
 0x289   : > { %v1389_v22 = vpack.c.bf16 %v7620_v20, %v7617_v19  ;;  %2908 = vmatprep.mubr.bf16.mxu0 %v9281_v18  ;;  %8407 = vmatpush3.bf16.msra.mxu0 %v9325_v51  ;;  %v9326_v19 = vld [vmem:[#allocation7 + $0x230] sm:$0xff]   ;;  %v9305_v51 = vld [vmem:[#allocation7 + $0x158] sm:$0xff]  }
 0x28a   : > { %v7622_v54 = vpop.f32.mrf.mxu0  ;;  %8408 = vmatprep.subr.bf16.mxu0 %v9326_v19 }
 0x28b   : > { %8278 = vmatprep.mubr.bf16.mxu1 %v1389_v22  ;;  %v7623_v28 = vadd.f32 %v7622_v54, %v7621_v53 }
 0x28c   : > { %v7624_v56 = vpop.f32.mrf.mxu0 }
 0x28d   : > { %8409 = vmatpush3.bf16.msra.mxu0 %v9326_v19 }
 0x28e   : > { %v7625_v27 = vpop.f32.mrf.mxu0 }
 0x28f   : > { %v7626_v29 = vadd.f32 %v7625_v27, %v7624_v56 }
 0x290   : > { %v7627_v30 = vpop.f32.mrf.mxu0  ;;  %2909 = vmatmul.mubr.bf16.gmra.mxu0 %v9279_v23  ;;  %v9296_v23 = vld [vmem:[#allocation7 + $0x120] sm:$0xff]  }
 0x291   : > { %v1390_v32 = vpack.c.bf16 %v7626_v29, %v7623_v28  ;;  %2916 = vmatprep.mubr.bf16.mxu0 %v9286_v24  ;;  %v9327_v24 = vld [vmem:[#allocation7 + $0x228] sm:$0xff]   ;;  %v9297_v29 = vld [vmem:[#allocation7 + $0x118] sm:$0xff]  }
 0x292   : > { %v7628_v35 = vpop.f32.mrf.mxu0  ;;  %8410 = vmatprep.subr.bf16.mxu0 %v9327_v24 }
 0x293   : > { %8279 = vmatmul.mubr.bf16.vlgmr.msra.gmra.mxu1 %v1390_v32  ;;  %v7629_v41 = vadd.f32 %v7628_v35, %v7627_v30  ;;  %8411 = vmatpush3.bf16.msra.mxu0 %v9327_v24  ;;  %v9328_v30 = vld [vmem:[#allocation7 + $0x220] sm:$0xff]  }
 0x294   : > { %v7630_v36 = vpop.f32.mrf.mxu0  ;;  %8287 = vmatpush3.bf16.msra.mxu1 %v10462_v25  ;;  %8412 = vmatprep.subr.bf16.mxu0 %v9328_v30 }
 0x295   : > { %8288 = vmatprep.subr.bf16.mxu1 %v9283_v33 }
 0x296   : > { %v7631_v40 = vpop.f32.mrf.mxu0 }
 0x297   : > { %v7632_v42 = vadd.f32 %v7631_v40, %v7630_v36  ;;  %8413 = vmatpush3.bf16.msra.mxu0 %v9328_v30  ;;  %v9329_v40 = vld [vmem:[#allocation7 + $0x218] sm:$0xff]   ;;  %v9308_v30 = vld [vmem:[#allocation7 + $0x140] sm:$0xff]  }
 0x298   : > { %v7633_v43 = vpop.f32.mrf.mxu0  ;;  %8289 = vmatpush3.bf16.msra.mxu1 %v9283_v33  ;;  %2917 = vmatmul.mubr.bf16.gmra.mxu0 %v9284_v37 }
 0x299   : > { %v1391_v45 = vpack.c.bf16 %v7632_v42, %v7629_v41  ;;  %8290 = vmatprep.subr.bf16.mxu1 %v9287_v38  ;;  %8414 = vmatprep.subr.bf16.mxu0 %v9329_v40 }
 0x29a   : > { %v7634_v47 = vpop.f32.mrf.mxu0 }
 0x29b   : > { %8282 = vmatprep.mubr.bf16.mxu1 %v1391_v45  ;;  %v7635_v25 = vadd.f32 %v7634_v47, %v7633_v43  ;;  %8415 = vmatpush3.bf16.msra.mxu0 %v9329_v40  ;;  %v9299_v43 = vld [vmem:[#allocation7 + $0x108] sm:$0xff]   ;;  %v9330_v45 = vld [vmem:[#allocation7 + $0x210] sm:$0xff]  }
 0x29c   : > { %v7636_v55 = vpop.f32.mrf.mxu0  ;;  %8291 = vmatpush3.bf16.msra.mxu1 %v9287_v38  ;;  %v9298_v38 = vld [vmem:[#allocation7 + $0x110] sm:$0xff]   ;;  %8416 = vmatprep.subr.bf16.mxu0 %v9330_v45 }
 0x29d   : > { %8292 = vmatprep.subr.bf16.mxu1 %v9288_v46 }
 0x29e   : > { %v7637_v59 = vpop.f32.mrf.mxu0 }
 0x29f   : > { %v7638_v60 = vadd.f32 %v7637_v59, %v7636_v55  ;;  %8417 = vmatpush3.bf16.msra.mxu0 %v9330_v45 }
 0x2a0   : > { %v7667_v61 = vpop.f32.mrf.mxu0  ;;  %8293 = vmatpush3.bf16.msra.mxu1 %v9288_v46 }
 0x2a1   : > { %v1392_v63 = vpack.c.bf16 %v7638_v60, %v7635_v25  ;;  %8294 = vmatprep.subr.bf16.mxu1 %v9289_v57  ;;  %v9300_v25 = vld [vmem:[#allocation7 + $0x100] sm:$0xff]   ;;  %v9331_v60 = vld [vmem:[#allocation7 + $0x208] sm:$0xff]  }
 0x2a2   : > { %v7668_v0 = vpop.f32.mrf.mxu0  ;;  %8418 = vmatprep.subr.bf16.mxu0 %v9331_v60 }
 0x2a3   : > { %8283 = vmatmul.mubr.bf16.gmra.mxu1 %v1392_v63  ;;  %v7669_v16 = vadd.f32 %v7668_v0, %v7667_v61  ;;  %8419 = vmatpush3.bf16.msra.mxu0 %v9331_v60  ;;  %v9332_v0 = vld [vmem:[#allocation7 + $0x200] sm:$0xff]  }
 0x2a4   : > { %v7670_v3 = vpop.f32.mrf.mxu0  ;;  %8295 = vmatpush3.bf16.msra.mxu1 %v9289_v57  ;;  %8420 = vmatprep.subr.bf16.mxu0 %v9332_v0  ;;  %v9312_v60 = vld [vmem:[#allocation7 + $0x1a0] sm:$0xff]  }
 0x2a5   : > { %8296 = vmatprep.subr.bf16.mxu1 %v9290_v1 }
 0x2a6   : > { %v7671_v58 = vpop.f32.mrf.mxu0 }
 0x2a7   : > { %v7672_v21 = vadd.f32 %v7671_v58, %v7670_v3  ;;  %8421 = vmatpush3.bf16.msra.mxu0 %v9332_v0 }
 0x2a8   : > { %v7673_v26 = vpop.f32.mrf.mxu0  ;;  %8297 = vmatpush3.bf16.msra.mxu1 %v9290_v1  ;;  %v9301_v1 = vld [vmem:[#allocation7 + $0x178] sm:$0xff]  }
 0x2a9   : > { %v1645_v8 = vpack.c.bf16 %v7672_v21, %v7669_v16  ;;  %8298 = vmatprep.subr.bf16.mxu1 %v9291_v4 }
 0x2aa   : > { %v7674_v39 = vpop.f32.mrf.mxu0 }
 0x2ab   : > { %8302 = vmatprep.mubr.bf16.mxu1 %v1645_v8  ;;  %v7675_v48 = vadd.f32 %v7674_v39, %v7673_v26  ;;  %v9302_v26 = vld [vmem:[#allocation7 + $0x170] sm:$0xff]   ;;  %v9303_v39 = vld [vmem:[#allocation7 + $0x168] sm:$0xff]  }
 0x2ac   : > { %v7676_v9 = vpop.f32.mrf.mxu0  ;;  %8299 = vmatpush3.bf16.msra.mxu1 %v9291_v4 }
 0x2ad   : > { %8300 = vmatprep.subr.bf16.mxu1 %v9292_v34 }
 0x2ae   : > { %v7677_v11 = vpop.f32.mrf.mxu0 }
 0x2af   : > { %v7678_v49 = vadd.f32 %v7677_v11, %v7676_v9 }
 0x2b0   : > { %v7679_v50 = vpop.f32.mrf.mxu0  ;;  %8301 = vmatpush3.bf16.msra.mxu1 %v9292_v34 }
 0x2b1   : > { %v1646_v14 = vpack.c.bf16 %v7678_v49, %v7675_v48  ;;  %8310 = vmatprep.subr.bf16.mxu1 %v9293_v10 }
 0x2b2   : > { %v7680_v17 = vpop.f32.mrf.mxu0 }
 0x2b3   : > { %8303 = vmatmul.mubr.bf16.vlgmr.msra.gmra.mxu1 %v1646_v14  ;;  %v7681_v53 = vadd.f32 %v7680_v17, %v7679_v50  ;;  %v9304_v50 = vld [vmem:[#allocation7 + $0x160] sm:$0xff]  }
 0x2b4   : > { %v7682_v18 = vpop.f32.mrf.mxu0  ;;  %8311 = vmatpush3.bf16.msra.mxu1 %v9293_v10 }
 0x2b5   : > { %8312 = vmatprep.subr.bf16.mxu1 %v9294_v15 }
 0x2b6   : > { %v7683_v20 = vpop.f32.mrf.mxu0 }
 0x2b7   : > { %v7684_v22 = vadd.f32 %v7683_v20, %v7682_v18 }
 0x2b8   : > { %v7685_v54 = vpop.f32.mrf.mxu0  ;;  %8313 = vmatpush3.bf16.msra.mxu1 %v9294_v15 }
 0x2b9   : > { %v1647_v56 = vpack.c.bf16 %v7684_v22, %v7681_v53  ;;  %8314 = vmatprep.subr.bf16.mxu1 %v9295_v52  ;;  %v9306_v53 = vld [vmem:[#allocation7 + $0x150] sm:$0xff]  }
 0x2ba   : > { %v7686_v27 = vpop.f32.mrf.mxu0 }
 0x2bb   : > { %8306 = vmatprep.mubr.bf16.mxu1 %v1647_v56  ;;  %v7687_v33 = vadd.f32 %v7686_v27, %v7685_v54  ;;  %v9307_v56 = vld [vmem:[#allocation7 + $0x148] sm:$0xff]  }
 0x2bc   : > { %v7688_v28 = vpop.f32.mrf.mxu0  ;;  %8315 = vmatpush3.bf16.msra.mxu1 %v9295_v52 }
 0x2bd   : > { %8316 = vmatprep.subr.bf16.mxu1 %v9296_v23 }
 0x2be   : > { %v7689_v32 = vpop.f32.mrf.mxu0 }
 0x2bf   : > { %v7690_v35 = vadd.f32 %v7689_v32, %v7688_v28 }
 0x2c0   : > { %v7719_v36 = vpop.f32.mrf.mxu0  ;;  %8317 = vmatpush3.bf16.msra.mxu1 %v9296_v23 }
 0x2c1   : > { %v1648_v37 = vpack.c.bf16 %v7690_v35, %v7687_v33  ;;  %8318 = vmatprep.subr.bf16.mxu1 %v9297_v29  ;;  %v9309_v35 = vld [vmem:[#allocation7 + $0x1b8] sm:$0xff]  }
 0x2c2   : > { %v7720_v41 = vpop.f32.mrf.mxu0 }
 0x2c3   : > { %8307 = vmatmul.mubr.bf16.gmra.mxu1 %v1648_v37  ;;  %v7721_v47 = vadd.f32 %v7720_v41, %v7719_v36 }
 0x2c4   : > { %v7722_v42 = vpop.f32.mrf.mxu0  ;;  %8319 = vmatpush3.bf16.msra.mxu1 %v9297_v29 }
 0x2c5   : > { %8320 = vmatprep.subr.bf16.mxu1 %v9298_v38 }
 0x2c6   : > { %v7723_v46 = vpop.f32.mrf.mxu0 }
 0x2c7   : > { %v7724_v55 = vadd.f32 %v7723_v46, %v7722_v42  ;;  %v9310_v42 = vld [vmem:[#allocation7 + $0x1b0] sm:$0xff]   ;;  %v9311_v46 = vld [vmem:[#allocation7 + $0x1a8] sm:$0xff]  }
 0x2c8   : > { %v7725_v57 = vpop.f32.mrf.mxu0  ;;  %8321 = vmatpush3.bf16.msra.mxu1 %v9298_v38 }
 0x2c9   : > { %v1901_v59 = vpack.c.bf16 %v7724_v55, %v7721_v47  ;;  %8322 = vmatprep.subr.bf16.mxu1 %v9299_v43 }
 0x2ca   : > { %v7726_v61 = vpop.f32.mrf.mxu0 }
 0x2cb   : > { %8326 = vmatprep.mubr.bf16.mxu1 %v1901_v59  ;;  %v7727_v4 = vadd.f32 %v7726_v61, %v7725_v57 }
 0x2cc   : > { %v7728_v63 = vpop.f32.mrf.mxu0  ;;  %8323 = vmatpush3.bf16.msra.mxu1 %v9299_v43 }
 0x2cd   : > { %8324 = vmatprep.subr.bf16.mxu1 %v9300_v25 }
 0x2ce   : > { %v7729_v3 = vpop.f32.mrf.mxu0 }
 0x2cf   : > { %v7730_v58 = vadd.f32 %v7729_v3, %v7728_v63 }
 0x2d0   : > { %v7731_v16 = vpop.f32.mrf.mxu0  ;;  %8325 = vmatpush3.bf16.msra.mxu1 %v9300_v25 }
 0x2d1   : > { %v1902_v21 = vpack.c.bf16 %v7730_v58, %v7727_v4  ;;  %8334 = vmatprep.subr.bf16.mxu1 %v9301_v1 }
 0x2d2   : > { %v7732_v8 = vpop.f32.mrf.mxu0 }
 0x2d3   : > { %8327 = vmatmul.mubr.bf16.vlgmr.msra.gmra.mxu1 %v1902_v21  ;;  %v7733_v10 = vadd.f32 %v7732_v8, %v7731_v16  ;;  %v9314_v21 = vld [vmem:[#allocation7 + $0x190] sm:$0xff]  }
 0x2d4   : > { %v7734_v34 = vpop.f32.mrf.mxu0  ;;  %8335 = vmatpush3.bf16.msra.mxu1 %v9301_v1  ;;  %v9313_v1 = vld [vmem:[#allocation7 + $0x198] sm:$0xff]  }
 0x2d5   : > { %8336 = vmatprep.subr.bf16.mxu1 %v9302_v26 }
 0x2d6   : > { %v7735_v9 = vpop.f32.mrf.mxu0 }
 0x2d7   : > { %v7736_v11 = vadd.f32 %v7735_v9, %v7734_v34  ;;  %v9315_v34 = vld [vmem:[#allocation7 + $0x188] sm:$0xff]  }
 0x2d8   : > { %v7737_v48 = vpop.f32.mrf.mxu0  ;;  %8337 = vmatpush3.bf16.msra.mxu1 %v9302_v26 }
 0x2d9   : > { %v1903_v49 = vpack.c.bf16 %v7736_v11, %v7733_v10  ;;  %8338 = vmatprep.subr.bf16.mxu1 %v9303_v39 }
 0x2da   : > { %v7738_v14 = vpop.f32.mrf.mxu0 }
 0x2db   : > { %8330 = vmatprep.mubr.bf16.mxu1 %v1903_v49  ;;  %v7739_v18 = vadd.f32 %v7738_v14, %v7737_v48  ;;  %v9316_v49 = vld [vmem:[#allocation7 + $0x180] sm:$0xff]  }
 0x2dc   : > { %v7740_v15 = vpop.f32.mrf.mxu0  ;;  %8339 = vmatpush3.bf16.msra.mxu1 %v9303_v39 }
 0x2dd   : > { %8340 = vmatprep.subr.bf16.mxu1 %v9304_v50 }
 0x2de   : > { %v7741_v17 = vpop.f32.mrf.mxu0 }
 0x2df   : > { %v7742_v52 = vadd.f32 %v7741_v17, %v7740_v15  ;;  %v9317_v15 = vld [vmem:[#allocation7 + $0x1f8] sm:$0xff]  }
 0x2e0   : > { %v7771_v19 = vpop.f32.mrf.mxu0  ;;  %8341 = vmatpush3.bf16.msra.mxu1 %v9304_v50 }
 0x2e1   : > { %v1904_v20 = vpack.c.bf16 %v7742_v52, %v7739_v18  ;;  %8342 = vmatprep.subr.bf16.mxu1 %v9305_v51 }
 0x2e2   : > { %v7772_v22 = vpop.f32.mrf.mxu0 }
 0x2e3   : > { %8331 = vmatmul.mubr.bf16.gmra.mxu1 %v1904_v20  ;;  %v7773_v24 = vadd.f32 %v7772_v22, %v7771_v19  ;;  %v9318_v20 = vld [vmem:[#allocation7 + $0x1f0] sm:$0xff]  }
 0x2e4   : > { %v7774_v54 = vpop.f32.mrf.mxu0  ;;  %8343 = vmatpush3.bf16.msra.mxu1 %v9305_v51 }
 0x2e5   : > { %8344 = vmatprep.subr.bf16.mxu1 %v9306_v53 }
 0x2e6   : > { %v7775_v23 = vpop.f32.mrf.mxu0 }
 0x2e7   : > { %v7776_v27 = vadd.f32 %v7775_v23, %v7774_v54  ;;  %v9319_v54 = vld [vmem:[#allocation7 + $0x1e8] sm:$0xff]  }
 0x2e8   : > { %v7777_v28 = vpop.f32.mrf.mxu0  ;;  %8345 = vmatpush3.bf16.msra.mxu1 %v9306_v53 }
 0x2e9   : > { %v2157_v29 = vpack.c.bf16 %v7776_v27, %v7773_v24  ;;  %8346 = vmatprep.subr.bf16.mxu1 %v9307_v56 }
 0x2ea   : > { %v7778_v32 = vpop.f32.mrf.mxu0 }
 0x2eb   : > { %8350 = vmatprep.mubr.bf16.mxu1 %v2157_v29  ;;  %v7779_v37 = vadd.f32 %v7778_v32, %v7777_v28  ;;  %v9320_v29 = vld [vmem:[#allocation7 + $0x1e0] sm:$0xff]  }
 0x2ec   : > { %v7780_v33 = vpop.f32.mrf.mxu0  ;;  %8347 = vmatpush3.bf16.msra.mxu1 %v9307_v56 }
 0x2ed   : > { %8348 = vmatprep.subr.bf16.mxu1 %v9308_v30 }
 0x2ee   : > { %v7781_v36 = vpop.f32.mrf.mxu0 }
 0x2ef   : > { %v7782_v38 = vadd.f32 %v7781_v36, %v7780_v33  ;;  %v9321_v33 = vld [vmem:[#allocation7 + $0x1d8] sm:$0xff]  }
 0x2f0   : > { %v7783_v40 = vpop.f32.mrf.mxu0  ;;  %8349 = vmatpush3.bf16.msra.mxu1 %v9308_v30 }
 0x2f1   : > { %v2158_v41 = vpack.c.bf16 %v7782_v38, %v7779_v37  ;;  %8358 = vmatprep.subr.bf16.mxu1 %v9309_v35 }
 0x2f2   : > { %v7784_v43 = vpop.f32.mrf.mxu0 }
 0x2f3   : > { %8351 = vmatmul.mubr.bf16.vlgmr.msra.gmra.mxu1 %v2158_v41  ;;  %v7785_v55 = vadd.f32 %v7784_v43, %v7783_v40  ;;  %v9322_v41 = vld [vmem:[#allocation7 + $0x1d0] sm:$0xff]  }
 0x2f4   : > { %v7786_v45 = vpop.f32.mrf.mxu0  ;;  %8359 = vmatpush3.bf16.msra.mxu1 %v9309_v35 }
 0x2f5   : > { %8360 = vmatprep.subr.bf16.mxu1 %v9310_v42 }
 0x2f6   : > { %v7787_v47 = vpop.f32.mrf.mxu0 }
 0x2f7   : > { %v7788_v57 = vadd.f32 %v7787_v47, %v7786_v45  ;;  %v9323_v45 = vld [vmem:[#allocation7 + $0x1c8] sm:$0xff]  }
 0x2f8   : > { %v7789_v59 = vpop.f32.mrf.mxu0  ;;  %8361 = vmatpush3.bf16.msra.mxu1 %v9310_v42 }
 0x2f9   : > { %v2159_v25 = vpack.c.bf16 %v7788_v57, %v7785_v55  ;;  %8362 = vmatprep.subr.bf16.mxu1 %v9311_v46 }
 0x2fa   : > { %v7790_v61 = vpop.f32.mrf.mxu0 }
 0x2fb   : > { %8354 = vmatprep.mubr.bf16.mxu1 %v2159_v25  ;;  %v7791_v3 = vadd.f32 %v7790_v61, %v7789_v59  ;;  %v9324_v25 = vld [vmem:[#allocation7 + $0x1c0] sm:$0xff]  }
 0x2fc   : > { %v7792_v63 = vpop.f32.mrf.mxu0  ;;  %8363 = vmatpush3.bf16.msra.mxu1 %v9311_v46 }
 0x2fd   : > { %8364 = vmatprep.subr.bf16.mxu1 %v9312_v60 }
 0x2fe   : > { %v7793_v0 = vpop.f32.mrf.mxu0 }
 0x2ff   : > { %v7794_v4 = vadd.f32 %v7793_v0, %v7792_v63 }
 0x300   : > { %v7823_v58 = vpop.f32.mrf.mxu0  ;;  %8365 = vmatpush3.bf16.msra.mxu1 %v9312_v60 }
 0x301   : > { %v2160_v16 = vpack.c.bf16 %v7794_v4, %v7791_v3  ;;  %8366 = vmatprep.subr.bf16.mxu1 %v9313_v1 }
 0x302   : > { %v7824_v26 = vpop.f32.mrf.mxu0 }
 0x303   : > { %8355 = vmatmul.mubr.bf16.gmra.mxu1 %v2160_v16  ;;  %v7825_v9 = vadd.f32 %v7824_v26, %v7823_v58 }
 0x304   : > { %v7826_v8 = vpop.f32.mrf.mxu0  ;;  %8367 = vmatpush3.bf16.msra.mxu1 %v9313_v1 }
 0x305   : > { %8368 = vmatprep.subr.bf16.mxu1 %v9314_v21 }
 0x306   : > { %v7827_v39 = vpop.f32.mrf.mxu0 }
 0x307   : > { %v7828_v10 = vadd.f32 %v7827_v39, %v7826_v8 }
 0x308   : > { %v7829_v11 = vpop.f32.mrf.mxu0  ;;  %8369 = vmatpush3.bf16.msra.mxu1 %v9314_v21 }
 0x309   : > { %v2413_v48 = vpack.c.bf16 %v7828_v10, %v7825_v9  ;;  %8370 = vmatprep.subr.bf16.mxu1 %v9315_v34 }
 0x30a   : > { %v7830_v50 = vpop.f32.mrf.mxu0 }
 0x30b   : > { %8374 = vmatprep.mubr.bf16.mxu1 %v2413_v48  ;;  %v7831_v17 = vadd.f32 %v7830_v50, %v7829_v11 }
 0x30c   : > { %v7832_v14 = vpop.f32.mrf.mxu0  ;;  %8371 = vmatpush3.bf16.msra.mxu1 %v9315_v34 }
 0x30d   : > { %8372 = vmatprep.subr.bf16.mxu1 %v9316_v49 }
 0x30e   : > { %v7833_v51 = vpop.f32.mrf.mxu0 }
 0x30f   : > { %v7834_v18 = vadd.f32 %v7833_v51, %v7832_v14 }
 0x310   : > { %v7835_v52 = vpop.f32.mrf.mxu0  ;;  %8373 = vmatpush3.bf16.msra.mxu1 %v9316_v49 }
 0x311   : > { %v2414_v19 = vpack.c.bf16 %v7834_v18, %v7831_v17  ;;  %8382 = vmatprep.subr.bf16.mxu1 %v9317_v15 }
 0x312   : > { %v7836_v53 = vpop.f32.mrf.mxu0 }
 0x313   : > { %8375 = vmatmul.mubr.bf16.vlgmr.msra.gmra.mxu1 %v2414_v19  ;;  %v7837_v23 = vadd.f32 %v7836_v53, %v7835_v52 }
 0x314   : > { %v7838_v22 = vpop.f32.mrf.mxu0  ;;  %8383 = vmatpush3.bf16.msra.mxu1 %v9317_v15 }
 0x315   : > { %8384 = vmatprep.subr.bf16.mxu1 %v9318_v20 }
 0x316   : > { %v7839_v56 = vpop.f32.mrf.mxu0 }
 0x317   : > { %v7840_v24 = vadd.f32 %v7839_v56, %v7838_v22 }
 0x318   : > { %v7841_v27 = vpop.f32.mrf.mxu0  ;;  %8385 = vmatpush3.bf16.msra.mxu1 %v9318_v20 }
 0x319   : > { %v2415_v28 = vpack.c.bf16 %v7840_v24, %v7837_v23  ;;  %8386 = vmatprep.subr.bf16.mxu1 %v9319_v54 }
 0x31a   : > { %v7842_v30 = vpop.f32.mrf.mxu0 }
 0x31b   : > { %8378 = vmatprep.mubr.bf16.mxu1 %v2415_v28  ;;  %v7843_v36 = vadd.f32 %v7842_v30, %v7841_v27  ;;  %v10538_v27 = vpop.f32.mrf.mxu1 }
 0x31c   : > { %v7844_v32 = vpop.f32.mrf.mxu0  ;;  %8387 = vmatpush3.bf16.msra.mxu1 %v9319_v54 }
 0x31d   : > { %8388 = vmatprep.subr.bf16.mxu1 %v9320_v29 }
 0x31e   : > { %v7845_v35 = vpop.f32.mrf.mxu0 }
 0x31f   : > { %v7846_v37 = vadd.f32 %v7845_v35, %v7844_v32 }
 0x320   : > { %v7875_v38 = vpop.f32.mrf.mxu0  ;;  %8389 = vmatpush3.bf16.msra.mxu1 %v9320_v29 }
 0x321   : > { %v2416_v40 = vpack.c.bf16 %v7846_v37, %v7843_v36  ;;  %8390 = vmatprep.subr.bf16.mxu1 %v9321_v33 }
 0x322   : > { %v7876_v42 = vpop.f32.mrf.mxu0 }
 0x323   : > { %8379 = vmatmul.mubr.bf16.gmra.mxu1 %v2416_v40  ;;  %v7877_v47 = vadd.f32 %v7876_v42, %v7875_v38 }
 0x324   : > { %v7878_v43 = vpop.f32.mrf.mxu0  ;;  %8391 = vmatpush3.bf16.msra.mxu1 %v9321_v33 }
 0x325   : > { %8392 = vmatprep.subr.bf16.mxu1 %v9322_v41 }
 0x326   : > { %v7879_v46 = vpop.f32.mrf.mxu0 }
 0x327   : > { %v7880_v55 = vadd.f32 %v7879_v46, %v7878_v43 }
 0x328   : > { %v7881_v57 = vpop.f32.mrf.mxu0  ;;  %8393 = vmatpush3.bf16.msra.mxu1 %v9322_v41 }
 0x329   : > { %v2669_v59 = vpack.c.bf16 %v7880_v55, %v7877_v47  ;;  %8394 = vmatprep.subr.bf16.mxu1 %v9323_v45 }
 0x32a   : > { %v7882_v60 = vpop.f32.mrf.mxu0 }
 0x32b   : > { %8398 = vmatprep.mubr.bf16.mxu1 %v2669_v59  ;;  %v7883_v1 = vadd.f32 %v7882_v60, %v7881_v57 }
 0x32c   : > { %v7884_v61 = vpop.f32.mrf.mxu0  ;;  %8395 = vmatpush3.bf16.msra.mxu1 %v9323_v45 }
 0x32d   : > { %8396 = vmatprep.subr.bf16.mxu1 %v9324_v25 }
 0x32e   : > { %v7885_v63 = vpop.f32.mrf.mxu0 }
 0x32f   : > { %v7886_v0 = vadd.f32 %v7885_v63, %v7884_v61 }
 0x330   : > { %v7887_v3 = vpop.f32.mrf.mxu0  ;;  %8397 = vmatpush3.bf16.msra.mxu1 %v9324_v25 }
 0x331   : > { %v2670_v4 = vpack.c.bf16 %v7886_v0, %v7883_v1 }
 0x332   : > { %v7888_v58 = vpop.f32.mrf.mxu0 }
 0x333   : > { %8399 = vmatmul.mubr.bf16.vlgmr.msra.gmra.mxu1 %v2670_v4  ;;  %v7889_v26 = vadd.f32 %v7888_v58, %v7887_v3 }
 0x334   : > { %v7890_v16 = vpop.f32.mrf.mxu0 }
 0x336   : > { %v7891_v21 = vpop.f32.mrf.mxu0 }
 0x337   : > { %v7892_v8 = vadd.f32 %v7891_v21, %v7890_v16 }
 0x338   : > { %v7893_v34 = vpop.f32.mrf.mxu0 }
 0x339   : > { %v2671_v39 = vpack.c.bf16 %v7892_v8, %v7889_v26 }
 0x33a   : > { %v7894_v9 = vpop.f32.mrf.mxu0 }
 0x33b   : > { %8402 = vmatprep.mubr.bf16.mxu1 %v2671_v39  ;;  %v7895_v48 = vadd.f32 %v7894_v9, %v7893_v34 }
 0x33c   : > { %v7896_v10 = vpop.f32.mrf.mxu0 }
 0x33e   : > { %v7897_v11 = vpop.f32.mrf.mxu0 }
 0x33f   : > { %v7898_v49 = vadd.f32 %v7897_v11, %v7896_v10  ;;  %v10025_v11 = vmov 0.0  }
 0x340   : > { %v7927_v50 = vpop.f32.mrf.mxu0  ;;  %8430 = vmatprep.subr.bf16.mxu1 %v10025_v11  ;;  %8442 = vmatprep.subr.bf16.mxu0 %v10025_v11 }
 0x341   : > { %v2672_v14 = vpack.c.bf16 %v7898_v49, %v7895_v48 }
 0x342   : > { %v7928_v15 = vpop.f32.mrf.mxu0 }
 0x343   : > { %8403 = vmatmul.mubr.bf16.gmra.mxu1 %v2672_v14  ;;  %v7929_v18 = vadd.f32 %v7928_v15, %v7927_v50 }
 0x344   : > { %v7930_v51 = vpop.f32.mrf.mxu0  ;;  %8438 = vmatprep.mubr.msk.bf16.mxu1 %vm10026_vm0, %v10025_v11 }
 0x346   : > { %v7931_v17 = vpop.f32.mrf.mxu0 }
 0x347   : > { %v7932_v52 = vadd.f32 %v7931_v17, %v7930_v51 }
 0x348   : > { %v7933_v19 = vpop.f32.mrf.mxu0 }
 0x349   : > { %v2925_v20 = vpack.c.bf16 %v7932_v52, %v7929_v18 }
 0x34a   : > { %v7934_v53 = vpop.f32.mrf.mxu0 }
 0x34b   : > { %8422 = vmatprep.mubr.bf16.mxu0 %v2925_v20  ;;  %v7935_v56 = vadd.f32 %v7934_v53, %v7933_v19 }
 0x34c   : > { %v7936_v22 = vpop.f32.mrf.mxu0 }
 0x34e   : > { %v7937_v54 = vpop.f32.mrf.mxu0 }
 0x34f   : > { %v7938_v23 = vadd.f32 %v7937_v54, %v7936_v22 }
 0x350   : > { %v7939_v24 = vpop.f32.mrf.mxu0 }
 0x351   : > { %v2926_v28 = vpack.c.bf16 %v7938_v23, %v7935_v56 }
 0x352   : > { %v7940_v29 = vpop.f32.mrf.mxu0 }
 0x353   : > { %v8280_v30 = vpop.f32.mrf.mxu1  ;;  %8423 = vmatmul.mubr.bf16.vlgmr.msra.gmra.mxu0 %v2926_v28  ;;  %v7941_v38 = vadd.f32 %v7940_v29, %v7939_v24 }
 0x354   : > { %v1525_v32 = vadd.f32 %v8280_v30, %v10504_v62  ;;  %v7942_v33 = vpop.f32.mrf.mxu0 }
 0x355   : > { %v1492_v35 = vpop.f32.mrf.mxu1 }
 0x356   : > { %v1523_v36 = vadd.f32 %v1492_v35, %v10508_v2  ;;  %v7943_v37 = vpop.f32.mrf.mxu0 }
 0x357   : > { %v7944_v40 = vadd.f32 %v7943_v37, %v7942_v33  ;;  %v8281_v41 = vpop.f32.mrf.mxu1 }
 0x358   : > { %v1526_v42 = vadd.f32 %v8281_v41, %v10510_v5  ;;  %v7945_v43 = vpop.f32.mrf.mxu0 }
 0x359   : > { %v2927_v45 = vpack.c.bf16 %v7944_v40, %v7941_v38  ;;  %v1495_v25 = vpop.f32.mrf.mxu1 }
 0x35a   : > { %v7946_v46 = vpop.f32.mrf.mxu0 }
 0x35b   : > { %8426 = vmatprep.mubr.bf16.mxu0 %v2927_v45  ;;  %v7947_v57 = vadd.f32 %v7946_v46, %v7945_v43 }
 0x35c   : > { %v7948_v47 = vpop.f32.mrf.mxu0 }
 0x35e   : > { %v7949_v55 = vpop.f32.mrf.mxu0 }
 0x35f   : > { %v7950_v59 = vadd.f32 %v7949_v55, %v7948_v47 }
 0x361   : > { %v2928_v62 = vpack.c.bf16 %v7950_v59, %v7947_v57 }
 0x363   : > { %v8284_v60 = vpop.f32.mrf.mxu1  ;;  %8427 = vmatmul.mubr.bf16.gmra.mxu0 %v2928_v62 }
 0x364   : > { %v10544_v2 = vadd.f32 %v8284_v60, %v10522_v31  ;;  %8450 = vmatprep.mubr.msk.bf16.mxu0 %vm10026_vm0, %v10025_v11 }
 0x365   : > { %v1508_v61 = vpop.f32.mrf.mxu1 }
 0x366   : > { %v10547_v63 = vadd.f32 %v1508_v61, %v10526_v44 }
 0x367   : > { %v8285_v5 = vpop.f32.mrf.mxu1 }
 0x368   : > { %v10550_v1 = vadd.f32 %v8285_v5, %v10528_v12 }
 0x369   : > { %v10552_v0 = vpop.f32.mrf.mxu1 }
 0x373   : > { %v8304_v3 = vpop.f32.mrf.mxu1 }
 0x374   : > { %v1781_v4 = vadd.f32 %v8304_v3, %v1525_v32 }
 0x375   : > { %v1748_v58 = vpop.f32.mrf.mxu1 }
 0x376   : > { %v1779_v16 = vadd.f32 %v1748_v58, %v1523_v36  ;;  %v1248_v36 = vadd.f32 %v10519_v7, %v10517_v6  ;;  %v7214_v6 = vld [vmem:[%s11211_s3] ss:$0 sm:$0xff] }
 0x377   : > { %v8305_v21 = vpop.f32.mrf.mxu1 }
 0x378   : > { %v1782_v26 = vadd.f32 %v8305_v21, %v1526_v42  ;;  %v1524_v40 = vadd.f32 %v1495_v25, %v1248_v36 }
 0x379   : > { %v1751_v8 = vpop.f32.mrf.mxu1 }
 0x37a   : > { %v1780_v42 = vadd.f32 %v1751_v8, %v1524_v40 }
 0x383   : > { %v10554_v34 = vpop.f32.mrf.mxu1 }
 0x385   : > { %v10556_v31 = vpop.f32.mrf.mxu1 }
 0x387   : > { %v10558_v39 = vpop.f32.mrf.mxu1 }
 0x389   : > { %v10560_v44 = vpop.f32.mrf.mxu1 }
 0x393   : > { %v8328_v9 = vpop.f32.mrf.mxu1 }
 0x394   : > { %v2037_v37 = vadd.f32 %v8328_v9, %v1781_v4 }
 0x395   : > { %v2004_v12 = vpop.f32.mrf.mxu1 }
 0x396   : > { %v2035_v10 = vadd.f32 %v2004_v12, %v1779_v16 }
 0x397   : > { %v8329_v48 = vpop.f32.mrf.mxu1 }
 0x398   : > { %v2038_v43 = vadd.f32 %v8329_v48, %v1782_v26 }
 0x399   : > { %v2007_v49 = vpop.f32.mrf.mxu1 }
 0x39a   : > { %v2036_v55 = vadd.f32 %v2007_v49, %v1780_v42  ;;  %v1785_v49 = vadd.f32 %v10554_v34, %v10544_v2 }
 0x3a3   : > { %v8332_v50 = vpop.f32.mrf.mxu1 }
 0x3a5   : > { %v10568_v14 = vpop.f32.mrf.mxu1 }
 0x3a7   : > { %v10570_v15 = vpop.f32.mrf.mxu1 }
 0x3a9   : > { %v10572_v51 = vpop.f32.mrf.mxu1 }
 0x3b3   : > { %v8352_v17 = vpop.f32.mrf.mxu1 }
 0x3b4   : > { %v2293_v41 = vadd.f32 %v8352_v17, %v2037_v37  ;;  %v1786_v37 = vadd.f32 %v10558_v39, %v10550_v1 }
 0x3b5   : > { %v2260_v18 = vpop.f32.mrf.mxu1 }
 0x3b6   : > { %v2291_v45 = vadd.f32 %v2260_v18, %v2035_v10 }
 0x3b7   : > { %v8353_v52 = vpop.f32.mrf.mxu1 }
 0x3b8   : > { %v2294_v57 = vadd.f32 %v8353_v52, %v2038_v43 }
 0x3b9   : > { %v2263_v19 = vpop.f32.mrf.mxu1 }
 0x3ba   : > { %v2292_v61 = vadd.f32 %v2263_v19, %v2036_v55  ;;  %v1264_v19 = vadd.f32 %v10538_v27, %v10535_v13 }
 0x3bc   : > { %v1528_v36 = vadd.f32 %v10552_v0, %v1264_v19  ;;  %v9347_v19 = vld [vmem:[#allocation10 + $0x48] sm:$0xff]  }
 0x3be   : > { %v1784_v27 = vadd.f32 %v10560_v44, %v1528_v36 }
 0x3c0   : > { %v2040_v1 = vadd.f32 %v10572_v51, %v1784_v27 }
 0x3c3   : > { %v8356_v20 = vpop.f32.mrf.mxu1 }
 0x3c5   : > { %v10574_v53 = vpop.f32.mrf.mxu1 }
 0x3c7   : > { %v10576_v22 = vpop.f32.mrf.mxu1 }
 0x3c9   : > { %v10578_v54 = vpop.f32.mrf.mxu1 }
 0x3d3   : > { %v8376_v56 = vpop.f32.mrf.mxu1 }
 0x3d4   : > { %v2549_v46 = vadd.f32 %v8376_v56, %v2293_v41  ;;  %v1783_v56 = vadd.f32 %v10556_v31, %v10547_v63  ;;  %v2042_v63 = vadd.f32 %v10570_v15, %v1786_v37 }
 0x3d5   : > { %v2516_v23 = vpop.f32.mrf.mxu1 }
 0x3d6   : > { %v2547_v59 = vadd.f32 %v2516_v23, %v2291_v45  ;;  %v2041_v23 = vadd.f32 %v8332_v50, %v1785_v49  ;;  %v2039_v2 = vadd.f32 %v10568_v14, %v1783_v56  ;;  %v2298_v39 = vadd.f32 %v10576_v22, %v2042_v63  ;;  %v9343_v49 = vld [vmem:[#allocation10 + $0x58] sm:$0xff]   ;;  %v9348_v56 = vld [vmem:[#allocation10 + $0x8] sm:$0xff]  }
 0x3d7   : > { %v8377_v24 = vpop.f32.mrf.mxu1  ;;  %v2296_v45 = vadd.f32 %v10578_v54, %v2040_v1  ;;  %v9352_v1 = vld [vmem:[#allocation8 + $0x18] sm:$0xff]  }
 0x3d8   : > { %v2550_v5 = vadd.f32 %v8377_v24, %v2294_v57  ;;  %v2295_v31 = vadd.f32 %v10574_v53, %v2039_v2 }
 0x3d9   : > { %v2519_v28 = vpop.f32.mrf.mxu1 }
 0x3da   : > { %v2548_v25 = vadd.f32 %v2519_v28, %v2292_v61 }
 0x3e3   : > { %v8380_v29 = vpop.f32.mrf.mxu1 }
 0x3e5   : > { %v2532_v30 = vpop.f32.mrf.mxu1 }
 0x3e6   : > { %v2551_v14 = vadd.f32 %v2532_v30, %v2295_v31  ;;  %v9354_v31 = vld [vmem:[#allocation10 + $0xb0] sm:$0xff]  }
 0x3e7   : > { %v10580_v32 = vpop.f32.mrf.mxu1 }
 0x3e9   : > { %v10582_v33 = vpop.f32.mrf.mxu1 }
 0x3ea   : > { %v2552_v53 = vadd.f32 %v10582_v33, %v2296_v45  ;;  %v9333_v33 = vld [vmem:[#allocation8] sm:$0xff]   ;;  %v9360_v45 = vld [vmem:[#allocation10 + $0xf0] sm:$0xff]  }
 0x3f3   : > { %v8400_v35 = vpop.f32.mrf.mxu1 }
 0x3f4   : > { %v2805_v62 = vadd.f32 %v8400_v35, %v2549_v46  ;;  %v2554_v46 = vadd.f32 %v10580_v32, %v2298_v39  ;;  %v9356_v39 = vld [vmem:[#allocation10 + $0xa0] sm:$0xff]  }
 0x3f5   : > { %v2772_v38 = vpop.f32.mrf.mxu1 }
 0x3f6   : > { %v2803_v3 = vadd.f32 %v2772_v38, %v2547_v59  ;;  %v2297_v38 = vadd.f32 %v8356_v20, %v2041_v23  ;;  %v9349_v23 = vld [vmem:[#allocation10 + $0x40] sm:$0xff]  }
 0x3f7   : > { %v8401_v47 = vpop.f32.mrf.mxu1 }
 0x3f8   : > { %v2806_v4 = vadd.f32 %v8401_v47, %v2550_v5  ;;  %v2553_v50 = vadd.f32 %v8380_v29, %v2297_v38 }
 0x3f9   : > { %v2775_v16 = vpop.f32.mrf.mxu1 }
 0x3fa   : > { %v2804_v8 = vadd.f32 %v2775_v16, %v2548_v25 }
 0x403   : > { %v8404_v10 = vpop.f32.mrf.mxu1 }
 0x404   : > { %v2809_v20 = vadd.f32 %v8404_v10, %v2553_v50  ;;  %v9341_v10 = vld [vmem:[#allocation10 + $0x60] sm:$0xff]   ;;  %v9355_v50 = vld [vmem:[#allocation10 + $0xa8] sm:$0xff]  }
 0x405   : > { %v2788_v34 = vpop.f32.mrf.mxu1 }
 0x406   : > { %v2807_v44 = vadd.f32 %v2788_v34, %v2551_v14  ;;  %v9357_v14 = vld [vmem:[#allocation10 + $0x98] sm:$0xff]  }
 0x407   : > { %v8405_v0 = vpop.f32.mrf.mxu1 }
 0x408   : > { %v2810_v29 = vadd.f32 %v8405_v0, %v2554_v46  ;;  %v9351_v0 = vld [vmem:[#allocation8 + $0x10] sm:$0xff]  }
 0x409   : > { %v2791_v15 = vpop.f32.mrf.mxu1  ;;  %v9361_v46 = vld [vmem:[#allocation10 + $0x88] sm:$0xff]  }
 0x413   : > { %v8424_v60 = vpop.f32.mrf.mxu0 }
 0x414   : > { %v3061_v58 = vadd.f32 %v8424_v60, %v2805_v62  ;;  %v2808_v62 = vadd.f32 %v2791_v15, %v2552_v53  ;;  %v9364_v15 = vld [vmem:[#allocation10 + $0xe0] sm:$0xff]   ;;  %v9366_v53 = vld [vmem:[#allocation10 + $0xd0] sm:$0xff]  }
 0x415   : > { %v3028_v7 = vpop.f32.mrf.mxu0 }
 0x416   : > { %v3059_v21 = vadd.f32 %v3028_v7, %v2803_v3  ;;  %v3076_v9 = vadd.f32 %v7214_v6, %v3061_v58 }
 0x417   : > { %v8425_v26 = vpop.f32.mrf.mxu0 }
 0x418   : > { %v3062_v12 = vadd.f32 %v8425_v26, %v2806_v4  ;;  %v3074_v17 = vadd.f32 %v7214_v6, %v3059_v21  ;;  %v3084_v24 = vmax.f32 %v3076_v9, 0.0  ;;  %v9335_v4 = vld [vmem:[#allocation10 + $0x78] sm:$0xff]   ;;  %v9337_v26 = vld [vmem:[#allocation10 + $0x70] sm:$0xff]   ;;  %v9339_v9 = vld [vmem:[#allocation10 + $0x68] sm:$0xff]  }
 0x419   : > { %v3031_v48 = vpop.f32.mrf.mxu0  ;;  %v9336_v21 = vld [vmem:[#allocation10 + $0x38] sm:$0xff]  }
 0x41a   : > { %v3077_v18 = vadd.f32 %v7214_v6, %v3062_v12  ;;  %v3060_v52 = vadd.f32 %v3031_v48, %v2804_v8  ;;  %v3082_v40 = vmax.f32 %v3074_v17, 0.0  ;;  %v9338_v8 = vld [vmem:[#allocation10 + $0x30] sm:$0xff]   ;;  %v9340_v12 = vld [vmem:[#allocation10 + $0x28] sm:$0xff]   ;;  %v9342_v48 = vld [vmem:[#allocation10 + $0x20] sm:$0xff]  }
 0x41b   : > { %v9344_v17 = vld [vmem:[#allocation10 + $0x18] sm:$0xff]  }
 0x41c   : > { %v3085_v28 = vmax.f32 %v3077_v18, 0.0  ;;  %v3075_v35 = vadd.f32 %v7214_v6, %v3060_v52  ;;  %v9345_v18 = vld [vmem:[#allocation10 + $0x50] sm:$0xff]  }
 0x41d   : > { %v9346_v52 = vld [vmem:[#allocation10 + $0x10] sm:$0xff]  }
 0x41e   : > { %v10599_v41 = vpack.c.bf16 %v3085_v28, %v3084_v24  ;;  %v3083_v13 = vmax.f32 %v3075_v35, 0.0  ;;  %v9350_v24 = vld [vmem:[#allocation10] sm:$0xff]  }
 0x420   : > { %v10604_v42 = vpack.c.bf16 %v3083_v13, %v3082_v40  ;;  %v9353_v13 = vld [vmem:[#allocation10 + $0xb8] sm:$0xff]  }
 0x423   : > { %v8428_v43 = vpop.f32.mrf.mxu0 }
 0x424   : > { %v3065_v47 = vadd.f32 %v8428_v43, %v2809_v20  ;;  %v9358_v20 = vld [vmem:[#allocation10 + $0xf8] sm:$0xff]   ;;  %v9359_v43 = vld [vmem:[#allocation10 + $0x90] sm:$0xff]  }
 0x425   : > { %v3044_v55 = vpop.f32.mrf.mxu0 }
 0x426   : > { %v3063_v57 = vadd.f32 %v3044_v55, %v2807_v44  ;;  %v3080_v51 = vadd.f32 %v7214_v6, %v3065_v47  ;;  %v9362_v44 = vld [vmem:[#allocation10 + $0xe8] sm:$0xff]   ;;  %v9363_v47 = vld [vmem:[#allocation10 + $0x80] sm:$0xff]   ;;  %v9365_v55 = vld [vmem:[#allocation10 + $0xd8] sm:$0xff]  }
 0x427   : > { %v8429_v59 = vpop.f32.mrf.mxu0 }
 0x428   : > { %v3066_v60 = vadd.f32 %v8429_v59, %v2810_v29  ;;  %v3078_v30 = vadd.f32 %v7214_v6, %v3063_v57  ;;  %v3088_v3 = vmax.f32 %v3080_v51, 0.0  ;;  %v9367_v29 = vld [vmem:[#allocation10 + $0xc8] sm:$0xff]   ;;  %v9368_v57 = vld [vmem:[#allocation10 + $0xc0] sm:$0xff]  }
 0x429   : > { %v3047_v22 = vpop.f32.mrf.mxu0 }
 0x42a   : > { %v3081_v61 = vadd.f32 %v7214_v6, %v3066_v60  ;;  %v3064_v5 = vadd.f32 %v3047_v22, %v2808_v62  ;;  %v3086_v32 = vmax.f32 %v3078_v30, 0.0 }
 0x42c   : > { %v3089_v54 = vmax.f32 %v3081_v61, 0.0  ;;  %v3079_v58 = vadd.f32 %v7214_v6, %v3064_v5  ;;  %v9334_v6 = vld [vmem:[#allocation8 + $0x8] sm:$0xff]  }
 0x42e   : > { %v10611_v16 = vpack.c.bf16 %v3089_v54, %v3088_v3  ;;  %v3087_v7 = vmax.f32 %v3079_v58, 0.0 }
 0x430   : > { %v10613_v25 = vpack.c.bf16 %v3087_v7, %v3086_v32  ;;  %8431 = vmatpush3.bf16.msra.mxu1 %v10611_v16  ;;  %8443 = vmatpush3.bf16.msra.mxu0 %v10611_v16 }
 0x431   : > { %8432 = vmatprep.subr.bf16.mxu1 %v10025_v11  ;;  %8444 = vmatprep.subr.bf16.mxu0 %v10025_v11 }
 0x434   : > { %8433 = vmatpush3.bf16.msra.mxu1 %v10613_v25  ;;  %8445 = vmatpush3.bf16.msra.mxu0 %v10613_v25 }
 0x435   : > { %8434 = vmatprep.subr.bf16.mxu1 %v10025_v11  ;;  %8446 = vmatprep.subr.bf16.mxu0 %v10025_v11 }
 0x438   : > { %8435 = vmatpush3.bf16.msra.mxu1 %v10599_v41  ;;  %8447 = vmatpush3.bf16.msra.mxu0 %v10599_v41 }
 0x439   : > { %8436 = vmatprep.subr.bf16.mxu1 %v10025_v11  ;;  %8448 = vmatprep.subr.bf16.mxu0 %v10025_v11 }
 0x43c   : > { %8437 = vmatpush3.bf16.msra.mxu1 %v10604_v42  ;;  %8449 = vmatpush3.bf16.msra.mxu0 %v10604_v42 }
 0x43d   : > { %8454 = vmatprep.subr.bf16.mxu1 %v10025_v11  ;;  %8474 = vmatprep.subr.bf16.mxu0 %v10025_v11 }
 0x43f   : > { %8439 = vmatmul.mubr.msk.bf16.vlgmr.msra.gmra.mxu1 %vm3101_vm1, %v9333_v33  ;;  %8451 = vmatmul.mubr.msk.bf16.vlgmr.msra.gmra.mxu0 %vm3101_vm1, %v9334_v6 }
 0x440   : > { %8455 = vmatpush3.bf16.msra.mxu1 %v9335_v4  ;;  %8475 = vmatpush3.bf16.msra.mxu0 %v9336_v21 }
 0x441   : > { %8456 = vmatprep.subr.bf16.mxu1 %v10025_v11  ;;  %8476 = vmatprep.subr.bf16.mxu0 %v10025_v11 }
 0x442   : > { %8470 = vmatprep.mubr.msk.bf16.mxu1 %vm10026_vm0, %v10025_v11  ;;  %8490 = vmatprep.mubr.msk.bf16.mxu0 %vm10026_vm0, %v10025_v11 }
 0x444   : > { %8457 = vmatpush3.bf16.msra.mxu1 %v9337_v26  ;;  %8477 = vmatpush3.bf16.msra.mxu0 %v9338_v8  ;;  %v9369_v26 = vld [vmem:[#allocation8 + $0x20] sm:$0xff]  }
 0x445   : > { %8458 = vmatprep.subr.bf16.mxu1 %v10025_v11  ;;  %8478 = vmatprep.subr.bf16.mxu0 %v10025_v11 }
 0x448   : > { %8459 = vmatpush3.bf16.msra.mxu1 %v9339_v9  ;;  %8479 = vmatpush3.bf16.msra.mxu0 %v9340_v12  ;;  %v9371_v12 = vld [vmem:[#allocation10 + $0x138] sm:$0xff]  }
 0x449   : > { %8460 = vmatprep.subr.bf16.mxu1 %v10025_v11  ;;  %8480 = vmatprep.subr.bf16.mxu0 %v10025_v11 }
 0x44c   : > { %8461 = vmatpush3.bf16.msra.mxu1 %v9341_v10  ;;  %8481 = vmatpush3.bf16.msra.mxu0 %v9342_v48  ;;  %v9372_v48 = vld [vmem:[#allocation10 + $0x130] sm:$0xff]  }
 0x44d   : > { %8462 = vmatprep.subr.bf16.mxu1 %v10025_v11  ;;  %8482 = vmatprep.subr.bf16.mxu0 %v10025_v11 }
 0x450   : > { %8463 = vmatpush3.bf16.msra.mxu1 %v9343_v49  ;;  %8483 = vmatpush3.bf16.msra.mxu0 %v9344_v17  ;;  %v9373_v49 = vld [vmem:[#allocation10 + $0x128] sm:$0xff]   ;;  %v9370_v17 = vld [vmem:[#allocation8 + $0x28] sm:$0xff]  }
 0x451   : > { %8464 = vmatprep.subr.bf16.mxu1 %v10025_v11  ;;  %8484 = vmatprep.subr.bf16.mxu0 %v10025_v11 }
 0x454   : > { %8465 = vmatpush3.bf16.msra.mxu1 %v9345_v18  ;;  %8485 = vmatpush3.bf16.msra.mxu0 %v9346_v52  ;;  %v9374_v18 = vld [vmem:[#allocation10 + $0x120] sm:$0xff]   ;;  %v9375_v52 = vld [vmem:[#allocation10 + $0x118] sm:$0xff]  }
 0x455   : > { %8466 = vmatprep.subr.bf16.mxu1 %v10025_v11  ;;  %8486 = vmatprep.subr.bf16.mxu0 %v10025_v11 }
 0x458   : > { %8467 = vmatpush3.bf16.msra.mxu1 %v9347_v19  ;;  %8487 = vmatpush3.bf16.msra.mxu0 %v9348_v56  ;;  %v9376_v19 = vld [vmem:[#allocation10 + $0x178] sm:$0xff]   ;;  %v9377_v56 = vld [vmem:[#allocation10 + $0x110] sm:$0xff]  }
 0x459   : > { %8468 = vmatprep.subr.bf16.mxu1 %v10025_v11  ;;  %8488 = vmatprep.subr.bf16.mxu0 %v10025_v11 }
 0x45c   : > { %8469 = vmatpush3.bf16.msra.mxu1 %v9349_v23  ;;  %8489 = vmatpush3.bf16.msra.mxu0 %v9350_v24  ;;  %v9378_v23 = vld [vmem:[#allocation10 + $0x170] sm:$0xff]   ;;  %v9379_v24 = vld [vmem:[#allocation10 + $0x108] sm:$0xff]  }
 0x45d   : > { %8494 = vmatprep.subr.bf16.mxu1 %v10025_v11  ;;  %8506 = vmatprep.subr.bf16.mxu0 %v10025_v11 }
 0x4ff   : > { %v3139_v28 = vpop.f32.mrf.mxu1  ;;  %v3208_v35 = vpop.f32.mrf.mxu0 }
 0x501   : > { %v8440_v36 = vpop.f32.mrf.mxu1  ;;  %v8452_v37 = vpop.f32.mrf.mxu0 }
 0x502   : > { %v9382_v36 = vld [vmem:[#allocation10 + $0x160] sm:$0xff]   ;;  %v9383_v37 = vld [vmem:[#allocation10 + $0x158] sm:$0xff]  }
 0x503   : > { %v3142_v2 = vpop.f32.mrf.mxu1  ;;  %v3211_v34 = vpop.f32.mrf.mxu0 }
 0x504   : > { %v3146_v38 = vpack.c.bf16 %v3142_v2, %v3139_v28  ;;  %v3215_v40 = vpack.c.bf16 %v3211_v34, %v3208_v35  ;;  %v9380_v28 = vld [vmem:[#allocation10 + $0x168] sm:$0xff]   ;;  %v9381_v35 = vld [vmem:[#allocation10 + $0x100] sm:$0xff]   ;;  %v9384_v2 = vld [vmem:[#allocation10 + $0x150] sm:$0xff]  }
 0x505   : > { %v8453_v27 = vpop.f32.mrf.mxu0  ;;  %v8441_v63 = vpop.f32.mrf.mxu1  ;;  %v9385_v34 = vld [vmem:[#allocation10 + $0x148] sm:$0xff]  }
 0x506   : > { %8471 = vmatmul.mubr.bf16.vlgmr.msra.gmra.mxu1 %v3215_v40  ;;  %8491 = vmatmul.mubr.bf16.vlgmr.msra.gmra.mxu0 %v3146_v38  ;;  %v9386_v38 = vld [vmem:[#allocation10 + $0x140] sm:$0xff]  }
 0x507   : > { %8495 = vmatpush3.bf16.msra.mxu1 %v10611_v16  ;;  %8502 = vmatprep.mubr.msk.bf16.mxu1 %vm10026_vm0, %v10025_v11 }
 0x508   : > { %8496 = vmatprep.subr.bf16.mxu1 %v10025_v11  ;;  %8507 = vmatpush3.bf16.msra.mxu0 %v9353_v13 }
 0x509   : > { %8508 = vmatprep.subr.bf16.mxu0 %v10025_v11  ;;  %8522 = vmatprep.mubr.msk.bf16.mxu0 %vm10026_vm0, %v10025_v11 }
 0x50b   : > { %8497 = vmatpush3.bf16.msra.mxu1 %v10613_v25 }
 0x50c   : > { %8498 = vmatprep.subr.bf16.mxu1 %v10025_v11  ;;  %8509 = vmatpush3.bf16.msra.mxu0 %v9354_v31 }
 0x50d   : > { %8510 = vmatprep.subr.bf16.mxu0 %v10025_v11 }
 0x50f   : > { %8499 = vmatpush3.bf16.msra.mxu1 %v10599_v41 }
 0x510   : > { %8500 = vmatprep.subr.bf16.mxu1 %v10025_v11  ;;  %8511 = vmatpush3.bf16.msra.mxu0 %v9355_v50 }
 0x511   : > { %8512 = vmatprep.subr.bf16.mxu0 %v10025_v11 }
 0x513   : > { %8501 = vmatpush3.bf16.msra.mxu1 %v10604_v42 }
 0x514   : > { %8526 = vmatprep.subr.bf16.mxu1 %v10025_v11  ;;  %8513 = vmatpush3.bf16.msra.mxu0 %v9356_v39 }
 0x515   : > { %8514 = vmatprep.subr.bf16.mxu0 %v10025_v11 }
 0x516   : > { %8503 = vmatmul.mubr.msk.bf16.vlgmr.msra.gmra.mxu1 %vm3101_vm1, %v9351_v0 }
 0x517   : > { %8527 = vmatpush3.bf16.msra.mxu1 %v10611_v16  ;;  %8534 = vmatprep.mubr.msk.bf16.mxu1 %vm10026_vm0, %v10025_v11 }
 0x518   : > { %8528 = vmatprep.subr.bf16.mxu1 %v10025_v11  ;;  %8515 = vmatpush3.bf16.msra.mxu0 %v9357_v14 }
 0x519   : > { %8516 = vmatprep.subr.bf16.mxu0 %v10025_v11 }
 0x51b   : > { %8529 = vmatpush3.bf16.msra.mxu1 %v10613_v25 }
 0x51c   : > { %8530 = vmatprep.subr.bf16.mxu1 %v10025_v11  ;;  %8517 = vmatpush3.bf16.msra.mxu0 %v9359_v43 }
 0x51d   : > { %8518 = vmatprep.subr.bf16.mxu0 %v10025_v11 }
 0x51f   : > { %8531 = vmatpush3.bf16.msra.mxu1 %v10599_v41 }
 0x520   : > { %8532 = vmatprep.subr.bf16.mxu1 %v10025_v11  ;;  %8519 = vmatpush3.bf16.msra.mxu0 %v9361_v46 }
 0x521   : > { %8520 = vmatprep.subr.bf16.mxu0 %v10025_v11 }
 0x523   : > { %8533 = vmatpush3.bf16.msra.mxu1 %v10604_v42 }
 0x524   : > { %8538 = vmatprep.subr.bf16.mxu1 %v10025_v11  ;;  %8521 = vmatpush3.bf16.msra.mxu0 %v9363_v47 }
 0x525   : > { %8558 = vmatprep.subr.bf16.mxu0 %v10025_v11 }
 0x526   : > { %8535 = vmatmul.mubr.msk.bf16.vlgmr.msra.gmra.mxu1 %vm3101_vm1, %v9352_v1 }
 0x527   : > { %8554 = vmatprep.mubr.msk.bf16.mxu1 %vm10026_vm0, %v10025_v11  ;;  %8539 = vmatpush3.bf16.msra.mxu1 %v9358_v20 }
 0x528   : > { %8540 = vmatprep.subr.bf16.mxu1 %v10025_v11 }
 0x52b   : > { %8541 = vmatpush3.bf16.msra.mxu1 %v9360_v45 }
 0x52c   : > { %8542 = vmatprep.subr.bf16.mxu1 %v10025_v11 }
 0x52f   : > { %8543 = vmatpush3.bf16.msra.mxu1 %v9362_v44 }
 0x530   : > { %8544 = vmatprep.subr.bf16.mxu1 %v10025_v11 }
 0x533   : > { %8545 = vmatpush3.bf16.msra.mxu1 %v9364_v15 }
 0x534   : > { %8546 = vmatprep.subr.bf16.mxu1 %v10025_v11 }
 0x537   : > { %8547 = vmatpush3.bf16.msra.mxu1 %v9365_v55 }
 0x538   : > { %8548 = vmatprep.subr.bf16.mxu1 %v10025_v11 }
 0x53b   : > { %8549 = vmatpush3.bf16.msra.mxu1 %v9366_v53 }
 0x53c   : > { %8550 = vmatprep.subr.bf16.mxu1 %v10025_v11 }
 0x53f   : > { %8551 = vmatpush3.bf16.msra.mxu1 %v9367_v29  ;;  %v9387_v29 = vld [vmem:[#allocation8 + $0x30] sm:$0xff]  }
 0x540   : > { %8552 = vmatprep.subr.bf16.mxu1 %v10025_v11 }
 0x543   : > { %8553 = vmatpush3.bf16.msra.mxu1 %v9368_v57 }
 0x544   : > { %8590 = vmatprep.subr.bf16.mxu1 %v10025_v11 }
 0x5c6   : > { %v3315_v59 = vpop.f32.mrf.mxu1  ;;  %v3404_v62 = vpop.f32.mrf.mxu0 }
 0x5c7   : > { %v10695_v51 = vadd.f32 %v3404_v62, %v3315_v59  ;;  %v9389_v62 = vld [vmem:[#allocation10 + $0x1b8] sm:$0xff]  }
 0x5c8   : > { %v8472_v60 = vpop.f32.mrf.mxu1  ;;  %v8492_v22 = vpop.f32.mrf.mxu0 }
 0x5c9   : > { %v9390_v60 = vld [vmem:[#allocation10 + $0x1b0] sm:$0xff]   ;;  %v9391_v22 = vld [vmem:[#allocation10 + $0x1a8] sm:$0xff]  }
 0x5ca   : > { %v3318_v30 = vpop.f32.mrf.mxu1  ;;  %v3407_v61 = vpop.f32.mrf.mxu0 }
 0x5cb   : > { %v10697_v5 = vadd.f32 %v3407_v61, %v3318_v30  ;;  %v9388_v30 = vld [vmem:[#allocation8 + $0x38] sm:$0xff]   ;;  %v9392_v61 = vld [vmem:[#allocation10 + $0x1a0] sm:$0xff]  }
 0x5cc   : > { %v8473_v3 = vpop.f32.mrf.mxu1  ;;  %v8493_v54 = vpop.f32.mrf.mxu0 }
 0x5cd   : > { %v9394_v3 = vld [vmem:[#allocation10 + $0x1f8] sm:$0xff]   ;;  %v9395_v54 = vld [vmem:[#allocation10 + $0x190] sm:$0xff]  }
 0x5d6   : > { %v3456_v58 = vpop.f32.mrf.mxu1 }
 0x5d8   : > { %v8504_v32 = vpop.f32.mrf.mxu1 }
 0x5d9   : > { %v9397_v32 = vld [vmem:[#allocation10 + $0x188] sm:$0xff]  }
 0x5da   : > { %v3459_v7 = vpop.f32.mrf.mxu1 }
 0x5db   : > { %v3463_v33 = vpack.c.bf16 %v3459_v7, %v3456_v58  ;;  %v9396_v58 = vld [vmem:[#allocation10 + $0x1f0] sm:$0xff]   ;;  %v9398_v7 = vld [vmem:[#allocation10 + $0x1e8] sm:$0xff]  }
 0x5dc   : > { %v8505_v6 = vpop.f32.mrf.mxu1 }
 0x5dd   : > { %8523 = vmatmul.mubr.bf16.vlgmr.msra.gmra.mxu0 %v3463_v33  ;;  %v9399_v33 = vld [vmem:[#allocation10 + $0x180] sm:$0xff]  }
 0x5de   : > { %8559 = vmatpush3.bf16.msra.mxu0 %v10611_v16  ;;  %8566 = vmatprep.mubr.msk.bf16.mxu0 %vm10026_vm0, %v10025_v11  ;;  %v9400_v6 = vld [vmem:[#allocation10 + $0x1e0] sm:$0xff]  }
 0x5df   : > { %8560 = vmatprep.subr.bf16.mxu0 %v10025_v11 }
 0x5e2   : > { %8561 = vmatpush3.bf16.msra.mxu0 %v10613_v25 }
 0x5e3   : > { %8562 = vmatprep.subr.bf16.mxu0 %v10025_v11 }
 0x5e6   : > { %8563 = vmatpush3.bf16.msra.mxu0 %v10599_v41  ;;  %v3617_v4 = vpop.f32.mrf.mxu1 }
 0x5e7   : > { %8564 = vmatprep.subr.bf16.mxu0 %v10025_v11 }
 0x5e8   : > { %v8536_v21 = vpop.f32.mrf.mxu1 }
 0x5e9   : > { %v9402_v21 = vld [vmem:[#allocation10 + $0x1d0] sm:$0xff]  }
 0x5ea   : > { %8565 = vmatpush3.bf16.msra.mxu0 %v10604_v42  ;;  %v3620_v8 = vpop.f32.mrf.mxu1 }
 0x5eb   : > { %v3624_v9 = vpack.c.bf16 %v3620_v8, %v3617_v4  ;;  %8570 = vmatprep.subr.bf16.mxu0 %v10025_v11  ;;  %v9401_v4 = vld [vmem:[#allocation10 + $0x1d8] sm:$0xff]   ;;  %v9404_v8 = vld [vmem:[#allocation10 + $0x1c0] sm:$0xff]  }
 0x5ec   : > { %v8537_v10 = vpop.f32.mrf.mxu1 }
 0x5ed   : > { %8567 = vmatmul.mubr.msk.bf16.vlgmr.msra.gmra.mxu0 %vm3101_vm1, %v9369_v26  ;;  %8555 = vmatmul.mubr.bf16.vlgmr.msra.gmra.mxu1 %v3624_v9  ;;  %v9403_v26 = vld [vmem:[#allocation10 + $0x1c8] sm:$0xff]  }
 0x5ee   : > { %8591 = vmatpush3.bf16.msra.mxu1 %v10611_v16  ;;  %8598 = vmatprep.mubr.msk.bf16.mxu1 %vm10026_vm0, %v10025_v11 }
 0x5ef   : > { %8592 = vmatprep.subr.bf16.mxu1 %v10025_v11  ;;  %8571 = vmatpush3.bf16.msra.mxu0 %v9371_v12 }
 0x5f0   : > { %8572 = vmatprep.subr.bf16.mxu0 %v10025_v11  ;;  %8586 = vmatprep.mubr.msk.bf16.mxu0 %vm10026_vm0, %v10025_v11 }
 0x5f2   : > { %8593 = vmatpush3.bf16.msra.mxu1 %v10613_v25 }
 0x5f3   : > { %8594 = vmatprep.subr.bf16.mxu1 %v10025_v11  ;;  %8573 = vmatpush3.bf16.msra.mxu0 %v9372_v48 }
 0x5f4   : > { %8574 = vmatprep.subr.bf16.mxu0 %v10025_v11 }
 0x5f6   : > { %8595 = vmatpush3.bf16.msra.mxu1 %v10599_v41 }
 0x5f7   : > { %8596 = vmatprep.subr.bf16.mxu1 %v10025_v11  ;;  %8575 = vmatpush3.bf16.msra.mxu0 %v9373_v49 }
 0x5f8   : > { %8576 = vmatprep.subr.bf16.mxu0 %v10025_v11 }
 0x5fa   : > { %8597 = vmatpush3.bf16.msra.mxu1 %v10604_v42 }
 0x5fb   : > { %8602 = vmatprep.subr.bf16.mxu1 %v10025_v11  ;;  %8577 = vmatpush3.bf16.msra.mxu0 %v9374_v18 }
 0x5fc   : > { %8578 = vmatprep.subr.bf16.mxu0 %v10025_v11 }
 0x5fd   : > { %8599 = vmatmul.mubr.msk.bf16.vlgmr.msra.gmra.mxu1 %vm3101_vm1, %v9370_v17 }
 0x5fe   : > { %8618 = vmatprep.mubr.msk.bf16.mxu1 %vm10026_vm0, %v10025_v11  ;;  %8603 = vmatpush3.bf16.msra.mxu1 %v9376_v19 }
 0x5ff   : > { %8579 = vmatpush3.bf16.msra.mxu0 %v9375_v52  ;;  %8604 = vmatprep.subr.bf16.mxu1 %v10025_v11 }
 0x600   : > { %8580 = vmatprep.subr.bf16.mxu0 %v10025_v11 }
 0x602   : > { %8605 = vmatpush3.bf16.msra.mxu1 %v9378_v23 }
 0x603   : > { %8581 = vmatpush3.bf16.msra.mxu0 %v9377_v56  ;;  %8606 = vmatprep.subr.bf16.mxu1 %v10025_v11 }
 0x604   : > { %8582 = vmatprep.subr.bf16.mxu0 %v10025_v11 }
 0x606   : > { %8607 = vmatpush3.bf16.msra.mxu1 %v9380_v28 }
 0x607   : > { %8583 = vmatpush3.bf16.msra.mxu0 %v9379_v24  ;;  %8608 = vmatprep.subr.bf16.mxu1 %v10025_v11 }
 0x608   : > { %8584 = vmatprep.subr.bf16.mxu0 %v10025_v11 }
 0x60a   : > { %8609 = vmatpush3.bf16.msra.mxu1 %v9382_v36 }
 0x60b   : > { %8585 = vmatpush3.bf16.msra.mxu0 %v9381_v35  ;;  %8610 = vmatprep.subr.bf16.mxu1 %v10025_v11 }
 0x60c   : > { %8622 = vmatprep.subr.bf16.mxu0 %v10025_v11 }
 0x60e   : > { %8611 = vmatpush3.bf16.msra.mxu1 %v9383_v37 }
 0x60f   : > { %8612 = vmatprep.subr.bf16.mxu1 %v10025_v11 }
 0x612   : > { %8613 = vmatpush3.bf16.msra.mxu1 %v9384_v2 }
 0x613   : > { %8614 = vmatprep.subr.bf16.mxu1 %v10025_v11 }
 0x616   : > { %8615 = vmatpush3.bf16.msra.mxu1 %v9385_v34 }
 0x617   : > { %8616 = vmatprep.subr.bf16.mxu1 %v10025_v11 }
 0x61a   : > { %8617 = vmatpush3.bf16.msra.mxu1 %v9386_v38 }
 0x61b   : > { %8654 = vmatprep.subr.bf16.mxu1 %v10025_v11 }
 0x69d   : > { %v3563_v40 = vpop.f32.mrf.mxu0 }
 0x69e   : > { %v3570_v13 = vadd.f32 %v3563_v40, %v10695_v51  ;;  %v9405_v40 = vld [vmem:[#allocation8 + $0x40] sm:$0xff]  }
 0x69f   : > { %v8524_v27 = vpop.f32.mrf.mxu0 }
 0x6a1   : > { %v3566_v63 = vpop.f32.mrf.mxu0 }
 0x6a2   : > { %v3571_v31 = vadd.f32 %v3566_v63, %v10697_v5  ;;  %v9393_v5 = vld [vmem:[#allocation10 + $0x198] sm:$0xff]  }
 0x6a3   : > { %v8525_v50 = vpop.f32.mrf.mxu0 }
 0x6a4   : > { %v9411_v50 = vld [vmem:[#allocation10 + $0x210] sm:$0xff]  }
 0x6ad   : > { %v3778_v0 = vpop.f32.mrf.mxu0  ;;  %v3724_v1 = vpop.f32.mrf.mxu1 }
 0x6ae   : > { %v10743_v39 = vadd.f32 %v3724_v1, %v3570_v13  ;;  %v9413_v1 = vld [vmem:[#allocation10 + $0x200] sm:$0xff]  }
 0x6af   : > { %v8568_v14 = vpop.f32.mrf.mxu0  ;;  %v8556_v20 = vpop.f32.mrf.mxu1 }
 0x6b0   : > { %v9415_v14 = vld [vmem:[#allocation11 + $0x30] sm:$0xff]   ;;  %v9416_v20 = vld [vmem:[#allocation11 + $0x28] sm:$0xff]  }
 0x6b1   : > { %v3781_v43 = vpop.f32.mrf.mxu0  ;;  %v3727_v45 = vpop.f32.mrf.mxu1 }
 0x6b2   : > { %v3785_v46 = vpack.c.bf16 %v3781_v43, %v3778_v0  ;;  %v10745_v44 = vadd.f32 %v3727_v45, %v3571_v31  ;;  %v9410_v31 = vld [vmem:[#allocation10 + $0x218] sm:$0xff]   ;;  %v9412_v0 = vld [vmem:[#allocation10 + $0x208] sm:$0xff]   ;;  %v9417_v43 = vld [vmem:[#allocation11 + $0x20] sm:$0xff]  }
 0x6b3   : > { %v8569_v47 = vpop.f32.mrf.mxu0  ;;  %v8557_v15 = vpop.f32.mrf.mxu1  ;;  %v9418_v45 = vld [vmem:[#allocation11 + $0x18] sm:$0xff]  }
 0x6b4   : > { %8587 = vmatmul.mubr.bf16.vlgmr.msra.gmra.mxu0 %v3785_v46 }
 0x6b5   : > { %8623 = vmatpush3.bf16.msra.mxu0 %v10611_v16  ;;  %8630 = vmatprep.mubr.msk.bf16.mxu0 %vm10026_vm0, %v10025_v11 }
 0x6b6   : > { %8624 = vmatprep.subr.bf16.mxu0 %v10025_v11 }
 0x6b9   : > { %8625 = vmatpush3.bf16.msra.mxu0 %v10613_v25 }
 0x6ba   : > { %8626 = vmatprep.subr.bf16.mxu0 %v10025_v11 }
 0x6bd   : > { %8627 = vmatpush3.bf16.msra.mxu0 %v10599_v41  ;;  %v3939_v55 = vpop.f32.mrf.mxu1 }
 0x6be   : > { %8628 = vmatprep.subr.bf16.mxu0 %v10025_v11 }
 0x6bf   : > { %v8600_v53 = vpop.f32.mrf.mxu1 }
 0x6c1   : > { %8629 = vmatpush3.bf16.msra.mxu0 %v10604_v42  ;;  %v3942_v57 = vpop.f32.mrf.mxu1 }
 0x6c2   : > { %v3946_v59 = vpack.c.bf16 %v3942_v57, %v3939_v55  ;;  %8634 = vmatprep.subr.bf16.mxu0 %v10025_v11 }
 0x6c3   : > { %v8601_v51 = vpop.f32.mrf.mxu1 }
 0x6c4   : > { %8631 = vmatmul.mubr.msk.bf16.vlgmr.msra.gmra.mxu0 %vm3101_vm1, %v9387_v29  ;;  %8619 = vmatmul.mubr.bf16.vlgmr.msra.gmra.mxu1 %v3946_v59 }
 0x6c5   : > { %8655 = vmatpush3.bf16.msra.mxu1 %v10611_v16  ;;  %8662 = vmatprep.mubr.msk.bf16.mxu1 %vm10026_vm0, %v10025_v11 }
 0x6c6   : > { %8656 = vmatprep.subr.bf16.mxu1 %v10025_v11  ;;  %8635 = vmatpush3.bf16.msra.mxu0 %v9389_v62 }
 0x6c7   : > { %8636 = vmatprep.subr.bf16.mxu0 %v10025_v11  ;;  %8650 = vmatprep.mubr.msk.bf16.mxu0 %vm10026_vm0, %v10025_v11 }
 0x6c9   : > { %8657 = vmatpush3.bf16.msra.mxu1 %v10613_v25 }
 0x6ca   : > { %8658 = vmatprep.subr.bf16.mxu1 %v10025_v11  ;;  %8637 = vmatpush3.bf16.msra.mxu0 %v9390_v60 }
 0x6cb   : > { %8638 = vmatprep.subr.bf16.mxu0 %v10025_v11 }
 0x6cd   : > { %8659 = vmatpush3.bf16.msra.mxu1 %v10599_v41 }
 0x6ce   : > { %8660 = vmatprep.subr.bf16.mxu1 %v10025_v11  ;;  %8639 = vmatpush3.bf16.msra.mxu0 %v9391_v22 }
 0x6cf   : > { %8640 = vmatprep.subr.bf16.mxu0 %v10025_v11 }
 0x6d1   : > { %8661 = vmatpush3.bf16.msra.mxu1 %v10604_v42 }
 0x6d2   : > { %8666 = vmatprep.subr.bf16.mxu1 %v10025_v11  ;;  %8641 = vmatpush3.bf16.msra.mxu0 %v9392_v61 }
 0x6d3   : > { %8642 = vmatprep.subr.bf16.mxu0 %v10025_v11 }
 0x6d4   : > { %8663 = vmatmul.mubr.msk.bf16.vlgmr.msra.gmra.mxu1 %vm3101_vm1, %v9388_v30 }
 0x6d5   : > { %8682 = vmatprep.mubr.msk.bf16.mxu1 %vm10026_vm0, %v10025_v11  ;;  %8667 = vmatpush3.bf16.msra.mxu1 %v9394_v3 }
 0x6d6   : > { %8643 = vmatpush3.bf16.msra.mxu0 %v9393_v5  ;;  %8668 = vmatprep.subr.bf16.mxu1 %v10025_v11 }
 0x6d7   : > { %8644 = vmatprep.subr.bf16.mxu0 %v10025_v11 }
 0x6d9   : > { %8669 = vmatpush3.bf16.msra.mxu1 %v9396_v58  ;;  %v9420_v58 = vld [vmem:[#allocation11 + $0x8] sm:$0xff]  }
 0x6da   : > { %8645 = vmatpush3.bf16.msra.mxu0 %v9395_v54  ;;  %8670 = vmatprep.subr.bf16.mxu1 %v10025_v11  ;;  %v9419_v54 = vld [vmem:[#allocation11 + $0x10] sm:$0xff]  }
 0x6db   : > { %8646 = vmatprep.subr.bf16.mxu0 %v10025_v11 }
 0x6dd   : > { %8671 = vmatpush3.bf16.msra.mxu1 %v9398_v7 }
 0x6de   : > { %8647 = vmatpush3.bf16.msra.mxu0 %v9397_v32  ;;  %8672 = vmatprep.subr.bf16.mxu1 %v10025_v11  ;;  %v9421_v32 = vld [vmem:[#allocation11] sm:$0xff]  }
 0x6df   : > { %8648 = vmatprep.subr.bf16.mxu0 %v10025_v11 }
 0x6e1   : > { %8673 = vmatpush3.bf16.msra.mxu1 %v9400_v6  ;;  %v7305_v6 = vld [vmem:[%s11214_s6] ss:$0 sm:$0xff] }
 0x6e2   : > { %8649 = vmatpush3.bf16.msra.mxu0 %v9399_v33  ;;  %8674 = vmatprep.subr.bf16.mxu1 %v10025_v11 }
 0x6e3   : > { %8686 = vmatprep.subr.bf16.mxu0 %v10025_v11 }
 0x6e5   : > { %8675 = vmatpush3.bf16.msra.mxu1 %v9401_v4 }
 0x6e6   : > { %8676 = vmatprep.subr.bf16.mxu1 %v10025_v11 }
 0x6e9   : > { %8677 = vmatpush3.bf16.msra.mxu1 %v9402_v21 }
 0x6ea   : > { %8678 = vmatprep.subr.bf16.mxu1 %v10025_v11 }
 0x6ed   : > { %8679 = vmatpush3.bf16.msra.mxu1 %v9403_v26 }
 0x6ee   : > { %8680 = vmatprep.subr.bf16.mxu1 %v10025_v11 }
 0x6f1   : > { %8681 = vmatpush3.bf16.msra.mxu1 %v9404_v8 }
 0x6f2   : > { %8718 = vmatprep.subr.bf16.mxu1 %v10025_v11 }
 0x774   : > { %v3885_v9 = vpop.f32.mrf.mxu0 }
 0x775   : > { %v3892_v12 = vadd.f32 %v3885_v9, %v10743_v39  ;;  %v9414_v39 = vld [vmem:[#allocation11 + $0x38] sm:$0xff]  }
 0x776   : > { %v8588_v10 = vpop.f32.mrf.mxu0 }
 0x778   : > { %v3888_v48 = vpop.f32.mrf.mxu0 }
 0x779   : > { %v3893_v49 = vadd.f32 %v3888_v48, %v10745_v44 }
 0x77a   : > { %v8589_v17 = vpop.f32.mrf.mxu0 }
 0x784   : > { %v4100_v18 = vpop.f32.mrf.mxu0  ;;  %v4046_v52 = vpop.f32.mrf.mxu1 }
 0x785   : > { %v10791_v19 = vadd.f32 %v4046_v52, %v3892_v12 }
 0x786   : > { %v8632_v56 = vpop.f32.mrf.mxu0  ;;  %v8620_v23 = vpop.f32.mrf.mxu1 }
 0x788   : > { %v4103_v24 = vpop.f32.mrf.mxu0  ;;  %v4049_v28 = vpop.f32.mrf.mxu1 }
 0x789   : > { %v4107_v35 = vpack.c.bf16 %v4103_v24, %v4100_v18  ;;  %v10793_v36 = vadd.f32 %v4049_v28, %v3893_v49  ;;  %v7306_v18 = vld [vmem:[%s11216_s8] ss:$0 sm:$0xff] }
 0x78a   : > { %v8633_v37 = vpop.f32.mrf.mxu0  ;;  %v8621_v2 = vpop.f32.mrf.mxu1 }
 0x78b   : > { %8651 = vmatmul.mubr.bf16.vlgmr.msra.gmra.mxu0 %v4107_v35  ;;  %v9422_v35 = vld [vmem:[#allocation13] sm:$0xff]  }
 0x78c   : > { %8687 = vmatpush3.bf16.msra.mxu0 %v10611_v16  ;;  %8694 = vmatprep.mubr.msk.bf16.mxu0 %vm10026_vm0, %v10025_v11  ;;  %v9406_v16 = vld [vmem:[#allocation10 + $0x238] sm:$0xff]   ;;  %v9424_v37 = vld [vmem:[#allocation14 + $0x78] sm:$0xff]  }
 0x78d   : > { %8688 = vmatprep.subr.bf16.mxu0 %v10025_v11  ;;  %v9425_v2 = vld [vmem:[#allocation14 + $0x38] sm:$0xff]  }
 0x790   : > { %8689 = vmatpush3.bf16.msra.mxu0 %v10613_v25  ;;  %v9407_v25 = vld [vmem:[#allocation10 + $0x230] sm:$0xff]  }
 0x791   : > { %8690 = vmatprep.subr.bf16.mxu0 %v10025_v11 }
 0x794   : > { %8691 = vmatpush3.bf16.msra.mxu0 %v10599_v41  ;;  %v4261_v34 = vpop.f32.mrf.mxu1  ;;  %v9408_v41 = vld [vmem:[#allocation10 + $0x228] sm:$0xff]  }
 0x795   : > { %8692 = vmatprep.subr.bf16.mxu0 %v10025_v11 }
 0x796   : > { %v8664_v38 = vpop.f32.mrf.mxu1 }
 0x797   : > { %v9427_v38 = vld [vmem:[#allocation14 + $0x30] sm:$0xff]  }
 0x798   : > { %8693 = vmatpush3.bf16.msra.mxu0 %v10604_v42  ;;  %v4264_v13 = vpop.f32.mrf.mxu1  ;;  %v9409_v42 = vld [vmem:[#allocation10 + $0x220] sm:$0xff]  }
 0x799   : > { %v4268_v27 = vpack.c.bf16 %v4264_v13, %v4261_v34  ;;  %8698 = vmatprep.subr.bf16.mxu0 %v10025_v11  ;;  %v9426_v34 = vld [vmem:[#allocation14 + $0x70] sm:$0xff]   ;;  %v9429_v13 = vld [vmem:[#allocation14 + $0x28] sm:$0xff]  }
 0x79a   : > { %v8665_v63 = vpop.f32.mrf.mxu1 }
 0x79b   : > { %8695 = vmatmul.mubr.msk.bf16.vlgmr.msra.gmra.mxu0 %vm3101_vm1, %v9405_v40  ;;  %8683 = vmatmul.mubr.bf16.vlgmr.msra.gmra.mxu1 %v4268_v27  ;;  %v9428_v40 = vld [vmem:[#allocation14 + $0x68] sm:$0xff]   ;;  %v9431_v27 = vld [vmem:[#allocation14 + $0x20] sm:$0xff]   ;;  %v9432_v63 = vld [vmem:[#allocation14 + $0x58] sm:$0xff]  }
 0x79c   : > { %8699 = vmatpush3.bf16.msra.mxu0 %v9406_v16  ;;  %8714 = vmatprep.mubr.msk.bf16.mxu0 %vm10026_vm0, %v10025_v11  ;;  %v9430_v16 = vld [vmem:[#allocation14 + $0x60] sm:$0xff]  }
 0x79d   : > { %8700 = vmatprep.subr.bf16.mxu0 %v10025_v11  ;;  %8734 = vmatprep.mubr.msk.bf16.mxu1 %vm10026_vm0, %v10025_v11 }
 0x79e   : > { %8719 = vmatpush3.bf16.msra.mxu1 %v9414_v39 }
 0x79f   : > { %8720 = vmatprep.subr.bf16.mxu1 %v10025_v11 }
 0x7a0   : > { %8701 = vmatpush3.bf16.msra.mxu0 %v9407_v25  ;;  %v9433_v25 = vld [vmem:[#allocation14 + $0x18] sm:$0xff]  }
 0x7a1   : > { %8702 = vmatprep.subr.bf16.mxu0 %v10025_v11 }
 0x7a2   : > { %8721 = vmatpush3.bf16.msra.mxu1 %v9415_v14 }
 0x7a3   : > { %8722 = vmatprep.subr.bf16.mxu1 %v10025_v11 }
 0x7a4   : > { %8703 = vmatpush3.bf16.msra.mxu0 %v9408_v41  ;;  %v9434_v41 = vld [vmem:[#allocation14 + $0x50] sm:$0xff]  }
 0x7a5   : > { %8704 = vmatprep.subr.bf16.mxu0 %v10025_v11 }
 0x7a6   : > { %8723 = vmatpush3.bf16.msra.mxu1 %v9416_v20 }
 0x7a7   : > { %8724 = vmatprep.subr.bf16.mxu1 %v10025_v11 }
 0x7a8   : > { %8705 = vmatpush3.bf16.msra.mxu0 %v9409_v42  ;;  %v9435_v42 = vld [vmem:[#allocation14 + $0x10] sm:$0xff]  }
 0x7a9   : > { %8706 = vmatprep.subr.bf16.mxu0 %v10025_v11 }
 0x7aa   : > { %8725 = vmatpush3.bf16.msra.mxu1 %v9417_v43 }
 0x7ab   : > { %8726 = vmatprep.subr.bf16.mxu1 %v10025_v11 }
 0x7ac   : > { %8707 = vmatpush3.bf16.msra.mxu0 %v9410_v31  ;;  %v9436_v31 = vld [vmem:[#allocation14 + $0x48] sm:$0xff]  }
 0x7ad   : > { %8708 = vmatprep.subr.bf16.mxu0 %v10025_v11 }
 0x7ae   : > { %8727 = vmatpush3.bf16.msra.mxu1 %v9418_v45 }
 0x7af   : > { %8728 = vmatprep.subr.bf16.mxu1 %v10025_v11 }
 0x7b0   : > { %8709 = vmatpush3.bf16.msra.mxu0 %v9411_v50  ;;  %v9437_v50 = vld [vmem:[#allocation14 + $0x8] sm:$0xff]  }
 0x7b1   : > { %8710 = vmatprep.subr.bf16.mxu0 %v10025_v11 }
 0x7b2   : > { %8729 = vmatpush3.bf16.msra.mxu1 %v9419_v54  ;;  %v9452_v54 = vld [vmem:[#allocation14 + $0x88] sm:$0xff]  }
 0x7b3   : > { %8730 = vmatprep.subr.bf16.mxu1 %v10025_v11 }
 0x7b4   : > { %8711 = vmatpush3.bf16.msra.mxu0 %v9412_v0  ;;  %v9438_v0 = vld [vmem:[#allocation14 + $0x40] sm:$0xff]  }
 0x7b5   : > { %8712 = vmatprep.subr.bf16.mxu0 %v10025_v11 }
 0x7b6   : > { %8731 = vmatpush3.bf16.msra.mxu1 %v9420_v58  ;;  %v9453_v58 = vld [vmem:[#allocation14 + $0xd8] sm:$0xff]  }
 0x7b7   : > { %8732 = vmatprep.subr.bf16.mxu1 %v10025_v11 }
 0x7b8   : > { %8713 = vmatpush3.bf16.msra.mxu0 %v9413_v1  ;;  %v9439_v1 = vld [vmem:[#allocation14] sm:$0xff]  }
 0x7b9   : > { %8738 = vmatprep.subr.bf16.mxu0 %v10025_v11 }
 0x7ba   : > { %8733 = vmatpush3.bf16.msra.mxu1 %v9421_v32  ;;  %v9454_v32 = vld [vmem:[#allocation14 + $0x80] sm:$0xff]  }
 0x7bb   : > { %8744 = vmatprep.subr.bf16.mxu1 %v10025_v11 }
 0x84b   : > { %v4207_v46 = vpop.f32.mrf.mxu0 }
 0x84c   : > { %v4214_v44 = vadd.f32 %v4207_v46, %v10791_v19 }
 0x84d   : > { %v8652_v47 = vpop.f32.mrf.mxu0 }
 0x84f   : > { %v4210_v15 = vpop.f32.mrf.mxu0 }
 0x850   : > { %v4215_v55 = vadd.f32 %v4210_v15, %v10793_v36  ;;  %v9423_v36 = vld [vmem:[#allocation13 + $0x8] sm:$0xff]   ;;  %v9442_v15 = vld [vmem:[#allocation14 + $0xb8] sm:$0xff]  }
 0x851   : > { %v8653_v53 = vpop.f32.mrf.mxu0 }
 0x85b   : > { %v4422_v29 = vpop.f32.mrf.mxu0  ;;  %v4368_v57 = vpop.f32.mrf.mxu1 }
 0x85c   : > { %v4375_v59 = vadd.f32 %v4368_v57, %v4214_v44  ;;  %v9440_v57 = vld [vmem:[#allocation13 + $0x10] sm:$0xff]  }
 0x85d   : > { %v8696_v62 = vpop.f32.mrf.mxu0  ;;  %v8684_v51 = vpop.f32.mrf.mxu1 }
 0x85e   : > { %v9446_v62 = vld [vmem:[#allocation14 + $0xa0] sm:$0xff]   ;;  %v9441_v51 = vld [vmem:[#allocation13 + $0x18] sm:$0xff]  }
 0x85f   : > { %v4425_v60 = vpop.f32.mrf.mxu0  ;;  %v4371_v22 = vpop.f32.mrf.mxu1 }
 0x860   : > { %v4429_v30 = vpack.c.bf16 %v4425_v60, %v4422_v29  ;;  %v4376_v61 = vadd.f32 %v4371_v22, %v4215_v55  ;;  %v9443_v29 = vld [vmem:[#allocation14 + $0xb0] sm:$0xff]   ;;  %v9445_v60 = vld [vmem:[#allocation14 + $0xf8] sm:$0xff]  }
 0x861   : > { %v8697_v5 = vpop.f32.mrf.mxu0  ;;  %v8685_v3 = vpop.f32.mrf.mxu1  ;;  %v9448_v22 = vld [vmem:[#allocation14 + $0x98] sm:$0xff]  }
 0x862   : > { %8715 = vmatmul.mubr.bf16.vlgmr.msra.gmra.mxu0 %v4429_v30  ;;  %v9447_v30 = vld [vmem:[#allocation14 + $0xf0] sm:$0xff]   ;;  %v9451_v3 = vld [vmem:[#allocation14 + $0xe0] sm:$0xff]  }
 0x863   : > { %8740 = vmatprep.mubr.msk.bf16.mxu0 %vm10026_vm0, %v10025_v11  ;;  %v9450_v5 = vld [vmem:[#allocation14 + $0x90] sm:$0xff]  }
 0x922   : > { %v4529_v7 = vpop.f32.mrf.mxu0 }
 0x923   : > { %v4536_v33 = vadd.f32 %v4529_v7, %v4375_v59  ;;  %v9444_v59 = vld [vmem:[#allocation14 + $0xa8] sm:$0xff]   ;;  %v9455_v7 = vld [vmem:[#allocation14 + $0xd0] sm:$0xff]  }
 0x924   : > { %v8716_v4 = vpop.f32.mrf.mxu0 }
 0x925   : > { %v4545_v26 = vadd.f32 %v7305_v6, %v4536_v33  ;;  %v9456_v33 = vld [vmem:[#allocation14 + $0xc8] sm:$0xff]  }
 0x926   : > { %v4532_v21 = vpop.f32.mrf.mxu0 }
 0x927   : > { %v4537_v8 = vadd.f32 %v4532_v21, %v4376_v61  ;;  %v4547_v10 = vmax.f32 %v4545_v26, 0.0  ;;  %v9449_v61 = vld [vmem:[#allocation14 + $0xe8] sm:$0xff]  }
 0x928   : > { %v8717_v9 = vpop.f32.mrf.mxu0 }
 0x929   : > { %v4546_v12 = vadd.f32 %v7305_v6, %v4537_v8  ;;  %v9457_v6 = vld [vmem:[#allocation14 + $0xc0] sm:$0xff]  }
 0x92b   : > { %v4548_v48 = vmax.f32 %v4546_v12, 0.0 }
 0x92d   : > { %v4549_v49 = vpack.c.bf16 %v4548_v48, %v4547_v10 }
 0x92f   : > { %8735 = vmatmul.mubr.bf16.vlgmr.msra.gmra.mxu1 %v4549_v49 }
 0x930   : > { %8746 = vmatprep.mubr.msk.bf16.mxu1 %vm10026_vm0, %v10025_v11 }
 0x9ef   : > { %v4655_v17 = vpop.f32.mrf.mxu1 }
 0x9f0   : > { %v4656_v56 = vadd.f32 %v7306_v18, %v4655_v17 }
 0x9f1   : > { %v8736_v52 = vpop.f32.mrf.mxu1 }
 0x9f3   : > { %v4658_v19 = vpop.f32.mrf.mxu1 }
 0x9f4   : > { %v4659_v23 = vadd.f32 %v7306_v18, %v4658_v19 }
 0x9f5   : > { %v8737_v24 = vpop.f32.mrf.mxu1 }
 0x9f6   : > { %v10838_v28 = vpack.c.bf16 %v4659_v23, %v4656_v56 }
 0x9f8   : > { %8739 = vmatpush3.bf16.msra.mxu0 %v10838_v28  ;;  %8745 = vmatpush3.bf16.msra.mxu1 %v10838_v28 }
 0x9f9   : > { %8750 = vmatprep.subr.bf16.mxu0 %v10025_v11  ;;  %8770 = vmatprep.subr.bf16.mxu1 %v10025_v11 }
 0x9fb   : > { %8741 = vmatmul.mubr.msk.bf16.vlgmr.msra.gmra.mxu0 %vm4670_vm2, %v9422_v35  ;;  %8747 = vmatmul.mubr.msk.bf16.vlgmr.msra.gmra.mxu1 %vm4670_vm2, %v9423_v36  ;;  %v9458_v36 = vld [vmem:[#allocation13 + $0x20] sm:$0xff]  }
 0x9fc   : > { %8751 = vmatpush3.bf16.msra.mxu0 %v9424_v37  ;;  %8771 = vmatpush3.bf16.msra.mxu1 %v9425_v2 }
 0x9fd   : > { %8752 = vmatprep.subr.bf16.mxu0 %v10025_v11  ;;  %8772 = vmatprep.subr.bf16.mxu1 %v10025_v11 }
 0x9fe   : > { %8766 = vmatprep.mubr.msk.bf16.mxu0 %vm10026_vm0, %v10025_v11  ;;  %8786 = vmatprep.mubr.msk.bf16.mxu1 %vm10026_vm0, %v10025_v11 }
 0xa00   : > { %8753 = vmatpush3.bf16.msra.mxu0 %v9426_v34  ;;  %8773 = vmatpush3.bf16.msra.mxu1 %v9427_v38  ;;  %v9460_v34 = vld [vmem:[#allocation14 + $0x138] sm:$0xff]  }
 0xa01   : > { %8754 = vmatprep.subr.bf16.mxu0 %v10025_v11  ;;  %8774 = vmatprep.subr.bf16.mxu1 %v10025_v11 }
 0xa04   : > { %8755 = vmatpush3.bf16.msra.mxu0 %v9428_v40  ;;  %8775 = vmatpush3.bf16.msra.mxu1 %v9429_v13  ;;  %v9461_v40 = vld [vmem:[#allocation14 + $0x130] sm:$0xff]   ;;  %v9459_v13 = vld [vmem:[#allocation13 + $0x28] sm:$0xff]  }
 0xa05   : > { %8756 = vmatprep.subr.bf16.mxu0 %v10025_v11  ;;  %8776 = vmatprep.subr.bf16.mxu1 %v10025_v11 }
 0xa08   : > { %8757 = vmatpush3.bf16.msra.mxu0 %v9430_v16  ;;  %8777 = vmatpush3.bf16.msra.mxu1 %v9431_v27  ;;  %v9463_v16 = vld [vmem:[#allocation14 + $0x178] sm:$0xff]   ;;  %v9462_v27 = vld [vmem:[#allocation14 + $0x128] sm:$0xff]  }
 0xa09   : > { %8758 = vmatprep.subr.bf16.mxu0 %v10025_v11  ;;  %8778 = vmatprep.subr.bf16.mxu1 %v10025_v11 }
 0xa0c   : > { %8759 = vmatpush3.bf16.msra.mxu0 %v9432_v63  ;;  %8779 = vmatpush3.bf16.msra.mxu1 %v9433_v25  ;;  %v9465_v63 = vld [vmem:[#allocation14 + $0x170] sm:$0xff]   ;;  %v9464_v25 = vld [vmem:[#allocation14 + $0x120] sm:$0xff]  }
 0xa0d   : > { %8760 = vmatprep.subr.bf16.mxu0 %v10025_v11  ;;  %8780 = vmatprep.subr.bf16.mxu1 %v10025_v11 }
 0xa10   : > { %8761 = vmatpush3.bf16.msra.mxu0 %v9434_v41  ;;  %8781 = vmatpush3.bf16.msra.mxu1 %v9435_v42  ;;  %v9467_v41 = vld [vmem:[#allocation14 + $0x168] sm:$0xff]   ;;  %v9466_v42 = vld [vmem:[#allocation14 + $0x118] sm:$0xff]  }
 0xa11   : > { %8762 = vmatprep.subr.bf16.mxu0 %v10025_v11  ;;  %8782 = vmatprep.subr.bf16.mxu1 %v10025_v11 }
 0xa14   : > { %8763 = vmatpush3.bf16.msra.mxu0 %v9436_v31  ;;  %8783 = vmatpush3.bf16.msra.mxu1 %v9437_v50  ;;  %v9468_v31 = vld [vmem:[#allocation14 + $0x110] sm:$0xff]   ;;  %v9469_v50 = vld [vmem:[#allocation14 + $0x160] sm:$0xff]  }
 0xa15   : > { %8764 = vmatprep.subr.bf16.mxu0 %v10025_v11  ;;  %8784 = vmatprep.subr.bf16.mxu1 %v10025_v11 }
 0xa18   : > { %8765 = vmatpush3.bf16.msra.mxu0 %v9438_v0  ;;  %8785 = vmatpush3.bf16.msra.mxu1 %v9439_v1  ;;  %v9470_v0 = vld [vmem:[#allocation14 + $0x108] sm:$0xff]   ;;  %v9471_v1 = vld [vmem:[#allocation14 + $0x158] sm:$0xff]  }
 0xa19   : > { %8790 = vmatprep.subr.bf16.mxu0 %v10025_v11  ;;  %8796 = vmatprep.subr.bf16.mxu1 %v10025_v11 }
 0xabb   : > { %v4708_v39 = vpop.f32.mrf.mxu0  ;;  %v4777_v14 = vpop.f32.mrf.mxu1 }
 0xabd   : > { %v8742_v20 = vpop.f32.mrf.mxu0  ;;  %v8748_v43 = vpop.f32.mrf.mxu1 }
 0xabe   : > { %v9474_v20 = vld [vmem:[#allocation14 + $0x148] sm:$0xff]   ;;  %v9475_v43 = vld [vmem:[#allocation14 + $0x140] sm:$0xff]  }
 0xabf   : > { %v4711_v45 = vpop.f32.mrf.mxu0  ;;  %v4780_v46 = vpop.f32.mrf.mxu1 }
 0xac0   : > { %v4715_v44 = vpack.c.bf16 %v4711_v45, %v4708_v39  ;;  %v4784_v47 = vpack.c.bf16 %v4780_v46, %v4777_v14  ;;  %v9472_v39 = vld [vmem:[#allocation14 + $0x100] sm:$0xff]   ;;  %v9473_v14 = vld [vmem:[#allocation14 + $0x150] sm:$0xff]  }
 0xac1   : > { %v8749_v55 = vpop.f32.mrf.mxu1  ;;  %v8743_v53 = vpop.f32.mrf.mxu0 }
 0xac2   : > { %8767 = vmatmul.mubr.bf16.vlgmr.msra.gmra.mxu0 %v4784_v47  ;;  %8787 = vmatmul.mubr.bf16.vlgmr.msra.gmra.mxu1 %v4715_v44 }
 0xac3   : > { %8791 = vmatpush3.bf16.msra.mxu0 %v10838_v28  ;;  %8792 = vmatprep.mubr.msk.bf16.mxu0 %vm10026_vm0, %v10025_v11 }
 0xac4   : > { %8816 = vmatprep.subr.bf16.mxu0 %v10025_v11  ;;  %8797 = vmatpush3.bf16.msra.mxu1 %v9442_v15 }
 0xac5   : > { %8798 = vmatprep.subr.bf16.mxu1 %v10025_v11  ;;  %8812 = vmatprep.mubr.msk.bf16.mxu1 %vm10026_vm0, %v10025_v11 }
 0xac8   : > { %8799 = vmatpush3.bf16.msra.mxu1 %v9443_v29 }
 0xac9   : > { %8800 = vmatprep.subr.bf16.mxu1 %v10025_v11 }
 0xaca   : > { %8793 = vmatmul.mubr.msk.bf16.vlgmr.msra.gmra.mxu0 %vm4670_vm2, %v9440_v57 }
 0xacb   : > { %8817 = vmatpush3.bf16.msra.mxu0 %v10838_v28  ;;  %8818 = vmatprep.mubr.msk.bf16.mxu0 %vm10026_vm0, %v10025_v11 }
 0xacc   : > { %8822 = vmatprep.subr.bf16.mxu0 %v10025_v11  ;;  %8801 = vmatpush3.bf16.msra.mxu1 %v9444_v59 }
 0xacd   : > { %8802 = vmatprep.subr.bf16.mxu1 %v10025_v11 }
 0xad0   : > { %8803 = vmatpush3.bf16.msra.mxu1 %v9446_v62 }
 0xad1   : > { %8804 = vmatprep.subr.bf16.mxu1 %v10025_v11 }
 0xad2   : > { %8819 = vmatmul.mubr.msk.bf16.vlgmr.msra.gmra.mxu0 %vm4670_vm2, %v9441_v51 }
 0xad3   : > { %8823 = vmatpush3.bf16.msra.mxu0 %v9445_v60  ;;  %8838 = vmatprep.mubr.msk.bf16.mxu0 %vm10026_vm0, %v10025_v11 }
 0xad4   : > { %8824 = vmatprep.subr.bf16.mxu0 %v10025_v11  ;;  %8805 = vmatpush3.bf16.msra.mxu1 %v9448_v22 }
 0xad5   : > { %8806 = vmatprep.subr.bf16.mxu1 %v10025_v11 }
 0xad7   : > { %8825 = vmatpush3.bf16.msra.mxu0 %v9447_v30 }
 0xad8   : > { %8826 = vmatprep.subr.bf16.mxu0 %v10025_v11  ;;  %8807 = vmatpush3.bf16.msra.mxu1 %v9450_v5 }
 0xad9   : > { %8808 = vmatprep.subr.bf16.mxu1 %v10025_v11 }
 0xadb   : > { %8827 = vmatpush3.bf16.msra.mxu0 %v9449_v61 }
 0xadc   : > { %8828 = vmatprep.subr.bf16.mxu0 %v10025_v11  ;;  %8809 = vmatpush3.bf16.msra.mxu1 %v9452_v54 }
 0xadd   : > { %8810 = vmatprep.subr.bf16.mxu1 %v10025_v11 }
 0xadf   : > { %8829 = vmatpush3.bf16.msra.mxu0 %v9451_v3 }
 0xae0   : > { %8830 = vmatprep.subr.bf16.mxu0 %v10025_v11  ;;  %8811 = vmatpush3.bf16.msra.mxu1 %v9454_v32 }
 0xae1   : > { %8842 = vmatprep.subr.bf16.mxu1 %v10025_v11 }
 0xae3   : > { %8831 = vmatpush3.bf16.msra.mxu0 %v9453_v58  ;;  %v9476_v58 = vld [vmem:[#allocation13 + $0x30] sm:$0xff]  }
 0xae4   : > { %8832 = vmatprep.subr.bf16.mxu0 %v10025_v11 }
 0xae7   : > { %8833 = vmatpush3.bf16.msra.mxu0 %v9455_v7 }
 0xae8   : > { %8834 = vmatprep.subr.bf16.mxu0 %v10025_v11 }
 0xaeb   : > { %8835 = vmatpush3.bf16.msra.mxu0 %v9456_v33  ;;  %v9478_v33 = vld [vmem:[#allocation14 + $0x1b8] sm:$0xff]  }
 0xaec   : > { %8836 = vmatprep.subr.bf16.mxu0 %v10025_v11 }
 0xaef   : > { %8837 = vmatpush3.bf16.msra.mxu0 %v9457_v6 }
 0xaf0   : > { %8868 = vmatprep.subr.bf16.mxu0 %v10025_v11 }
 0xb82   : > { %v4884_v4 = vpop.f32.mrf.mxu0  ;;  %v4973_v21 = vpop.f32.mrf.mxu1 }
 0xb83   : > { %v10896_v26 = vadd.f32 %v4973_v21, %v4884_v4  ;;  %v9479_v4 = vld [vmem:[#allocation14 + $0x1b0] sm:$0xff]  }
 0xb84   : > { %v8768_v8 = vpop.f32.mrf.mxu0  ;;  %v8788_v9 = vpop.f32.mrf.mxu1  ;;  %v9477_v21 = vld [vmem:[#allocation13 + $0x38] sm:$0xff]  }
 0xb85   : > { %v9480_v8 = vld [vmem:[#allocation14 + $0x1a8] sm:$0xff]   ;;  %v9483_v9 = vld [vmem:[#allocation14 + $0x1f0] sm:$0xff]  }
 0xb86   : > { %v4887_v12 = vpop.f32.mrf.mxu0  ;;  %v4976_v10 = vpop.f32.mrf.mxu1 }
 0xb87   : > { %v10898_v48 = vadd.f32 %v4976_v10, %v4887_v12  ;;  %v9482_v12 = vld [vmem:[#allocation14 + $0x1a0] sm:$0xff]   ;;  %v9484_v10 = vld [vmem:[#allocation14 + $0x198] sm:$0xff]  }
 0xb88   : > { %v8769_v49 = vpop.f32.mrf.mxu0  ;;  %v8789_v17 = vpop.f32.mrf.mxu1 }
 0xb89   : > { %v9486_v49 = vld [vmem:[#allocation14 + $0x190] sm:$0xff]   ;;  %v9487_v17 = vld [vmem:[#allocation14 + $0x1e0] sm:$0xff]  }
 0xb8a   : > { %v5025_v18 = vpop.f32.mrf.mxu0 }
 0xb8c   : > { %v8794_v52 = vpop.f32.mrf.mxu0 }
 0xb8d   : > { %v9489_v52 = vld [vmem:[#allocation14 + $0x1d8] sm:$0xff]  }
 0xb8e   : > { %v5028_v19 = vpop.f32.mrf.mxu0 }
 0xb8f   : > { %v5032_v56 = vpack.c.bf16 %v5028_v19, %v5025_v18  ;;  %v9488_v18 = vld [vmem:[#allocation14 + $0x188] sm:$0xff]   ;;  %v9490_v19 = vld [vmem:[#allocation14 + $0x180] sm:$0xff]  }
 0xb90   : > { %v8795_v23 = vpop.f32.mrf.mxu0 }
 0xb91   : > { %8813 = vmatmul.mubr.bf16.vlgmr.msra.gmra.mxu1 %v5032_v56  ;;  %v9491_v56 = vld [vmem:[#allocation14 + $0x1d0] sm:$0xff]   ;;  %v9492_v23 = vld [vmem:[#allocation14 + $0x1c8] sm:$0xff]  }
 0xb92   : > { %8843 = vmatpush3.bf16.msra.mxu1 %v10838_v28  ;;  %v5186_v24 = vpop.f32.mrf.mxu0  ;;  %8844 = vmatprep.mubr.msk.bf16.mxu1 %vm10026_vm0, %v10025_v11 }
 0xb93   : > { %8848 = vmatprep.subr.bf16.mxu1 %v10025_v11 }
 0xb94   : > { %v8820_v35 = vpop.f32.mrf.mxu0 }
 0xb96   : > { %v5189_v37 = vpop.f32.mrf.mxu0 }
 0xb97   : > { %v5193_v2 = vpack.c.bf16 %v5189_v37, %v5186_v24  ;;  %v9493_v24 = vld [vmem:[#allocation14 + $0x1c0] sm:$0xff]  }
 0xb98   : > { %v8821_v38 = vpop.f32.mrf.mxu0 }
 0xb99   : > { %8839 = vmatmul.mubr.bf16.vlgmr.msra.gmra.mxu0 %v5193_v2  ;;  %8845 = vmatmul.mubr.msk.bf16.vlgmr.msra.gmra.mxu1 %vm4670_vm2, %v9458_v36 }
 0xb9a   : > { %8869 = vmatpush3.bf16.msra.mxu0 %v10838_v28  ;;  %8870 = vmatprep.mubr.msk.bf16.mxu0 %vm10026_vm0, %v10025_v11 }
 0xb9b   : > { %8849 = vmatpush3.bf16.msra.mxu1 %v9460_v34  ;;  %8874 = vmatprep.subr.bf16.mxu0 %v10025_v11 }
 0xb9c   : > { %8850 = vmatprep.subr.bf16.mxu1 %v10025_v11  ;;  %8864 = vmatprep.mubr.msk.bf16.mxu1 %vm10026_vm0, %v10025_v11 }
 0xb9f   : > { %8851 = vmatpush3.bf16.msra.mxu1 %v9461_v40 }
 0xba0   : > { %8852 = vmatprep.subr.bf16.mxu1 %v10025_v11 }
 0xba1   : > { %8871 = vmatmul.mubr.msk.bf16.vlgmr.msra.gmra.mxu0 %vm4670_vm2, %v9459_v13 }
 0xba2   : > { %8875 = vmatpush3.bf16.msra.mxu0 %v9463_v16  ;;  %8890 = vmatprep.mubr.msk.bf16.mxu0 %vm10026_vm0, %v10025_v11 }
 0xba3   : > { %8853 = vmatpush3.bf16.msra.mxu1 %v9462_v27  ;;  %8876 = vmatprep.subr.bf16.mxu0 %v10025_v11 }
 0xba4   : > { %8854 = vmatprep.subr.bf16.mxu1 %v10025_v11 }
 0xba6   : > { %8877 = vmatpush3.bf16.msra.mxu0 %v9465_v63 }
 0xba7   : > { %8855 = vmatpush3.bf16.msra.mxu1 %v9464_v25  ;;  %8878 = vmatprep.subr.bf16.mxu0 %v10025_v11 }
 0xba8   : > { %8856 = vmatprep.subr.bf16.mxu1 %v10025_v11 }
 0xbaa   : > { %8879 = vmatpush3.bf16.msra.mxu0 %v9467_v41 }
 0xbab   : > { %8857 = vmatpush3.bf16.msra.mxu1 %v9466_v42  ;;  %8880 = vmatprep.subr.bf16.mxu0 %v10025_v11 }
 0xbac   : > { %8858 = vmatprep.subr.bf16.mxu1 %v10025_v11 }
 0xbae   : > { %8881 = vmatpush3.bf16.msra.mxu0 %v9469_v50 }
 0xbaf   : > { %8859 = vmatpush3.bf16.msra.mxu1 %v9468_v31  ;;  %8882 = vmatprep.subr.bf16.mxu0 %v10025_v11 }
 0xbb0   : > { %8860 = vmatprep.subr.bf16.mxu1 %v10025_v11 }
 0xbb2   : > { %8883 = vmatpush3.bf16.msra.mxu0 %v9471_v1 }
 0xbb3   : > { %8861 = vmatpush3.bf16.msra.mxu1 %v9470_v0  ;;  %8884 = vmatprep.subr.bf16.mxu0 %v10025_v11 }
 0xbb4   : > { %8862 = vmatprep.subr.bf16.mxu1 %v10025_v11 }
 0xbb6   : > { %8885 = vmatpush3.bf16.msra.mxu0 %v9473_v14  ;;  %v9494_v14 = vld [vmem:[#allocation13 + $0x40] sm:$0xff]  }
 0xbb7   : > { %8863 = vmatpush3.bf16.msra.mxu1 %v9472_v39  ;;  %8886 = vmatprep.subr.bf16.mxu0 %v10025_v11 }
 0xbb8   : > { %8894 = vmatprep.subr.bf16.mxu1 %v10025_v11 }
 0xbba   : > { %8887 = vmatpush3.bf16.msra.mxu0 %v9474_v20 }
 0xbbb   : > { %8888 = vmatprep.subr.bf16.mxu0 %v10025_v11 }
 0xbbe   : > { %8889 = vmatpush3.bf16.msra.mxu0 %v9475_v43  ;;  %v9495_v43 = vld [vmem:[#allocation14 + $0x238] sm:$0xff]  }
 0xbbf   : > { %8920 = vmatprep.subr.bf16.mxu0 %v10025_v11 }
 0xc51   : > { %v5132_v45 = vpop.f32.mrf.mxu1 }
 0xc52   : > { %v5139_v46 = vadd.f32 %v5132_v45, %v10896_v26  ;;  %v9481_v26 = vld [vmem:[#allocation14 + $0x1f8] sm:$0xff]  }
 0xc53   : > { %v8814_v44 = vpop.f32.mrf.mxu1 }
 0xc54   : > { %v9496_v44 = vld [vmem:[#allocation14 + $0x230] sm:$0xff]  }
 0xc55   : > { %v5135_v47 = vpop.f32.mrf.mxu1 }
 0xc56   : > { %v5140_v15 = vadd.f32 %v5135_v47, %v10898_v48  ;;  %v9485_v48 = vld [vmem:[#allocation14 + $0x1e8] sm:$0xff]   ;;  %v9498_v47 = vld [vmem:[#allocation14 + $0x220] sm:$0xff]  }
 0xc57   : > { %v8815_v55 = vpop.f32.mrf.mxu1 }
 0xc58   : > { %v9500_v55 = vld [vmem:[#allocation14 + $0x210] sm:$0xff]  }
 0xc59   : > { %v5293_v53 = vpop.f32.mrf.mxu0  ;;  %v5347_v29 = vpop.f32.mrf.mxu1 }
 0xc5a   : > { %v10932_v57 = vadd.f32 %v5293_v53, %v5139_v46  ;;  %v9501_v53 = vld [vmem:[#allocation14 + $0x208] sm:$0xff]  }
 0xc5b   : > { %v8840_v59 = vpop.f32.mrf.mxu0  ;;  %v8846_v62 = vpop.f32.mrf.mxu1 }
 0xc5c   : > { %v9505_v59 = vld [vmem:[%s11220_s12 + $0x74] ss:$8 sps:$4 sm:$0xff]   ;;  %v9508_v62 = vld [vmem:[%s11220_s12 + $0x64] ss:$8 sps:$4 sm:$0xff]  }
 0xc5d   : > { %v5296_v51 = vpop.f32.mrf.mxu0  ;;  %v5350_v60 = vpop.f32.mrf.mxu1 }
 0xc5e   : > { %v10934_v22 = vadd.f32 %v5296_v51, %v5140_v15  ;;  %v5354_v30 = vpack.c.bf16 %v5350_v60, %v5347_v29  ;;  %v9499_v15 = vld [vmem:[#allocation14 + $0x218] sm:$0xff]   ;;  %v9502_v29 = vld [vmem:[#allocation14 + $0x200] sm:$0xff]  }
 0xc5f   : > { %v8841_v61 = vpop.f32.mrf.mxu0  ;;  %v8847_v5 = vpop.f32.mrf.mxu1  ;;  %v9511_v51 = vld [vmem:[%s11220_s12 + $0x54] ss:$8 sps:$4 sm:$0xff]   ;;  %v9509_v60 = vld [vmem:[%s11220_s12 + $0x50] ss:$8 sps:$4 sm:$0xff]  }
 0xc60   : > { %8865 = vmatmul.mubr.bf16.vlgmr.msra.gmra.mxu1 %v5354_v30  ;;  %v9512_v30 = vld [vmem:[%s11220_s12 + $0x40] ss:$8 sps:$4 sm:$0xff]   ;;  %v9517_v61 = vld [vmem:[%s11220_s12 + $0x34] ss:$8 sps:$4 sm:$0xff]   ;;  %v9515_v5 = vld [vmem:[%s11220_s12 + $0x30] ss:$8 sps:$4 sm:$0xff]  }
 0xc61   : > { %8895 = vmatpush3.bf16.msra.mxu1 %v10838_v28  ;;  %v5508_v3 = vpop.f32.mrf.mxu0  ;;  %8896 = vmatprep.mubr.msk.bf16.mxu1 %vm10026_vm0, %v10025_v11 }
 0xc62   : > { %8900 = vmatprep.subr.bf16.mxu1 %v10025_v11 }
 0xc63   : > { %v8872_v54 = vpop.f32.mrf.mxu0 }
 0xc65   : > { %v5511_v32 = vpop.f32.mrf.mxu0 }
 0xc66   : > { %v5515_v7 = vpack.c.bf16 %v5511_v32, %v5508_v3 }
 0xc67   : > { %v8873_v6 = vpop.f32.mrf.mxu0 }
 0xc68   : > { %8891 = vmatmul.mubr.bf16.vlgmr.msra.gmra.mxu0 %v5515_v7  ;;  %8897 = vmatmul.mubr.msk.bf16.vlgmr.msra.gmra.mxu1 %vm4670_vm2, %v9476_v58 }
 0xc69   : > { %8921 = vmatpush3.bf16.msra.mxu0 %v10838_v28  ;;  %8922 = vmatprep.mubr.msk.bf16.mxu0 %vm10026_vm0, %v10025_v11 }
 0xc6a   : > { %8901 = vmatpush3.bf16.msra.mxu1 %v9478_v33  ;;  %8926 = vmatprep.subr.bf16.mxu0 %v10025_v11 }
 0xc6b   : > { %8902 = vmatprep.subr.bf16.mxu1 %v10025_v11  ;;  %8916 = vmatprep.mubr.msk.bf16.mxu1 %vm10026_vm0, %v10025_v11 }
 0xc6e   : > { %8903 = vmatpush3.bf16.msra.mxu1 %v9479_v4 }
 0xc6f   : > { %8904 = vmatprep.subr.bf16.mxu1 %v10025_v11 }
 0xc70   : > { %8923 = vmatmul.mubr.msk.bf16.vlgmr.msra.gmra.mxu0 %vm4670_vm2, %v9477_v21 }
 0xc71   : > { %8927 = vmatpush3.bf16.msra.mxu0 %v9481_v26  ;;  %8942 = vmatprep.mubr.msk.bf16.mxu0 %vm10026_vm0, %v10025_v11 }
 0xc72   : > { %8905 = vmatpush3.bf16.msra.mxu1 %v9480_v8  ;;  %8928 = vmatprep.subr.bf16.mxu0 %v10025_v11 }
 0xc73   : > { %8906 = vmatprep.subr.bf16.mxu1 %v10025_v11 }
 0xc75   : > { %8929 = vmatpush3.bf16.msra.mxu0 %v9483_v9 }
 0xc76   : > { %8907 = vmatpush3.bf16.msra.mxu1 %v9482_v12  ;;  %8930 = vmatprep.subr.bf16.mxu0 %v10025_v11 }
 0xc77   : > { %8908 = vmatprep.subr.bf16.mxu1 %v10025_v11 }
 0xc79   : > { %8931 = vmatpush3.bf16.msra.mxu0 %v9485_v48 }
 0xc7a   : > { %8909 = vmatpush3.bf16.msra.mxu1 %v9484_v10  ;;  %8932 = vmatprep.subr.bf16.mxu0 %v10025_v11 }
 0xc7b   : > { %8910 = vmatprep.subr.bf16.mxu1 %v10025_v11 }
 0xc7d   : > { %8933 = vmatpush3.bf16.msra.mxu0 %v9487_v17 }
 0xc7e   : > { %8911 = vmatpush3.bf16.msra.mxu1 %v9486_v49  ;;  %8934 = vmatprep.subr.bf16.mxu0 %v10025_v11 }
 0xc7f   : > { %8912 = vmatprep.subr.bf16.mxu1 %v10025_v11 }
 0xc81   : > { %8935 = vmatpush3.bf16.msra.mxu0 %v9489_v52  ;;  %v9518_v52 = vld [vmem:[%s11220_s12 + $0x20] ss:$8 sps:$4 sm:$0xff]  }
 0xc82   : > { %8913 = vmatpush3.bf16.msra.mxu1 %v9488_v18  ;;  %8936 = vmatprep.subr.bf16.mxu0 %v10025_v11  ;;  %v9520_v18 = vld [vmem:[%s11220_s12 + $0x24] ss:$8 sps:$4 sm:$0xff]  }
 0xc83   : > { %8914 = vmatprep.subr.bf16.mxu1 %v10025_v11 }
 0xc85   : > { %8937 = vmatpush3.bf16.msra.mxu0 %v9491_v56  ;;  %v9521_v56 = vld [vmem:[%s11220_s12 + $0x10] ss:$8 sps:$4 sm:$0xff]  }
 0xc86   : > { %8915 = vmatpush3.bf16.msra.mxu1 %v9490_v19  ;;  %8938 = vmatprep.subr.bf16.mxu0 %v10025_v11  ;;  %v9523_v19 = vld [vmem:[%s11220_s12 + $0x14] ss:$8 sps:$4 sm:$0xff]  }
 0xc87   : > { %8946 = vmatprep.subr.bf16.mxu1 %v10025_v11 }
 0xc89   : > { %8939 = vmatpush3.bf16.msra.mxu0 %v9492_v23  ;;  %v9526_v23 = vld [vmem:[%s11220_s12 + $0x4] ss:$8 sps:$4 sm:$0xff]  }
 0xc8a   : > { %8940 = vmatprep.subr.bf16.mxu0 %v10025_v11 }
 0xc8d   : > { %8941 = vmatpush3.bf16.msra.mxu0 %v9493_v24  ;;  %v9524_v24 = vld [vmem:[%s11220_s12] ss:$8 sps:$4 sm:$0xff]  }
 0xc8e   : > { %6227 = vmatprep.subr.bf16.mxu0 %v9505_v59  ;;  %v9529_v59 = vld [vmem:[%s11222_s14 + $0x10] sm:$0xff]  }
 0xd20   : > { %v5454_v35 = vpop.f32.mrf.mxu1 }
 0xd21   : > { %v5461_v36 = vadd.f32 %v5454_v35, %v10932_v57  ;;  %v9503_v57 = vld [vmem:[%s11220_s12 + $0x70] ss:$8 sps:$4 sm:$0xff]   ;;  %v10027_v35 = vmov 0  }
 0xd22   : > { %v8866_v37 = vpop.f32.mrf.mxu1 }
 0xd24   : > { %v5457_v2 = vpop.f32.mrf.mxu1 }
 0xd25   : > { %v5462_v34 = vadd.f32 %v5457_v2, %v10934_v22  ;;  %v9514_v22 = vld [vmem:[%s11220_s12 + $0x44] ss:$8 sps:$4 sm:$0xff]   ;;  %v7405_v2 = vld [vmem:[%s11219_s11] ss:$0 sm:$0xff] }
 0xd26   : > { %v8867_v38 = vpop.f32.mrf.mxu1 }
 0xd28   : > { %v5615_v40 = vpop.f32.mrf.mxu0  ;;  %v5669_v13 = vpop.f32.mrf.mxu1 }
 0xd29   : > { %v10967_v16 = vadd.f32 %v5615_v40, %v5461_v36 }
 0xd2a   : > { %v8892_v27 = vpop.f32.mrf.mxu0  ;;  %v8898_v63 = vpop.f32.mrf.mxu1 }
 0xd2c   : > { %v5618_v25 = vpop.f32.mrf.mxu0  ;;  %v5672_v41 = vpop.f32.mrf.mxu1 }
 0xd2d   : > { %v10969_v42 = vadd.f32 %v5618_v25, %v5462_v34  ;;  %v5676_v31 = vpack.c.bf16 %v5672_v41, %v5669_v13 }
 0xd2e   : > { %v8893_v50 = vpop.f32.mrf.mxu0  ;;  %v8899_v0 = vpop.f32.mrf.mxu1 }
 0xd2f   : > { %8917 = vmatmul.mubr.bf16.vlgmr.msra.gmra.mxu1 %v5676_v31  ;;  %v6137_v31 = vlaneseq }
 0xd30   : > { %8947 = vmatpush3.bf16.msra.mxu1 %v10838_v28  ;;  %v5830_v1 = vpop.f32.mrf.mxu0  ;;  %8948 = vmatprep.mubr.msk.bf16.mxu1 %vm10026_vm0, %v10025_v11  ;;  %v9497_v28 = vld [vmem:[#allocation14 + $0x228] sm:$0xff]  }
 0xd31   : > { %8952 = vmatprep.subr.bf16.mxu1 %v10025_v11  ;;  %v6138_v50 = vshrl.u32 %v6137_v31, 7 }
 0xd32   : > { %v8924_v39 = vpop.f32.mrf.mxu0 }
 0xd33   : > { %v6139_v0 = vsub.s32 0, %v6138_v50  ;;  %v6143_v39 = vsub.s32 1, %v6138_v50 }
 0xd34   : > { %v5833_v20 = vpop.f32.mrf.mxu0 }
 0xd35   : > { %v5837_v45 = vpack.c.bf16 %v5833_v20, %v5830_v1  ;;  %v6135_v1 = vld [vmem:[%s11272_s13] sm:$0x3]  ;;  %s9905_s13 = sshll.u32 %s10028_s4, 4  ;;  %s9906_s13 = int_to_ptr.vmem [resolvable:$false] %s9905_s13 }
 0xd36   : > { %v8925_v46 = vpop.f32.mrf.mxu0  ;;  %v6140_v20 = vrot.slane %v6135_v1, %v6139_v0  ;;  %s9907_s28 = scalar_lea.vmem %s9906_s13, 32  ;;  %p9908_p1 = scmp.lt.s32.totalorder %s6867_s16, %s9906_s13 }
 0xd37   : > { %8943 = vmatmul.mubr.bf16.vlgmr.msra.gmra.mxu0 %v5837_v45  ;;  %8949 = vmatmul.mubr.msk.bf16.vlgmr.msra.gmra.mxu1 %vm4670_vm2, %v9494_v14  ;;  %v6144_v45 = vrot.slane %v6135_v1, %v6143_v39  ;;  %p9909_p3 = scmp.lt.s32.totalorder %s9907_s28, %s9901_s2 }
 0xd38   : > { %8953 = vmatpush3.bf16.msra.mxu1 %v9495_v43  ;;  %8968 = vmatprep.mubr.msk.bf16.mxu1 %vm10026_vm0, %v10025_v11 }
 0xd39   : > { %8954 = vmatprep.subr.bf16.mxu1 %v10025_v11  ;;  %6228 = vmatpush1.bf16.msra.mxu0 %v9503_v57  ;;  %v9528_v57 = vld [vmem:[%s11222_s14 + $0x8] sm:$0xff]   ;;  %p9910_p4 = por %p9909_p3, %p9908_p1 }
 0xd3a   : > { %6229 = vmatprep.subr.bf16.mxu0 %v9508_v62  ;;  %6259 = vmatprep.mubr.bf16.mxu0 %v10027_v35 }
 0xd3b   : > { %p9911_p8 = pnand %p9910_p4, %p9904_p13 }
 0xd3c   : > { %8955 = vmatpush3.bf16.msra.mxu1 %v9496_v44 }
 0xd3d   : > { %8956 = vmatprep.subr.bf16.mxu1 %v10025_v11 }
 0xd40   : > { %8957 = vmatpush3.bf16.msra.mxu1 %v9497_v28 }
 0xd41   : > { %8958 = vmatprep.subr.bf16.mxu1 %v10025_v11 }
 0xd44   : > { %8959 = vmatpush3.bf16.msra.mxu1 %v9498_v47 }
 0xd45   : > { %8960 = vmatprep.subr.bf16.mxu1 %v10025_v11 }
 0xd48   : > { %8961 = vmatpush3.bf16.msra.mxu1 %v9499_v15 }
 0xd49   : > { %8962 = vmatprep.subr.bf16.mxu1 %v10025_v11 }
 0xd4c   : > { %8963 = vmatpush3.bf16.msra.mxu1 %v9500_v55 }
 0xd4d   : > { %8964 = vmatprep.subr.bf16.mxu1 %v10025_v11 }
 0xd50   : > { %8965 = vmatpush3.bf16.msra.mxu1 %v9501_v53 }
 0xd51   : > { %8966 = vmatprep.subr.bf16.mxu1 %v10025_v11  ;;  %v9506_v11 = vld [vmem:[%s11220_s12 + $0x60] ss:$8 sps:$4 sm:$0xff]  }
 0xd52   : > { %6230 = vmatpush1.bf16.msra.mxu0 %v9506_v11 }
 0xd53   : > { %6231 = vmatprep.subr.bf16.mxu0 %v9511_v51 }
 0xd54   : > { %8967 = vmatpush3.bf16.msra.mxu1 %v9502_v29 }
 0xd56   : > { %6232 = vmatpush1.bf16.msra.mxu0 %v9509_v60 }
 0xd57   : > { %6233 = vmatprep.subr.bf16.mxu0 %v9514_v22  ;;  %v9530_v22 = vld [vmem:[%s11222_s14 + $0x18] sm:$0xff]  }
 0xd5a   : > { %6234 = vmatpush1.bf16.msra.mxu0 %v9512_v30  ;;  %v9531_v30 = vld [vmem:[%s11222_s14 + $0x20] sm:$0xff]  }
 0xd5b   : > { %6235 = vmatprep.subr.bf16.mxu0 %v9517_v61 }
 0xd5e   : > { %6236 = vmatpush1.bf16.msra.mxu0 %v9515_v5 }
 0xd5f   : > { %6237 = vmatprep.subr.bf16.mxu0 %v9520_v18 }
 0xd62   : > { %6238 = vmatpush1.bf16.msra.mxu0 %v9518_v52 }
 0xd63   : > { %6239 = vmatprep.subr.bf16.mxu0 %v9523_v19 }
 0xd66   : > { %6240 = vmatpush1.bf16.msra.mxu0 %v9521_v56 }
 0xd67   : > { %6241 = vmatprep.subr.bf16.mxu0 %v9526_v23 }
 0xd6a   : > { %6242 = vmatpush1.bf16.msra.mxu0 %v9524_v24 }
 0xdef   : > { %v5776_v3 = vpop.f32.mrf.mxu1 }
 0xdf0   : > { %v5783_v54 = vadd.f32 %v5776_v3, %v10967_v16 }
 0xdf1   : > { %v8918_v58 = vpop.f32.mrf.mxu1 }
 0xdf2   : > { %v9532_v58 = vld [vmem:[%s11222_s14 + $0x28] sm:$0xff]  }
 0xdf3   : > { %v5779_v32 = vpop.f32.mrf.mxu1 }
 0xdf4   : > { %v5784_v7 = vadd.f32 %v5779_v32, %v10969_v42  ;;  %v9527_v42 = vld [vmem:[%s11222_s14] sm:$0xff]   ;;  %v9533_v32 = vld [vmem:[%s11222_s14 + $0x30] sm:$0xff]  }
 0xdf5   : > { %v8919_v33 = vpop.f32.mrf.mxu1 }
 0xdf6   : > { %v9535_v33 = vld [vmem:[%s11222_s14 + $0x40] sm:$0xff]  }
 0xdf7   : > { %v5937_v6 = vpop.f32.mrf.mxu0  ;;  %v5991_v4 = vpop.f32.mrf.mxu1 }
 0xdf8   : > { %v5944_v21 = vadd.f32 %v5937_v6, %v5783_v54 }
 0xdf9   : > { %v8944_v26 = vpop.f32.mrf.mxu0  ;;  %v8950_v8 = vpop.f32.mrf.mxu1 }
 0xdfa   : > { %v9537_v26 = vld [vmem:[%s11222_s14 + $0x50] sm:$0xff]   ;;  %v9538_v8 = vld [vmem:[%s11222_s14 + $0x58] sm:$0xff]  }
 0xdfb   : > { %v5940_v9 = vpop.f32.mrf.mxu0  ;;  %v5994_v12 = vpop.f32.mrf.mxu1 }
 0xdfc   : > { %v5945_v10 = vadd.f32 %v5940_v9, %v5784_v7  ;;  %v5998_v48 = vpack.c.bf16 %v5994_v12, %v5991_v4  ;;  %v9534_v7 = vld [vmem:[%s11222_s14 + $0x38] sm:$0xff]   ;;  %v9539_v9 = vld [vmem:[%s11222_s14 + $0x60] sm:$0xff]  }
 0xdfd   : > { %v8951_v49 = vpop.f32.mrf.mxu1  ;;  %v8945_v17 = vpop.f32.mrf.mxu0 }
 0xdfe   : > { %8969 = vmatmul.mubr.bf16.vlgmr.msra.gmra.mxu1 %v5998_v48  ;;  %v9541_v48 = vld [vmem:[%s11222_s14 + $0x70] sm:$0xff]   ;;  %v9542_v49 = vld [vmem:[%s11222_s14 + $0x78] sm:$0xff]  }
 0xdff   : > { %8974 = vmatprep.mubr.msk.bf16.mxu1 %vm4670_vm2, %v9527_v42 }
 0xebe   : > { %v6098_v36 = vpop.f32.mrf.mxu1 }
 0xebf   : > { %v6105_v37 = vadd.f32 %v6098_v36, %v5944_v21  ;;  %v9536_v21 = vld [vmem:[%s11222_s14 + $0x48] sm:$0xff]  }
 0xec0   : > { %v8970_v34 = vpop.f32.mrf.mxu1 }
 0xec1   : > { %v6114_v40 = vadd.f32 %v7405_v2, %v6105_v37 }
 0xec2   : > { %v6101_v38 = vpop.f32.mrf.mxu1 }
 0xec3   : > { %v6106_v13 = vadd.f32 %v6101_v38, %v5945_v10  ;;  %v6116_v63 = vmax.f32 %v6114_v40, 0.0  ;;  %v9540_v10 = vld [vmem:[%s11222_s14 + $0x68] sm:$0xff]  }
 0xec4   : > { %v8971_v16 = vpop.f32.mrf.mxu1 }
 0xec5   : > { %v6115_v27 = vadd.f32 %v7405_v2, %v6106_v13 }
 0xec7   : > { %v6117_v25 = vmax.f32 %v6115_v27, 0.0 }
 0xec9   : > { %v6118_v41 = vpack.c.bf16 %v6117_v25, %v6116_v63 }
 0xecb   : > { %6260 = vmatmul.mubr.bf16.vlgmr.msra.gmra.mxu0 %v6118_v41 }
 0xf8b   : > { %v6261_v14 = vpop.f32.mrf.mxu0 }
 0xf8c   : > { %v6262_v44 = vadd.f32 %v6261_v14, %v6140_v20 }
 0xf8d   : > { %v6263_v43 = vpop.f32.mrf.mxu0 }
 0xf8e   : > { %v6264_v15 = vadd.f32 %v6263_v43, %v6144_v45 }
 0xf8f   : > { %v6265_v46 = vpop.f32.mrf.mxu0 }
 0xf90   : > { %v6266_v28 = vadd.f32 %v6265_v46, %v6140_v20 }
 0xf91   : > { %v6267_v47 = vpop.f32.mrf.mxu0 }
 0xf92   : > { %v6270_v55 = vpack.c.bf16 %v6266_v28, %v6262_v44  ;;  %v6268_v53 = vadd.f32 %v6267_v47, %v6144_v45 }
 0xf94   : > { %v6816_v29 = vadd.f32 %v6268_v53, %v6264_v15  ;;  %8972 = vmatprep.subr.bf16.mxu1 %v6270_v55 }
 0xf95   : > { %8973 = vmatpush3.bf16.msra.mxu1 %v6270_v55 }
 0xf96   : > { %v6817_v62 = vrot.slane %v6816_v29, 4 }
 0xf98   : > { %v6818_v11 = vadd.f32 %v6817_v62, %v6816_v29  ;;  %8975 = vmatmul.mubr.msk.bf16.vlgmr.msra.gmra.mxu1 %vm4670_vm2, %v9528_v57 }
 0xf99   : > { %8978 = vmatprep.mubr.msk.bf16.mxu1 %vm4670_vm2, %v9529_v59 }
 0xf9a   : > { %v6819_v51 = vrot.slane %v6818_v11, 2 }
 0xf9c   : > { %v6820_v60 = vadd.f32 %v6819_v51, %v6818_v11 }
 0xf9e   : > { %v6821_v61 = vrot.slane %v6820_v60, 1 }
 0xfa0   : > { %v6822_v5 = vadd.f32 %v6821_v61, %v6820_v60  ;;  %8979 = vmatmul.mubr.msk.bf16.gmra.mxu1 %vm4670_vm2, %v9530_v22 }
 0xfa1   : > { %8982 = vmatprep.mubr.msk.bf16.mxu1 %vm4670_vm2, %v9531_v30 }
 0xfa2   : > { %v7486_v3 = vmul.f32 -0.0625, %v6822_v5 }
 0xfa4   : > { %v6826_v54 = vmul.f32 1.442695, %v7486_v3 }
 0xfa6   : > { %9543 = vpow2.f32 %v6826_v54 }
 0xfa8   : > { %8983 = vmatmul.mubr.msk.bf16.gmra.mxu1 %vm4670_vm2, %v9532_v58 }
 0xfa9   : > { %8986 = vmatprep.mubr.msk.bf16.mxu1 %vm4670_vm2, %v9533_v32 }
 0xfb0   : > { %8987 = vmatmul.mubr.msk.bf16.gmra.mxu1 %vm4670_vm2, %v9534_v7 }
 0xfb1   : > { %8990 = vmatprep.mubr.msk.bf16.mxu1 %vm4670_vm2, %v9535_v33 }
 0xfb3   : > { %v9544_v6 = vpop.eup %9543 }
 0xfb4   : > { %v6828_v4 = vadd.f32 1.0, %v9544_v6 }
 0xfb6   : > { %9545 = vrcp.f32 %v6828_v4 }
 0xfb8   : > { %8991 = vmatmul.mubr.msk.bf16.gmra.mxu1 %vm4670_vm2, %v9536_v21 }
 0xfb9   : > { %8994 = vmatprep.mubr.msk.bf16.mxu1 %vm4670_vm2, %v9537_v26 }
 0xfc0   : > { %8995 = vmatmul.mubr.msk.bf16.gmra.mxu1 %vm4670_vm2, %v9538_v8 }
 0xfc1   : > { %8998 = vmatprep.mubr.msk.bf16.mxu1 %vm4670_vm2, %v9539_v9 }
 0xfc3   : > { %v9546_v12 = vpop.eup %9545 }
 0xfc4   : > { %6831 = vst [vmem:[%s651_s5] sm:$0x1] %v9546_v12 }
 0xfc8   : > { %8999 = vmatmul.mubr.msk.bf16.gmra.mxu1 %vm4670_vm2, %v9540_v10 }
 0xfc9   : > { %9002 = vmatprep.mubr.msk.bf16.mxu1 %vm4670_vm2, %v9541_v48 }
 0xfd0   : > { %9003 = vmatmul.mubr.msk.bf16.gmra.mxu1 %vm4670_vm2, %v9542_v49 }
 0xfd1   : > { %9914 = shalt.err (!%p9911_p8)
}
 0xfd2   : > { %s9915_s5 = scalar_lea.hbm %s6864_s10, 16  ;;  %s9919_s15 = scalar_lea.hbm %s11273_s17, 32 }
 0xfd3   : > { %p9916_p6 = scmp.ne.s32.totalorder %s6864_s10, %s9915_s5  ;;  %p9920_p0 = scmp.lt.s32.totalorder %s6864_s10, %s11273_s17 }
 0xfd4   : > { %p9921_p2 = scmp.lt.s32.totalorder %s9919_s15, %s9915_s5 }
 0xfd5   : > { %p9917_p11 = pnand %p9916_p6, %p11274_p9 }
 0xfd6   : > { %p9922_p5 = por %p9921_p2, %p9920_p0 }
 0xfd7   : > { %p9918_p7 = pneg %p9917_p11 }
 0xfd9   : > { %p9923_p10 = pnand %p9922_p5, %p9918_p7 }
 0xfdb   : > { %9926 = shalt.err (!%p9923_p10)
}
 0xfdc   : > { %9037 = dma.vmem_to_hbm [thread:$0]  (%p11274_p9), %s6867_s16, 16, %s6864_s10, %s6838_s30  }
 0xfdd   : > { %s7053_s16 = sshll.u32 %s10310_s9, 8  ;;  %s7494_s30 = sshll.u32 %s10138_s27, 12 }
 0xfde   : > { %s11124_s10 = scalar_lea.vmem [#allocation16], %s7053_s16  ;;  %s11275_s28 = sld [smem:[#allocation35_spill]] }
 0xfdf   : > { %s6850_s2 = sshll.u32 %s11124_s10, 4  ;;  %s6833_s26 = scalar_lea.sflag [#allocation4], %s10310_s9  ;;  %s11163_s2 = int_to_ptr.vmem [resolvable:$true] %s6850_s2 }
 0xfe0   : > { %s9927_s29 = scalar_lea.vmem %s11163_s2, 4096  ;;  %s10029_s27 = smov [#allocation16]  }
 0xfe1   : > { %p9928_p12 = scmp.ne.s32.totalorder %s11163_s2, %s9927_s29  ;;  %s9931_s15 = sshll.u32 %s10029_s27, 4  ;;  %s9932_s15 = int_to_ptr.vmem [resolvable:$false] %s9931_s15 }
 0xfe2   : > { %s9933_s0 = scalar_lea.vmem %s9932_s15, 8192  ;;  %p9934_p3 = scmp.lt.s32.totalorder %s11163_s2, %s9932_s15 }
 0xfe3   : > { %p9929_p13 = pnand %p9928_p12, %p11274_p9  ;;  %p9935_p4 = scmp.lt.s32.totalorder %s9933_s0, %s9927_s29 }
 0xfe4   : > { %s11161_s5 = scalar_lea.hbm %s11275_s28, %s7494_s30 }
 0xfe5   : > { %p9930_p1 = pneg %p9929_p13  ;;  %p9936_p8 = por %p9935_p4, %p9934_p3 }
 0xfe7   : > { %p9937_p6 = pnand %p9936_p8, %p9930_p1 }
0x1058   : > { %v8976_v17 = vpop.f32.mrf.mxu1 }
0x1059   : > { %v7456_v18 = vmul.f32 -1.442695, %v8976_v17 }
0x105a   : > { %v6465_v52 = vpop.f32.mrf.mxu1 }
0x105b   : > { %9547 = vpow2.f32 %v7456_v18  ;;  %v7454_v19 = vmul.f32 -1.442695, %v6465_v52 }
0x105c   : > { %v8977_v56 = vpop.f32.mrf.mxu1 }
0x105d   : > { %9549 = vpow2.f32 %v7454_v19  ;;  %v7457_v23 = vmul.f32 -1.442695, %v8977_v56 }
0x105e   : > { %v6468_v24 = vpop.f32.mrf.mxu1 }
0x105f   : > { %9551 = vpow2.f32 %v7457_v23  ;;  %v7455_v35 = vmul.f32 -1.442695, %v6468_v24 }
0x1060   : > { %v8980_v36 = vpop.f32.mrf.mxu1 }
0x1061   : > { %9553 = vpow2.f32 %v7455_v35  ;;  %v7460_v37 = vmul.f32 -1.442695, %v8980_v36 }
0x1062   : > { %v6481_v2 = vpop.f32.mrf.mxu1 }
0x1063   : > { %9555 = vpow2.f32 %v7460_v37  ;;  %v7458_v34 = vmul.f32 -1.442695, %v6481_v2 }
0x1064   : > { %v8981_v38 = vpop.f32.mrf.mxu1 }
0x1065   : > { %9557 = vpow2.f32 %v7458_v34  ;;  %v7461_v40 = vmul.f32 -1.442695, %v8981_v38 }
0x1066   : > { %v6484_v13 = vpop.f32.mrf.mxu1 }
0x1067   : > { %9559 = vpow2.f32 %v7461_v40  ;;  %v7459_v16 = vmul.f32 -1.442695, %v6484_v13 }
0x1068   : > { %v9548_v27 = vpop.eup %9547  ;;  %v8984_v63 = vpop.f32.mrf.mxu1 }
0x1069   : > { %v6690_v25 = vadd.f32 1.0, %v9548_v27  ;;  %9561 = vpow2.f32 %v7459_v16  ;;  %v7464_v41 = vmul.f32 -1.442695, %v8984_v63 }
0x106a   : > { %v9550_v42 = vpop.eup %9549  ;;  %v6497_v31 = vpop.f32.mrf.mxu1 }
0x106b   : > { %9563 = vrcp.f32 %v6690_v25  ;;  %v6688_v50 = vadd.f32 1.0, %v9550_v42  ;;  %v7462_v0 = vmul.f32 -1.442695, %v6497_v31 }
0x106c   : > { %v9552_v1 = vpop.eup %9551  ;;  %9565 = vpow2.f32 %v7464_v41  ;;  %v8985_v39 = vpop.f32.mrf.mxu1 }
0x106d   : > { %9567 = vrcp.f32 %v6688_v50  ;;  %v6691_v14 = vadd.f32 1.0, %v9552_v1  ;;  %v7465_v20 = vmul.f32 -1.442695, %v8985_v39 }
0x106e   : > { %v9554_v43 = vpop.eup %9553  ;;  %9569 = vpow2.f32 %v7462_v0  ;;  %v6500_v45 = vpop.f32.mrf.mxu1 }
0x106f   : > { %9571 = vrcp.f32 %v6691_v14  ;;  %v6689_v46 = vadd.f32 1.0, %v9554_v43  ;;  %v7463_v44 = vmul.f32 -1.442695, %v6500_v45 }
0x1070   : > { %v9556_v28 = vpop.eup %9555  ;;  %9573 = vpow2.f32 %v7465_v20  ;;  %v8988_v47 = vpop.f32.mrf.mxu1 }
0x1071   : > { %9575 = vrcp.f32 %v6689_v46  ;;  %v6694_v15 = vadd.f32 1.0, %v9556_v28  ;;  %v7468_v55 = vmul.f32 -1.442695, %v8988_v47 }
0x1072   : > { %v9558_v53 = vpop.eup %9557  ;;  %9577 = vpow2.f32 %v7463_v44  ;;  %v6513_v29 = vpop.f32.mrf.mxu1 }
0x1073   : > { %9579 = vrcp.f32 %v6694_v15  ;;  %v6692_v57 = vadd.f32 1.0, %v9558_v53  ;;  %v7466_v59 = vmul.f32 -1.442695, %v6513_v29 }
0x1074   : > { %v9560_v62 = vpop.eup %9559  ;;  %9581 = vpow2.f32 %v7468_v55  ;;  %v8989_v11 = vpop.f32.mrf.mxu1 }
0x1075   : > { %9583 = vrcp.f32 %v6692_v57  ;;  %v6695_v51 = vadd.f32 1.0, %v9560_v62  ;;  %v7469_v60 = vmul.f32 -1.442695, %v8989_v11 }
0x1076   : > { %v9562_v22 = vpop.eup %9561  ;;  %9585 = vpow2.f32 %v7466_v59  ;;  %v6516_v30 = vpop.f32.mrf.mxu1 }
0x1077   : > { %9587 = vrcp.f32 %v6695_v51  ;;  %v6693_v61 = vadd.f32 1.0, %v9562_v22  ;;  %v7467_v5 = vmul.f32 -1.442695, %v6516_v30 }
0x1078   : > { %v9564_v3 = vpop.eup %9563  ;;  %9589 = vpow2.f32 %v7469_v60  ;;  %v8992_v54 = vpop.f32.mrf.mxu1 }
0x1079   : > { %v9566_v58 = vpop.eup %9565  ;;  %6786 = vst [vmem:[%s11124_s10 + $0x10] sm:$0xff] %v9564_v3  ;;  %9591 = vrcp.f32 %v6693_v61  ;;  %v7472_v32 = vmul.f32 -1.442695, %v8992_v54 }
0x107a   : > { %v9568_v7 = vpop.eup %9567  ;;  %v6698_v33 = vadd.f32 1.0, %v9566_v58  ;;  %9593 = vpow2.f32 %v7467_v5  ;;  %v6529_v6 = vpop.f32.mrf.mxu1 }
0x107b   : > { %v9570_v4 = vpop.eup %9569  ;;  %6784 = vst [vmem:[%s11124_s10] sm:$0xff] %v9568_v7  ;;  %9595 = vpow2.f32 %v7472_v32  ;;  %v7470_v21 = vmul.f32 -1.442695, %v6529_v6 }
0x107c   : > { %v9572_v26 = vpop.eup %9571  ;;  %9597 = vrcp.f32 %v6698_v33  ;;  %v6696_v8 = vadd.f32 1.0, %v9570_v4  ;;  %v8993_v9 = vpop.f32.mrf.mxu1 }
0x107d   : > { %v9574_v12 = vpop.eup %9573  ;;  %6787 = vst [vmem:[%s11124_s10 + $0x18] sm:$0xff] %v9572_v26  ;;  %9599 = vpow2.f32 %v7470_v21  ;;  %v7473_v10 = vmul.f32 -1.442695, %v8993_v9 }
0x107e   : > { %v9576_v48 = vpop.eup %9575  ;;  %9601 = vrcp.f32 %v6696_v8  ;;  %v6699_v49 = vadd.f32 1.0, %v9574_v12  ;;  %v6532_v17 = vpop.f32.mrf.mxu1 }
0x107f   : > { %v9578_v18 = vpop.eup %9577  ;;  %6785 = vst [vmem:[%s11124_s10 + $0x8] sm:$0xff] %v9576_v48  ;;  %9603 = vpow2.f32 %v7473_v10  ;;  %v7471_v52 = vmul.f32 -1.442695, %v6532_v17 }
0x1080   : > { %v9580_v19 = vpop.eup %9579  ;;  %9605 = vrcp.f32 %v6699_v49  ;;  %v6697_v56 = vadd.f32 1.0, %v9578_v18  ;;  %v8996_v23 = vpop.f32.mrf.mxu1 }
0x1081   : > { %v9582_v24 = vpop.eup %9581  ;;  %6790 = vst [vmem:[%s11124_s10 + $0x30] sm:$0xff] %v9580_v19  ;;  %9607 = vpow2.f32 %v7471_v52  ;;  %v7476_v35 = vmul.f32 -1.442695, %v8996_v23 }
0x1082   : > { %v9584_v36 = vpop.eup %9583  ;;  %9609 = vrcp.f32 %v6697_v56  ;;  %v6702_v37 = vadd.f32 1.0, %v9582_v24  ;;  %v6545_v2 = vpop.f32.mrf.mxu1 }
0x1083   : > { %v9586_v34 = vpop.eup %9585  ;;  %6788 = vst [vmem:[%s11124_s10 + $0x20] sm:$0xff] %v9584_v36  ;;  %9611 = vpow2.f32 %v7476_v35  ;;  %v7474_v38 = vmul.f32 -1.442695, %v6545_v2 }
0x1084   : > { %v9588_v40 = vpop.eup %9587  ;;  %9613 = vrcp.f32 %v6702_v37  ;;  %v6700_v13 = vadd.f32 1.0, %v9586_v34  ;;  %v8997_v16 = vpop.f32.mrf.mxu1 }
0x1085   : > { %v9590_v27 = vpop.eup %9589  ;;  %6791 = vst [vmem:[%s11124_s10 + $0x38] sm:$0xff] %v9588_v40  ;;  %9615 = vpow2.f32 %v7474_v38  ;;  %v7477_v63 = vmul.f32 -1.442695, %v8997_v16 }
0x1086   : > { %v9592_v25 = vpop.eup %9591  ;;  %9617 = vrcp.f32 %v6700_v13  ;;  %v6703_v41 = vadd.f32 1.0, %v9590_v27  ;;  %v6548_v42 = vpop.f32.mrf.mxu1 }
0x1087   : > { %v9594_v31 = vpop.eup %9593  ;;  %6789 = vst [vmem:[%s11124_s10 + $0x28] sm:$0xff] %v9592_v25  ;;  %9619 = vpow2.f32 %v7477_v63  ;;  %v7475_v50 = vmul.f32 -1.442695, %v6548_v42 }
0x1088   : > { %v9596_v0 = vpop.eup %9595  ;;  %9621 = vrcp.f32 %v6703_v41  ;;  %v6701_v1 = vadd.f32 1.0, %v9594_v31  ;;  %v9000_v39 = vpop.f32.mrf.mxu1 }
0x1089   : > { %v9598_v14 = vpop.eup %9597  ;;  %v6706_v20 = vadd.f32 1.0, %v9596_v0  ;;  %9623 = vpow2.f32 %v7475_v50  ;;  %v7480_v43 = vmul.f32 -1.442695, %v9000_v39 }
0x108a   : > { %v9600_v45 = vpop.eup %9599  ;;  %6794 = vst [vmem:[%s11124_s10 + $0x50] sm:$0xff] %v9598_v14  ;;  %9625 = vrcp.f32 %v6701_v1  ;;  %v6561_v46 = vpop.f32.mrf.mxu1 }
0x108b   : > { %v9602_v44 = vpop.eup %9601  ;;  %9627 = vrcp.f32 %v6706_v20  ;;  %v6704_v28 = vadd.f32 1.0, %v9600_v45  ;;  %v7478_v47 = vmul.f32 -1.442695, %v6561_v46 }
0x108c   : > { %v9604_v15 = vpop.eup %9603  ;;  %6792 = vst [vmem:[%s11124_s10 + $0x40] sm:$0xff] %v9602_v44  ;;  %9629 = vpow2.f32 %v7480_v43  ;;  %v9001_v55 = vpop.f32.mrf.mxu1 }
0x108d   : > { %v9606_v53 = vpop.eup %9605  ;;  %9631 = vrcp.f32 %v6704_v28  ;;  %v6707_v29 = vadd.f32 1.0, %v9604_v15  ;;  %v7481_v57 = vmul.f32 -1.442695, %v9001_v55 }
0x108e   : > { %v9608_v59 = vpop.eup %9607  ;;  %6795 = vst [vmem:[%s11124_s10 + $0x58] sm:$0xff] %v9606_v53  ;;  %9633 = vpow2.f32 %v7478_v47  ;;  %v6564_v62 = vpop.f32.mrf.mxu1 }
0x108f   : > { %v9610_v11 = vpop.eup %9609  ;;  %9635 = vrcp.f32 %v6707_v29  ;;  %v6705_v51 = vadd.f32 1.0, %v9608_v59  ;;  %v7479_v60 = vmul.f32 -1.442695, %v6564_v62 }
0x1090   : > { %v9612_v22 = vpop.eup %9611  ;;  %6793 = vst [vmem:[%s11124_s10 + $0x48] sm:$0xff] %v9610_v11  ;;  %9637 = vpow2.f32 %v7481_v57  ;;  %v9004_v30 = vpop.f32.mrf.mxu1 }
0x1091   : > { %v9614_v61 = vpop.eup %9613  ;;  %9639 = vrcp.f32 %v6705_v51  ;;  %v6710_v5 = vadd.f32 1.0, %v9612_v22  ;;  %v7484_v3 = vmul.f32 -1.442695, %v9004_v30 }
0x1092   : > { %v9616_v54 = vpop.eup %9615  ;;  %6798 = vst [vmem:[%s11124_s10 + $0x70] sm:$0xff] %v9614_v61  ;;  %9641 = vpow2.f32 %v7479_v60  ;;  %v6577_v58 = vpop.f32.mrf.mxu1 }
0x1093   : > { %v9618_v32 = vpop.eup %9617  ;;  %9643 = vrcp.f32 %v6710_v5  ;;  %v6708_v7 = vadd.f32 1.0, %v9616_v54  ;;  %v7482_v33 = vmul.f32 -1.442695, %v6577_v58 }
0x1094   : > { %v9620_v6 = vpop.eup %9619  ;;  %6796 = vst [vmem:[%s11124_s10 + $0x60] sm:$0xff] %v9618_v32  ;;  %9645 = vpow2.f32 %v7484_v3  ;;  %v9005_v4 = vpop.f32.mrf.mxu1 }
0x1095   : > { %v9622_v21 = vpop.eup %9621  ;;  %9647 = vrcp.f32 %v6708_v7  ;;  %v6711_v26 = vadd.f32 1.0, %v9620_v6  ;;  %v7485_v8 = vmul.f32 -1.442695, %v9005_v4 }
0x1096   : > { %v9624_v9 = vpop.eup %9623  ;;  %6799 = vst [vmem:[%s11124_s10 + $0x78] sm:$0xff] %v9622_v21  ;;  %9649 = vpow2.f32 %v7482_v33  ;;  %v6580_v12 = vpop.f32.mrf.mxu1 }
0x1097   : > { %v9626_v10 = vpop.eup %9625  ;;  %9651 = vrcp.f32 %v6711_v26  ;;  %v6709_v48 = vadd.f32 1.0, %v9624_v9  ;;  %v7483_v49 = vmul.f32 -1.442695, %v6580_v12 }
0x1098   : > { %v9628_v17 = vpop.eup %9627  ;;  %6797 = vst [vmem:[%s11124_s10 + $0x68] sm:$0xff] %v9626_v10  ;;  %9653 = vpow2.f32 %v7485_v8 }
0x1099   : > { %v9630_v18 = vpop.eup %9629  ;;  %6802 = vst [vmem:[%s11124_s10 + $0x90] sm:$0xff] %v9628_v17  ;;  %9655 = vrcp.f32 %v6709_v48 }
0x109a   : > { %v9632_v52 = vpop.eup %9631  ;;  %v6714_v19 = vadd.f32 1.0, %v9630_v18  ;;  %9657 = vpow2.f32 %v7483_v49 }
0x109b   : > { %v9634_v56 = vpop.eup %9633  ;;  %6800 = vst [vmem:[%s11124_s10 + $0x80] sm:$0xff] %v9632_v52 }
0x109c   : > { %v9636_v23 = vpop.eup %9635  ;;  %9659 = vrcp.f32 %v6714_v19  ;;  %v6712_v24 = vadd.f32 1.0, %v9634_v56 }
0x109d   : > { %v9638_v35 = vpop.eup %9637  ;;  %6803 = vst [vmem:[%s11124_s10 + $0x98] sm:$0xff] %v9636_v23 }
0x109e   : > { %v9640_v36 = vpop.eup %9639  ;;  %9661 = vrcp.f32 %v6712_v24  ;;  %v6715_v37 = vadd.f32 1.0, %v9638_v35 }
0x109f   : > { %v9642_v2 = vpop.eup %9641  ;;  %6801 = vst [vmem:[%s11124_s10 + $0x88] sm:$0xff] %v9640_v36 }
0x10a0   : > { %v9644_v34 = vpop.eup %9643  ;;  %9663 = vrcp.f32 %v6715_v37  ;;  %v6713_v38 = vadd.f32 1.0, %v9642_v2 }
0x10a1   : > { %v9646_v40 = vpop.eup %9645  ;;  %6806 = vst [vmem:[%s11124_s10 + $0xb0] sm:$0xff] %v9644_v34 }
0x10a2   : > { %v9648_v13 = vpop.eup %9647  ;;  %9665 = vrcp.f32 %v6713_v38  ;;  %v6718_v16 = vadd.f32 1.0, %v9646_v40 }
0x10a3   : > { %v9650_v27 = vpop.eup %9649  ;;  %6804 = vst [vmem:[%s11124_s10 + $0xa0] sm:$0xff] %v9648_v13 }
0x10a4   : > { %v9652_v63 = vpop.eup %9651  ;;  %9667 = vrcp.f32 %v6718_v16  ;;  %v6716_v25 = vadd.f32 1.0, %v9650_v27 }
0x10a5   : > { %v9654_v41 = vpop.eup %9653  ;;  %6807 = vst [vmem:[%s11124_s10 + $0xb8] sm:$0xff] %v9652_v63 }
0x10a6   : > { %v9656_v42 = vpop.eup %9655  ;;  %9669 = vrcp.f32 %v6716_v25  ;;  %v6719_v31 = vadd.f32 1.0, %v9654_v41 }
0x10a7   : > { %v9658_v50 = vpop.eup %9657  ;;  %6805 = vst [vmem:[%s11124_s10 + $0xa8] sm:$0xff] %v9656_v42 }
0x10a8   : > { %9671 = vrcp.f32 %v6719_v31  ;;  %v6717_v0 = vadd.f32 1.0, %v9658_v50 }
0x10a9   : > { %v9660_v1 = vpop.eup %9659 }
0x10aa   : > { %6810 = vst [vmem:[%s11124_s10 + $0xd0] sm:$0xff] %v9660_v1  ;;  %9673 = vrcp.f32 %v6717_v0 }
0x10ab   : > { %v9662_v39 = vpop.eup %9661 }
0x10ac   : > { %6808 = vst [vmem:[%s11124_s10 + $0xc0] sm:$0xff] %v9662_v39 }
0x10ad   : > { %v9664_v14 = vpop.eup %9663 }
0x10ae   : > { %6811 = vst [vmem:[%s11124_s10 + $0xd8] sm:$0xff] %v9664_v14 }
0x10af   : > { %v9666_v20 = vpop.eup %9665 }
0x10b0   : > { %6809 = vst [vmem:[%s11124_s10 + $0xc8] sm:$0xff] %v9666_v20 }
0x10b1   : > { %v9668_v43 = vpop.eup %9667 }
0x10b2   : > { %6814 = vst [vmem:[%s11124_s10 + $0xf0] sm:$0xff] %v9668_v43 }
0x10b3   : > { %v9670_v45 = vpop.eup %9669 }
0x10b4   : > { %6812 = vst [vmem:[%s11124_s10 + $0xe0] sm:$0xff] %v9670_v45 }
0x10b5   : > { %v9672_v46 = vpop.eup %9671 }
0x10b6   : > { %6815 = vst [vmem:[%s11124_s10 + $0xf8] sm:$0xff] %v9672_v46 }
0x10b7   : > { %v9674_v44 = vpop.eup %9673 }
0x10b8   : > { %6813 = vst [vmem:[%s11124_s10 + $0xe8] sm:$0xff] %v9674_v44 }
0x10b9   : > { %9940 = shalt.err (!%p9937_p6)
}
0x10ba   : > { %s9941_s7 = scalar_lea.hbm %s11161_s5, 4096  ;;  %s9945_s30 = scalar_lea.hbm %s11275_s28, 8192 }
0x10bb   : > { %p9942_p11 = scmp.ne.s32.totalorder %s11161_s5, %s9941_s7  ;;  %p9946_p2 = scmp.lt.s32.totalorder %s11161_s5, %s11275_s28 }
0x10bc   : > { %p9947_p5 = scmp.lt.s32.totalorder %s9945_s30, %s9941_s7 }
0x10bd   : > { %p9943_p7 = pnand %p9942_p11, %p11274_p9 }
0x10be   : > { %p9948_p10 = por %p9947_p5, %p9946_p2 }
0x10bf   : > { %p9944_p0 = pneg %p9943_p7 }
0x10c1   : > { %p9949_p12 = pnand %p9948_p10, %p9944_p0 }
0x10c3   : > { %9952 = shalt.err (!%p9949_p12)
}
0x10c4   : > { %s10030_s29 = smov 128   ;;  %s10031_s27 = smov 8  }
0x10c5   : > { %9036 = dma.vmem_to_hbm [thread:$0]  (%p11274_p9), %s11163_s2, 4096, %s11161_s5, %s6833_s26, %s10030_s29, %s10030_s29, %s10031_s27  }
0x10c6 PF: > { %s6878_s15 = sand.u32 1, %s9999_s21   ;;  %p11276_p13 = scmp.ne.s32.totalorder %s11257_s1, 0 }
0x10c7   : > { %p11277_p1 = scmp.ge.s32.totalorder %s10011_s24, 2  ;;  %s6879_s0 = scalar_lea.sflag [#allocation4], %s6878_s15 }
0x10c9   : > { %p9067_p3 = pnand %p11277_p1, %p11276_p13 }
0x10cb   : > { %p9068_p4 = pneg %p9067_p3 }
0x10cd   : > { %9990 = dma.done.wait (%p9068_p4), %s6879_s0, 4096  }
0x10ce   : > { %9992 = vsyncadd (%p9068_p4), %s6879_s0, 4294963200  ;;  %s6888_s7 = scalar_lea.sflag [#allocation18], %s6878_s15 }
0x10cf   : > { %9994 = dma.done.wait (%p9068_p4), %s6888_s7, 16  }
0x10d0   : > { %9996 = vsyncadd (%p9068_p4), %s6888_s7, 4294967280  ;;  %p37_p9 = scmp.ge.s32.totalorder %s10241_s19, 4   ;;  %s11278_s21 = smov %s10003_s22 }
0x10d1   : > { %s11279_s22 = smov %s10007_s23  ;;  %s11280_s23 = smov %s10253_s25 }
0x10d2   : > { %s11281_s24 = smov %s10241_s19  ;;  %39 = sbr.rel (!%p37_p9) target bundleno = 23 (0x17), region = 218 }
0x10d7   :  { %6892 = vsyncpa [#allocation3], 1 }
0x10d8   :  { %6894 = vsyncpa [#allocation3 + $0x1], 1 }
0x10d9   :  { %6895 = vsyncpa [#allocation6], 1 }
0x10da   :  { %6896 = vsyncpa [#allocation9], 1 }
0x10db   :  { %6897 = vsyncpa [#allocation12], 1 }
0x10dc   :  { %6898 = vsyncpa [#allocation15], 1 }
0x10dd   :  { %6899 = vsyncpa [#allocation4], 1 }
0x10de   :  { %6901 = vsyncpa [#allocation4 + $0x1], 1 }
0x10df   :  { %6902 = vsyncpa [#allocation18], 1 }
0x10e0   :  { %6904 = vsyncpa [#allocation18 + $0x1], 1 }

</bundles_post_ra>
